<compile_context>
chip_gen: v5e
topology: v5e:2x2
jax: 0.10.0
libtpu: 0.0.40
codegen_flags: <defaults>
</compile_context>

<pallas_src>
import math
import numpy as np
import jax
import jax.numpy as jnp
from jax import lax
from jax.experimental import pallas as pl
from jax.experimental.pallas import tpu as pltpu

# ----------------------- small BMN config -----------------------
T = 16        # DATA.TEMPORAL_DIM
D = 16        # DATA.MAX_DURATION
NS = 8        # BMN.NUM_SAMPLES
NSPB = 3      # BMN.NUM_SAMPLES_PER_BIN
PBR = 0.5     # BMN.PROP_BOUNDARY_RATIO
FEAT = 32     # MODEL.FEAT_DIM      (divisible by groups=4)
H1 = 32       # MODEL.HIDDEN_DIM_1D (divisible by groups=4)
H2 = 32       # MODEL.HIDDEN_DIM_2D
H3 = 16       # MODEL.HIDDEN_DIM_3D
B = 2
DT = D * T
PAD2 = 2 * T  # zero padding (each side) for flattened 2D conv buffer


# ----------------------- sample mask (host-side, verbatim port) -----------------------
def _get_interp1d_bin_mask(seg_xmin, seg_xmax, tscale, num_sample, num_sample_perbin):
    plen = float(seg_xmax - seg_xmin)
    plen_sample = plen / (num_sample * num_sample_perbin - 1.0)
    total_samples = [seg_xmin + plen_sample * ii for ii in range(num_sample * num_sample_perbin)]
    p_mask = []
    for idx in range(num_sample):
        bin_samples = total_samples[idx * num_sample_perbin:(idx + 1) * num_sample_perbin]
        bin_vector = np.zeros([tscale])
        for sample in bin_samples:
            sample_upper = math.ceil(sample)
            sample_decimal, sample_down = math.modf(sample)
            if int(sample_down) <= tscale - 1 and int(sample_down) >= 0:
                bin_vector[int(sample_down)] += 1 - sample_decimal
            if int(sample_upper) <= tscale - 1 and int(sample_upper) >= 0:
                bin_vector[int(sample_upper)] += sample_decimal
        bin_vector = 1.0 / num_sample_perbin * bin_vector
        p_mask.append(bin_vector)
    p_mask = np.stack(p_mask, axis=1)
    return p_mask


def get_interp1d_mask():
    mask_mat = []
    for start_index in range(T):
        mask_mat_vector = []
        for duration_index in range(D):
            if start_index + duration_index < T:
                p_xmin = start_index
                p_xmax = start_index + duration_index
                center_len = float(p_xmax - p_xmin) + 1
                sample_xmin = p_xmin - center_len * PBR
                sample_xmax = p_xmax + center_len * PBR
                p_mask = _get_interp1d_bin_mask(sample_xmin, sample_xmax, T, NS, NSPB)
            else:
                p_mask = np.zeros([T, NS])
            mask_mat_vector.append(p_mask)
        mask_mat_vector = np.stack(mask_mat_vector, axis=2)
        mask_mat.append(mask_mat_vector)
    mask_mat = np.stack(mask_mat, axis=3).astype(np.float32)   # [T, NS, D, T]
    return mask_mat.reshape(T, -1)                              # [T, NS*D*T]


# ----------------------- parameter init (deterministic, synthetic) -----------------------
def init_params(key):
    shapes = {
        'w_b1': (H1, FEAT // 4, 3), 'b_b1': (H1,),
        'w_b2': (H1, H1 // 4, 3), 'b_b2': (H1,),
        'w_s1': (H1, H1 // 4, 3), 'b_s1': (H1,),
        'w_s2': (1, H1, 1), 'b_s2': (1,),
        'w_e1': (H1, H1 // 4, 3), 'b_e1': (H1,),
        'w_e2': (1, H1, 1), 'b_e2': (1,),
        'w_p1': (H1, H1, 3), 'b_p1': (H1,),
        'w_3d': (H3, H1, NS, 1, 1), 'b_3d': (H3,),
        'w_2d1': (H2, H3, 1, 1), 'b_2d1': (H2,),
        'w_2d2': (H2, H2, 3, 3), 'b_2d2': (H2,),
        'w_2d3': (H2, H2, 3, 3), 'b_2d3': (H2,),
        'w_2d4': (2, H2, 1, 1), 'b_2d4': (2,),
    }
    keys = jax.random.split(key, len(shapes))
    return {name: jax.random.uniform(k, shp, jnp.float32, -0.1, 0.1)
            for (name, shp), k in zip(shapes.items(), keys)}


def expand_grouped_1d(w, groups):
    """[Cout, Cin//g, K] grouped conv weight -> dense block-diagonal [Cout, Cin, K]."""
    cout, cin_g, k = w.shape
    og = cout // groups
    dense = jnp.zeros((cout, cin_g * groups, k), jnp.float32)
    for g in range(groups):
        dense = dense.at[g * og:(g + 1) * og, g * cin_g:(g + 1) * cin_g, :].set(
            w[g * og:(g + 1) * og])
    return dense


# ----------------------- one-time parameter preparation (hoisted out of forward) ----------
def prepare_params(p, sample_mask):
    """Re-layout all weights for the fused kernel. Runs once, outside the jitted forward."""
    as_col = lambda b: b.reshape(-1, 1)

    def im2col_1d(w_dense):          # [Cout, Cin, 3] -> [Cout, 3*Cin], index k*Cin+c
        return jnp.transpose(w_dense, (0, 2, 1)).reshape(w_dense.shape[0], -1)

    def im2col_2d(w):                # [Cout, Cin, 3, 3] -> [Cout, 9*Cin], index (di*3+dj)*Cin+c
        return jnp.transpose(w, (0, 2, 3, 1)).reshape(w.shape[0], -1)

    wb1 = im2col_1d(expand_grouped_1d(p['w_b1'], 4))
    wb2 = im2col_1d(expand_grouped_1d(p['w_b2'], 4))
    ws1 = im2col_1d(expand_grouped_1d(p['w_s1'], 4))
    we1 = im2col_1d(expand_grouped_1d(p['w_e1'], 4))
    wp1 = im2col_1d(p['w_p1'])

    # Conv3d((NS,1,1)) weight, rows ordered (sample, out-channel): [NS*H3, H1]
    w3 = p['w_3d'][:, :, :, 0, 0]                       # [H3, H1, NS]
    w3f = jnp.transpose(w3, (2, 0, 1)).reshape(NS * H3, H1)

    w22 = im2col_2d(p['w_2d2'])                         # [H2, 9*H2]
    w23 = im2col_2d(p['w_2d3'])

    # masks that zero the t-wraparound of the flattened 3x3 conv
    t_idx = jnp.arange(DT, dtype=jnp.int32) % T
    mleft = (t_idx != 0).astype(jnp.float32).reshape(1, DT)
    mright = (t_idx != T - 1).astype(jnp.float32).reshape(1, DT)

    return (wb1, as_col(p['b_b1']), wb2, as_col(p['b_b2']),
            ws1, as_col(p['b_s1']), p['w_s2'][:, :, 0], as_col(p['b_s2']),
            we1, as_col(p['b_e1']), p['w_e2'][:, :, 0], as_col(p['b_e2']),
            wp1, as_col(p['b_p1']),
            w3f, as_col(p['b_3d']), sample_mask,
            p['w_2d1'][:, :, 0, 0], as_col(p['b_2d1']),
            w22, as_col(p['b_2d2']), w23, as_col(p['b_2d3']),
            p['w_2d4'][:, :, 0, 0], as_col(p['b_2d4']),
            mleft, mright)


# ----------------------- the single fused Pallas kernel -----------------------
def bmn_fused_kernel(x_ref,
                     wb1_ref, bb1_ref, wb2_ref, bb2_ref,
                     ws1_ref, bs1_ref, ws2_ref, bs2_ref,
                     we1_ref, be1_ref, we2_ref, be2_ref,
                     wp1_ref, bp1_ref,
                     w3f_ref, b3_ref, mask_ref,
                     w21_ref, b21_ref, w22_ref, b22_ref, w23_ref, b23_ref,
                     w24_ref, b24_ref, ml_ref, mr_ref,
                     conf_ref, se_ref,
                     xstack1, xpad2, xstack2):
    f32 = jnp.float32

    # Zero only the pad entries of the persistent scratch buffers, once per grid
    # step (the interiors are fully overwritten by every layer that uses them).
    xstack1[0:H1, 0:1] = jnp.zeros((H1, 1), f32)
    xstack1[2 * H1:3 * H1, T - 1:T] = jnp.zeros((H1, 1), f32)
    xpad2[:, 0:PAD2] = jnp.zeros((H2, PAD2), f32)
    xpad2[:, PAD2 + DT:PAD2 + DT + PAD2] = jnp.zeros((H2, PAD2), f32)

    def sigmoid(z):
        return 1.0 / (1.0 + jnp.exp(-z))

    def conv1d_k3(x, w_ref, b_ref):
        """kernel=3, pad=1 conv as one im2col matmul: [Cout,3*C] @ [3*C,T]."""
        c = x.shape[0]
        xstack1[c:2 * c, :] = x                       # center tap
        xstack1[0:c, 1:T] = x[:, 0:T - 1]             # left tap  (col 0 stays 0)
        xstack1[2 * c:3 * c, 0:T - 1] = x[:, 1:T]     # right tap (col T-1 stays 0)
        return jnp.dot(w_ref[...], xstack1[...],
                       preferred_element_type=f32) + b_ref[...]

    # ---------------- stage 1: 1D conv branches ----------------
    x = x_ref[0]                                                     # [FEAT, T]
    h = jnp.maximum(conv1d_k3(x, wb1_ref, bb1_ref), 0.0)
    base = jnp.maximum(conv1d_k3(h, wb2_ref, bb2_ref), 0.0)

    hs = jnp.maximum(conv1d_k3(base, ws1_ref, bs1_ref), 0.0)
    s_row = sigmoid(jnp.dot(ws2_ref[...], hs, preferred_element_type=f32)
                    + bs2_ref[...])                                  # [1, T]
    he = jnp.maximum(conv1d_k3(base, we1_ref, be1_ref), 0.0)
    e_row = sigmoid(jnp.dot(we2_ref[...], he, preferred_element_type=f32)
                    + be2_ref[...])                                  # [1, T]
    se_ref[0, 0:1, :] = s_row
    se_ref[0, 1:2, :] = e_row

    featp = jnp.maximum(conv1d_k3(base, wp1_ref, bp1_ref), 0.0)      # [H1, T]

    # ---------------- stage 2: boundary matching + Conv3d((NS,1,1)) ----------------
    # Apply the [NS*H3, H1] projection first (one matmul), then contract each
    # per-sample [H3, T] block with its [T, DT] mask slice.
    y3 = jnp.dot(w3f_ref[...], featp, preferred_element_type=f32)    # [NS*H3, T]
    acc = jnp.zeros((H3, DT), f32)
    for s in range(NS):
        acc = acc + jnp.dot(y3[s * H3:(s + 1) * H3, :],
                            mask_ref[:, s * DT:(s + 1) * DT],
                            preferred_element_type=f32)
    conf3 = jnp.maximum(acc + b3_ref[...], 0.0)                      # [H3, DT]

    # ---------------- stage 3: 2D conv tower on flattened D*T ----------------
    mleft = ml_ref[...]
    mright = mr_ref[...]

    def conv2d_k3(y, w_ref, b_ref):
        """3x3, pad=1 conv on the flattened [C, D*T] map via im2col matmul."""
        xpad2[:, PAD2:PAD2 + DT] = y
        for di in range(3):
            for dj in range(3):
                off = PAD2 + (di - 1) * T + (dj - 1)
                xs = xpad2[:, off:off + DT]
                if dj == 0:
                    xs = xs * mleft       # zero contributions that wrapped across t=0
                elif dj == 2:
                    xs = xs * mright      # zero contributions that wrapped across t=T-1
                r = di * 3 + dj
                xstack2[r * H2:(r + 1) * H2, :] = xs
        return jnp.dot(w_ref[...], xstack2[...],
                       preferred_element_type=f32) + b_ref[...]

    y = jnp.maximum(jnp.dot(w21_ref[...], conf3, preferred_element_type=f32)
                    + b21_ref[...], 0.0)
    y = jnp.maximum(conv2d_k3(y, w22_ref, b22_ref), 0.0)
    y = jnp.maximum(conv2d_k3(y, w23_ref, b23_ref), 0.0)
    conf_ref[0] = sigmoid(jnp.dot(w24_ref[...], y, preferred_element_type=f32)
                          + b24_ref[...])


# ----------------------- wrapper -----------------------
def _full_spec(a):
    nd = a.ndim
    return pl.BlockSpec(a.shape, lambda b, nd=nd: (0,) * nd)


def bmn_forward_pallas(x, prepped):
    conf_flat, se = pl.pallas_call(
        bmn_fused_kernel,
        out_shape=(jax.ShapeDtypeStruct((B, 2, DT), jnp.float32),
                   jax.ShapeDtypeStruct((B, 2, T), jnp.float32)),
        grid_spec=pltpu.PrefetchScalarGridSpec(
            num_scalar_prefetch=0, grid=(B,),
            in_specs=[pl.BlockSpec((1, FEAT, T), lambda b: (b, 0, 0))]
                     + [_full_spec(w) for w in prepped],
            out_specs=[pl.BlockSpec((1, 2, DT), lambda b: (b, 0, 0)),
                       pl.BlockSpec((1, 2, T), lambda b: (b, 0, 0))],
            scratch_shapes=[pltpu.VMEM((3 * H1, T), jnp.float32),          # 1D im2col stack
                            pltpu.VMEM((H2, DT + 2 * PAD2), jnp.float32),  # padded 2D map
                            pltpu.VMEM((9 * H2, DT), jnp.float32)]),       # 2D im2col stack
        compiler_params=pltpu.CompilerParams(
            dimension_semantics=("parallel",)),   # batch across TCs on v7x; serial elsewhere
    )(x, *prepped)

    confidence_map = conf_flat.reshape(B, 2, D, T)
    return confidence_map, se[:, 0, :], se[:, 1, :]


# ----------------------- pure-JAX reference for verification -----------------------
def reference_forward(x, p, sample_mask):
    P = lax.Precision.HIGHEST
    relu, sig = jax.nn.relu, jax.nn.sigmoid

    def conv1d(h, w, b, groups=1, pad=1):
        o = lax.conv_general_dilated(h, w, (1,), [(pad, pad)],
                                     dimension_numbers=('NCH', 'OIH', 'NCH'),
                                     feature_group_count=groups, precision=P)
        return o + b[None, :, None]

    def conv2d(h, w, b, pad=0):
        o = lax.conv_general_dilated(h, w, (1, 1), [(pad, pad), (pad, pad)],
                                     dimension_numbers=('NCHW', 'OIHW', 'NCHW'),
                                     precision=P)
        return o + b[None, :, None, None]

    h = relu(conv1d(x, p['w_b1'], p['b_b1'], groups=4))
    base = relu(conv1d(h, p['w_b2'], p['b_b2'], groups=4))

    hs = relu(conv1d(base, p['w_s1'], p['b_s1'], groups=4))
    start = sig(conv1d(hs, p['w_s2'], p['b_s2'], groups=1, pad=0))[:, 0, :]
    he = relu(conv1d(base, p['w_e1'], p['b_e1'], groups=4))
    end = sig(conv1d(he, p['w_e2'], p['b_e2'], groups=1, pad=0))[:, 0, :]

    featp = relu(conv1d(base, p['w_p1'], p['b_p1'], groups=1))
    bm = jnp.matmul(featp, sample_mask, precision=P).reshape(B, H1, NS, D, T)
    c3 = lax.conv_general_dilated(bm, p['w_3d'], (1, 1, 1), [(0, 0)] * 3,
                                  dimension_numbers=('NCDHW', 'OIDHW', 'NCDHW'),
                                  precision=P)
    c3 = relu(c3 + p['b_3d'][None, :, None, None, None])[:, :, 0]

    y = relu(conv2d(c3, p['w_2d1'], p['b_2d1'], pad=0))
    y = relu(conv2d(y, p['w_2d2'], p['b_2d2'], pad=1))
    y = relu(conv2d(y, p['w_2d3'], p['b_2d3'], pad=1))
    conf = sig(conv2d(y, p['w_2d4'], p['b_2d4'], pad=0))
    return conf, start, end


# ----------------------- main -----------------------
if __name__ == "__main__":
    key = jax.random.PRNGKey(0)
    kx, kp = jax.random.split(key)
    x = jax.random.normal(kx, (B, FEAT, T), jnp.float32)
    params = init_params(kp)
    sample_mask = jnp.asarray(get_interp1d_mask(), jnp.float32)   # [T, NS*D*T]

    # one-time parameter re-layout (outside the per-forward jit)
    prepped = jax.tree_util.tree_map(jax.device_put, prepare_params(params, sample_mask))

    fwd = jax.jit(bmn_forward_pallas)
    conf, start, end = fwd(x, prepped)
    jax.block_until_ready((conf, start, end))

    conf_r, start_r, end_r = reference_forward(x, params, sample_mask)
    np.testing.assert_allclose(np.asarray(conf), np.asarray(conf_r), rtol=5e-3, atol=5e-3)
    np.testing.assert_allclose(np.asarray(start), np.asarray(start_r), rtol=5e-3, atol=5e-3)
    np.testing.assert_allclose(np.asarray(end), np.asarray(end_r), rtol=5e-3, atol=5e-3)

    assert conf.shape == (B, 2, D, T) and start.shape == (B, T) and end.shape == (B, T)
    print("KERNEL_OK")
</pallas_src>

<mosaic_0001>
module attributes {stable_mosaic.version = 11 : i64} {
  func.func @bmn_fused_kernel(%arg0: i32, %arg1: memref<1x32x16xf32, #tpu.memory_space<vmem>>, %arg2: memref<32x96xf32, #tpu.memory_space<vmem>>, %arg3: memref<32x1xf32, #tpu.memory_space<vmem>>, %arg4: memref<32x96xf32, #tpu.memory_space<vmem>>, %arg5: memref<32x1xf32, #tpu.memory_space<vmem>>, %arg6: memref<32x96xf32, #tpu.memory_space<vmem>>, %arg7: memref<32x1xf32, #tpu.memory_space<vmem>>, %arg8: memref<1x32xf32, #tpu.memory_space<vmem>>, %arg9: memref<1x1xf32, #tpu.memory_space<vmem>>, %arg10: memref<32x96xf32, #tpu.memory_space<vmem>>, %arg11: memref<32x1xf32, #tpu.memory_space<vmem>>, %arg12: memref<1x32xf32, #tpu.memory_space<vmem>>, %arg13: memref<1x1xf32, #tpu.memory_space<vmem>>, %arg14: memref<32x96xf32, #tpu.memory_space<vmem>>, %arg15: memref<32x1xf32, #tpu.memory_space<vmem>>, %arg16: memref<128x32xf32, #tpu.memory_space<vmem>>, %arg17: memref<16x1xf32, #tpu.memory_space<vmem>>, %arg18: memref<16x2048xf32, #tpu.memory_space<vmem>>, %arg19: memref<32x16xf32, #tpu.memory_space<vmem>>, %arg20: memref<32x1xf32, #tpu.memory_space<vmem>>, %arg21: memref<32x288xf32, #tpu.memory_space<vmem>>, %arg22: memref<32x1xf32, #tpu.memory_space<vmem>>, %arg23: memref<32x288xf32, #tpu.memory_space<vmem>>, %arg24: memref<32x1xf32, #tpu.memory_space<vmem>>, %arg25: memref<2x32xf32, #tpu.memory_space<vmem>>, %arg26: memref<2x1xf32, #tpu.memory_space<vmem>>, %arg27: memref<1x256xf32, #tpu.memory_space<vmem>>, %arg28: memref<1x256xf32, #tpu.memory_space<vmem>>, %arg29: memref<1x2x256xf32, #tpu.memory_space<vmem>>, %arg30: memref<1x2x16xf32, #tpu.memory_space<vmem>>, %arg31: memref<96x16xf32, #tpu.memory_space<vmem>>, %arg32: memref<32x320xf32, #tpu.memory_space<vmem>>, %arg33: memref<288x256xf32, #tpu.memory_space<vmem>>) attributes {dimension_semantics = [#tpu.dimension_semantics<parallel>], iteration_bounds = array<i64: 2>, scalar_prefetch = 0 : i64, scratch_operands = 3 : i64, tpu.core_type = #tpu.core_type<tc>, window_params = [{transform_indices = @transform_0, window_bounds = array<i64: 1, 32, 16>}, {pipeline_mode = #tpu.pipeline_mode<synchronous>, transform_indices = @transform_1, window_bounds = array<i64: 32, 96>}, {pipeline_mode = #tpu.pipeline_mode<synchronous>, transform_indices = @transform_2, window_bounds = array<i64: 32, 1>}, {pipeline_mode = #tpu.pipeline_mode<synchronous>, transform_indices = @transform_3, window_bounds = array<i64: 32, 96>}, {pipeline_mode = #tpu.pipeline_mode<synchronous>, transform_indices = @transform_4, window_bounds = array<i64: 32, 1>}, {pipeline_mode = #tpu.pipeline_mode<synchronous>, transform_indices = @transform_5, window_bounds = array<i64: 32, 96>}, {pipeline_mode = #tpu.pipeline_mode<synchronous>, transform_indices = @transform_6, window_bounds = array<i64: 32, 1>}, {pipeline_mode = #tpu.pipeline_mode<synchronous>, transform_indices = @transform_7, window_bounds = array<i64: 1, 32>}, {pipeline_mode = #tpu.pipeline_mode<synchronous>, transform_indices = @transform_8, window_bounds = array<i64: 1, 1>}, {pipeline_mode = #tpu.pipeline_mode<synchronous>, transform_indices = @transform_9, window_bounds = array<i64: 32, 96>}, {pipeline_mode = #tpu.pipeline_mode<synchronous>, transform_indices = @transform_10, window_bounds = array<i64: 32, 1>}, {pipeline_mode = #tpu.pipeline_mode<synchronous>, transform_indices = @transform_11, window_bounds = array<i64: 1, 32>}, {pipeline_mode = #tpu.pipeline_mode<synchronous>, transform_indices = @transform_12, window_bounds = array<i64: 1, 1>}, {pipeline_mode = #tpu.pipeline_mode<synchronous>, transform_indices = @transform_13, window_bounds = array<i64: 32, 96>}, {pipeline_mode = #tpu.pipeline_mode<synchronous>, transform_indices = @transform_14, window_bounds = array<i64: 32, 1>}, {pipeline_mode = #tpu.pipeline_mode<synchronous>, transform_indices = @transform_15, window_bounds = array<i64: 128, 32>}, {pipeline_mode = #tpu.pipeline_mode<synchronous>, transform_indices = @transform_16, window_bounds = array<i64: 16, 1>}, {pipeline_mode = #tpu.pipeline_mode<synchronous>, transform_indices = @transform_17, window_bounds = array<i64: 16, 2048>}, {pipeline_mode = #tpu.pipeline_mode<synchronous>, transform_indices = @transform_18, window_bounds = array<i64: 32, 16>}, {pipeline_mode = #tpu.pipeline_mode<synchronous>, transform_indices = @transform_19, window_bounds = array<i64: 32, 1>}, {pipeline_mode = #tpu.pipeline_mode<synchronous>, transform_indices = @transform_20, window_bounds = array<i64: 32, 288>}, {pipeline_mode = #tpu.pipeline_mode<synchronous>, transform_indices = @transform_21, window_bounds = array<i64: 32, 1>}, {pipeline_mode = #tpu.pipeline_mode<synchronous>, transform_indices = @transform_22, window_bounds = array<i64: 32, 288>}, {pipeline_mode = #tpu.pipeline_mode<synchronous>, transform_indices = @transform_23, window_bounds = array<i64: 32, 1>}, {pipeline_mode = #tpu.pipeline_mode<synchronous>, transform_indices = @transform_24, window_bounds = array<i64: 2, 32>}, {pipeline_mode = #tpu.pipeline_mode<synchronous>, transform_indices = @transform_25, window_bounds = array<i64: 2, 1>}, {pipeline_mode = #tpu.pipeline_mode<synchronous>, transform_indices = @transform_26, window_bounds = array<i64: 1, 256>}, {pipeline_mode = #tpu.pipeline_mode<synchronous>, transform_indices = @transform_27, window_bounds = array<i64: 1, 256>}, {transform_indices = @transform_28, window_bounds = array<i64: 1, 2, 256>}, {transform_indices = @transform_29, window_bounds = array<i64: 1, 2, 16>}]} {
    %cst = arith.constant 0.000000e+00 : f32
    %0 = vector.broadcast %cst : f32 to vector<32x1xf32>
    %c0 = arith.constant 0 : index
    %c0_0 = arith.constant 0 : index
    %1 = vector.load %arg31[%c0, %c0_0] : memref<96x16xf32, #tpu.memory_space<vmem>>, vector<32x1xf32>
    tpu.vector_store %arg31[%c0, %c0_0], %0 {strides = array<i32>} : memref<96x16xf32, #tpu.memory_space<vmem>>, vector<32x1xf32>,
    %cst_1 = arith.constant 0.000000e+00 : f32
    %2 = vector.broadcast %cst_1 : f32 to vector<32x1xf32>
    %c64 = arith.constant 64 : index
    %c15 = arith.constant 15 : index
    %3 = vector.load %arg31[%c64, %c15] : memref<96x16xf32, #tpu.memory_space<vmem>>, vector<32x1xf32>
    tpu.vector_store %arg31[%c64, %c15], %2 {strides = array<i32>} : memref<96x16xf32, #tpu.memory_space<vmem>>, vector<32x1xf32>,
    %cst_2 = arith.constant 0.000000e+00 : f32
    %4 = vector.broadcast %cst_2 : f32 to vector<32x32xf32>
    %c0_3 = arith.constant 0 : index
    %c0_4 = arith.constant 0 : index
    %5 = vector.load %arg32[%c0_3, %c0_4] : memref<32x320xf32, #tpu.memory_space<vmem>>, vector<32x32xf32>
    tpu.vector_store %arg32[%c0_3, %c0_4], %4 {strides = array<i32>} : memref<32x320xf32, #tpu.memory_space<vmem>>, vector<32x32xf32>,
    %cst_5 = arith.constant 0.000000e+00 : f32
    %6 = vector.broadcast %cst_5 : f32 to vector<32x32xf32>
    %c0_6 = arith.constant 0 : index
    %c288 = arith.constant 288 : index
    %7 = vector.load %arg32[%c0_6, %c288] : memref<32x320xf32, #tpu.memory_space<vmem>>, vector<32x32xf32>
    tpu.vector_store %arg32[%c0_6, %c288], %6 {strides = array<i32>} : memref<32x320xf32, #tpu.memory_space<vmem>>, vector<32x32xf32>,
    %c0_7 = arith.constant 0 : index
    %c0_8 = arith.constant 0 : index
    %c0_9 = arith.constant 0 : index
    %8 = vector.load %arg1[%c0_7, %c0_8, %c0_9] : memref<1x32x16xf32, #tpu.memory_space<vmem>>, vector<1x32x16xf32>
    %9 = vector.shape_cast %8 : vector<1x32x16xf32> to vector<32x16xf32>
    %c32 = arith.constant 32 : index
    %c0_10 = arith.constant 0 : index
    %10 = vector.load %arg31[%c32, %c0_10] : memref<96x16xf32, #tpu.memory_space<vmem>>, vector<32x16xf32>
    tpu.vector_store %arg31[%c32, %c0_10], %9 {strides = array<i32>} : memref<96x16xf32, #tpu.memory_space<vmem>>, vector<32x16xf32>,
    %11 = vector.extract_strided_slice %9 {offsets = [0, 0], sizes = [32, 15], strides = [1, 1]} : vector<32x16xf32> to vector<32x15xf32>
    %c0_11 = arith.constant 0 : index
    %c1 = arith.constant 1 : index
    %12 = vector.load %arg31[%c0_11, %c1] : memref<96x16xf32, #tpu.memory_space<vmem>>, vector<32x15xf32>
    tpu.vector_store %arg31[%c0_11, %c1], %11 {strides = array<i32>} : memref<96x16xf32, #tpu.memory_space<vmem>>, vector<32x15xf32>,
    %13 = vector.extract_strided_slice %9 {offsets = [0, 1], sizes = [32, 15], strides = [1, 1]} : vector<32x16xf32> to vector<32x15xf32>
    %c64_12 = arith.constant 64 : index
    %c0_13 = arith.constant 0 : index
    %14 = vector.load %arg31[%c64_12, %c0_13] : memref<96x16xf32, #tpu.memory_space<vmem>>, vector<32x15xf32>
    tpu.vector_store %arg31[%c64_12, %c0_13], %13 {strides = array<i32>} : memref<96x16xf32, #tpu.memory_space<vmem>>, vector<32x15xf32>,
    %c0_14 = arith.constant 0 : index
    %c0_15 = arith.constant 0 : index
    %15 = vector.load %arg2[%c0_14, %c0_15] : memref<32x96xf32, #tpu.memory_space<vmem>>, vector<32x96xf32>
    %c0_16 = arith.constant 0 : index
    %c0_17 = arith.constant 0 : index
    %16 = vector.load %arg31[%c0_16, %c0_17] : memref<96x16xf32, #tpu.memory_space<vmem>>, vector<96x16xf32>
    %cst_18 = arith.constant dense<0.000000e+00> : vector<32x16xf32>
    %17 = tpu.matmul %15, %16, %cst_18 {dimension_numbers = #tpu.dot_dimension_numbers<[1], [0], [0], [1], [0, 0, 1, 1], [], []>} : vector<32x96xf32>, vector<96x16xf32>, vector<32x16xf32> -> vector<32x16xf32>
    %c0_19 = arith.constant 0 : index
    %c0_20 = arith.constant 0 : index
    %18 = vector.load %arg3[%c0_19, %c0_20] : memref<32x1xf32, #tpu.memory_space<vmem>>, vector<32x1xf32>
    %19 = vector.broadcast %18 : vector<32x1xf32> to vector<32x16xf32>
    %20 = arith.addf %17, %19 : vector<32x16xf32>
    %cst_21 = arith.constant 0.000000e+00 : f32
    %21 = vector.broadcast %cst_21 : f32 to vector<32x16xf32>
    %22 = arith.maximumf %20, %21 : vector<32x16xf32>
    %c32_22 = arith.constant 32 : index
    %c0_23 = arith.constant 0 : index
    %23 = vector.load %arg31[%c32_22, %c0_23] : memref<96x16xf32, #tpu.memory_space<vmem>>, vector<32x16xf32>
    tpu.vector_store %arg31[%c32_22, %c0_23], %22 {strides = array<i32>} : memref<96x16xf32, #tpu.memory_space<vmem>>, vector<32x16xf32>,
    %24 = vector.extract_strided_slice %22 {offsets = [0, 0], sizes = [32, 15], strides = [1, 1]} : vector<32x16xf32> to vector<32x15xf32>
    %c0_24 = arith.constant 0 : index
    %c1_25 = arith.constant 1 : index
    %25 = vector.load %arg31[%c0_24, %c1_25] : memref<96x16xf32, #tpu.memory_space<vmem>>, vector<32x15xf32>
    tpu.vector_store %arg31[%c0_24, %c1_25], %24 {strides = array<i32>} : memref<96x16xf32, #tpu.memory_space<vmem>>, vector<32x15xf32>,
    %26 = vector.extract_strided_slice %22 {offsets = [0, 1], sizes = [32, 15], strides = [1, 1]} : vector<32x16xf32> to vector<32x15xf32>
    %c64_26 = arith.constant 64 : index
    %c0_27 = arith.constant 0 : index
    %27 = vector.load %arg31[%c64_26, %c0_27] : memref<96x16xf32, #tpu.memory_space<vmem>>, vector<32x15xf32>
    tpu.vector_store %arg31[%c64_26, %c0_27], %26 {strides = array<i32>} : memref<96x16xf32, #tpu.memory_space<vmem>>, vector<32x15xf32>,
    %c0_28 = arith.constant 0 : index
    %c0_29 = arith.constant 0 : index
    %28 = vector.load %arg4[%c0_28, %c0_29] : memref<32x96xf32, #tpu.memory_space<vmem>>, vector<32x96xf32>
    %c0_30 = arith.constant 0 : index
    %c0_31 = arith.constant 0 : index
    %29 = vector.load %arg31[%c0_30, %c0_31] : memref<96x16xf32, #tpu.memory_space<vmem>>, vector<96x16xf32>
    %cst_32 = arith.constant dense<0.000000e+00> : vector<32x16xf32>
    %30 = tpu.matmul %28, %29, %cst_32 {dimension_numbers = #tpu.dot_dimension_numbers<[1], [0], [0], [1], [0, 0, 1, 1], [], []>} : vector<32x96xf32>, vector<96x16xf32>, vector<32x16xf32> -> vector<32x16xf32>
    %c0_33 = arith.constant 0 : index
    %c0_34 = arith.constant 0 : index
    %31 = vector.load %arg5[%c0_33, %c0_34] : memref<32x1xf32, #tpu.memory_space<vmem>>, vector<32x1xf32>
    %32 = vector.broadcast %31 : vector<32x1xf32> to vector<32x16xf32>
    %33 = arith.addf %30, %32 : vector<32x16xf32>
    %cst_35 = arith.constant 0.000000e+00 : f32
    %34 = vector.broadcast %cst_35 : f32 to vector<32x16xf32>
    %35 = arith.maximumf %33, %34 : vector<32x16xf32>
    %c32_36 = arith.constant 32 : index
    %c0_37 = arith.constant 0 : index
    %36 = vector.load %arg31[%c32_36, %c0_37] : memref<96x16xf32, #tpu.memory_space<vmem>>, vector<32x16xf32>
    tpu.vector_store %arg31[%c32_36, %c0_37], %35 {strides = array<i32>} : memref<96x16xf32, #tpu.memory_space<vmem>>, vector<32x16xf32>,
    %37 = vector.extract_strided_slice %35 {offsets = [0, 0], sizes = [32, 15], strides = [1, 1]} : vector<32x16xf32> to vector<32x15xf32>
    %c0_38 = arith.constant 0 : index
    %c1_39 = arith.constant 1 : index
    %38 = vector.load %arg31[%c0_38, %c1_39] : memref<96x16xf32, #tpu.memory_space<vmem>>, vector<32x15xf32>
    tpu.vector_store %arg31[%c0_38, %c1_39], %37 {strides = array<i32>} : memref<96x16xf32, #tpu.memory_space<vmem>>, vector<32x15xf32>,
    %39 = vector.extract_strided_slice %35 {offsets = [0, 1], sizes = [32, 15], strides = [1, 1]} : vector<32x16xf32> to vector<32x15xf32>
    %c64_40 = arith.constant 64 : index
    %c0_41 = arith.constant 0 : index
    %40 = vector.load %arg31[%c64_40, %c0_41] : memref<96x16xf32, #tpu.memory_space<vmem>>, vector<32x15xf32>
    tpu.vector_store %arg31[%c64_40, %c0_41], %39 {strides = array<i32>} : memref<96x16xf32, #tpu.memory_space<vmem>>, vector<32x15xf32>,
    %c0_42 = arith.constant 0 : index
    %c0_43 = arith.constant 0 : index
    %41 = vector.load %arg6[%c0_42, %c0_43] : memref<32x96xf32, #tpu.memory_space<vmem>>, vector<32x96xf32>
    %c0_44 = arith.constant 0 : index
    %c0_45 = arith.constant 0 : index
    %42 = vector.load %arg31[%c0_44, %c0_45] : memref<96x16xf32, #tpu.memory_space<vmem>>, vector<96x16xf32>
    %cst_46 = arith.constant dense<0.000000e+00> : vector<32x16xf32>
    %43 = tpu.matmul %41, %42, %cst_46 {dimension_numbers = #tpu.dot_dimension_numbers<[1], [0], [0], [1], [0, 0, 1, 1], [], []>} : vector<32x96xf32>, vector<96x16xf32>, vector<32x16xf32> -> vector<32x16xf32>
    %c0_47 = arith.constant 0 : index
    %c0_48 = arith.constant 0 : index
    %44 = vector.load %arg7[%c0_47, %c0_48] : memref<32x1xf32, #tpu.memory_space<vmem>>, vector<32x1xf32>
    %45 = vector.broadcast %44 : vector<32x1xf32> to vector<32x16xf32>
    %46 = arith.addf %43, %45 : vector<32x16xf32>
    %cst_49 = arith.constant 0.000000e+00 : f32
    %47 = vector.broadcast %cst_49 : f32 to vector<32x16xf32>
    %48 = arith.maximumf %46, %47 : vector<32x16xf32>
    %c0_50 = arith.constant 0 : index
    %c0_51 = arith.constant 0 : index
    %49 = vector.load %arg8[%c0_50, %c0_51] : memref<1x32xf32, #tpu.memory_space<vmem>>, vector<1x32xf32>
    %cst_52 = arith.constant dense<0.000000e+00> : vector<1x16xf32>
    %50 = tpu.matmul %49, %48, %cst_52 {dimension_numbers = #tpu.dot_dimension_numbers<[1], [0], [0], [1], [0, 0, 1, 1], [], []>} : vector<1x32xf32>, vector<32x16xf32>, vector<1x16xf32> -> vector<1x16xf32>
    %c0_53 = arith.constant 0 : index
    %c0_54 = arith.constant 0 : index
    %51 = vector.load %arg9[%c0_53, %c0_54] : memref<1x1xf32, #tpu.memory_space<vmem>>, vector<1x1xf32>
    %52 = vector.broadcast %51 : vector<1x1xf32> to vector<1x16xf32>
    %53 = arith.addf %50, %52 : vector<1x16xf32>
    %cst_55 = arith.constant 0.000000e+00 : f32
    %54 = vector.broadcast %cst_55 : f32 to vector<1x16xf32>
    %55 = arith.subf %54, %53 : vector<1x16xf32>
    %56 = math.exp %55 : vector<1x16xf32>
    %cst_56 = arith.constant 1.000000e+00 : f32
    %57 = vector.broadcast %cst_56 : f32 to vector<1x16xf32>
    %58 = arith.addf %57, %56 : vector<1x16xf32>
    %cst_57 = arith.constant 1.000000e+00 : f32
    %59 = vector.broadcast %cst_57 : f32 to vector<1x16xf32>
    %60 = arith.divf %59, %58 : vector<1x16xf32>
    %c32_58 = arith.constant 32 : index
    %c0_59 = arith.constant 0 : index
    %61 = vector.load %arg31[%c32_58, %c0_59] : memref<96x16xf32, #tpu.memory_space<vmem>>, vector<32x16xf32>
    tpu.vector_store %arg31[%c32_58, %c0_59], %35 {strides = array<i32>} : memref<96x16xf32, #tpu.memory_space<vmem>>, vector<32x16xf32>,
    %62 = vector.extract_strided_slice %35 {offsets = [0, 0], sizes = [32, 15], strides = [1, 1]} : vector<32x16xf32> to vector<32x15xf32>
    %c0_60 = arith.constant 0 : index
    %c1_61 = arith.constant 1 : index
    %63 = vector.load %arg31[%c0_60, %c1_61] : memref<96x16xf32, #tpu.memory_space<vmem>>, vector<32x15xf32>
    tpu.vector_store %arg31[%c0_60, %c1_61], %62 {strides = array<i32>} : memref<96x16xf32, #tpu.memory_space<vmem>>, vector<32x15xf32>,
    %64 = vector.extract_strided_slice %35 {offsets = [0, 1], sizes = [32, 15], strides = [1, 1]} : vector<32x16xf32> to vector<32x15xf32>
    %c64_62 = arith.constant 64 : index
    %c0_63 = arith.constant 0 : index
    %65 = vector.load %arg31[%c64_62, %c0_63] : memref<96x16xf32, #tpu.memory_space<vmem>>, vector<32x15xf32>
    tpu.vector_store %arg31[%c64_62, %c0_63], %64 {strides = array<i32>} : memref<96x16xf32, #tpu.memory_space<vmem>>, vector<32x15xf32>,
    %c0_64 = arith.constant 0 : index
    %c0_65 = arith.constant 0 : index
    %66 = vector.load %arg10[%c0_64, %c0_65] : memref<32x96xf32, #tpu.memory_space<vmem>>, vector<32x96xf32>
    %c0_66 = arith.constant 0 : index
    %c0_67 = arith.constant 0 : index
    %67 = vector.load %arg31[%c0_66, %c0_67] : memref<96x16xf32, #tpu.memory_space<vmem>>, vector<96x16xf32>
    %cst_68 = arith.constant dense<0.000000e+00> : vector<32x16xf32>
    %68 = tpu.matmul %66, %67, %cst_68 {dimension_numbers = #tpu.dot_dimension_numbers<[1], [0], [0], [1], [0, 0, 1, 1], [], []>} : vector<32x96xf32>, vector<96x16xf32>, vector<32x16xf32> -> vector<32x16xf32>
    %c0_69 = arith.constant 0 : index
    %c0_70 = arith.constant 0 : index
    %69 = vector.load %arg11[%c0_69, %c0_70] : memref<32x1xf32, #tpu.memory_space<vmem>>, vector<32x1xf32>
    %70 = vector.broadcast %69 : vector<32x1xf32> to vector<32x16xf32>
    %71 = arith.addf %68, %70 : vector<32x16xf32>
    %cst_71 = arith.constant 0.000000e+00 : f32
    %72 = vector.broadcast %cst_71 : f32 to vector<32x16xf32>
    %73 = arith.maximumf %71, %72 : vector<32x16xf32>
    %c0_72 = arith.constant 0 : index
    %c0_73 = arith.constant 0 : index
    %74 = vector.load %arg12[%c0_72, %c0_73] : memref<1x32xf32, #tpu.memory_space<vmem>>, vector<1x32xf32>
    %cst_74 = arith.constant dense<0.000000e+00> : vector<1x16xf32>
    %75 = tpu.matmul %74, %73, %cst_74 {dimension_numbers = #tpu.dot_dimension_numbers<[1], [0], [0], [1], [0, 0, 1, 1], [], []>} : vector<1x32xf32>, vector<32x16xf32>, vector<1x16xf32> -> vector<1x16xf32>
    %c0_75 = arith.constant 0 : index
    %c0_76 = arith.constant 0 : index
    %76 = vector.load %arg13[%c0_75, %c0_76] : memref<1x1xf32, #tpu.memory_space<vmem>>, vector<1x1xf32>
    %77 = vector.broadcast %76 : vector<1x1xf32> to vector<1x16xf32>
    %78 = arith.addf %75, %77 : vector<1x16xf32>
    %cst_77 = arith.constant 0.000000e+00 : f32
    %79 = vector.broadcast %cst_77 : f32 to vector<1x16xf32>
    %80 = arith.subf %79, %78 : vector<1x16xf32>
    %81 = math.exp %80 : vector<1x16xf32>
    %cst_78 = arith.constant 1.000000e+00 : f32
    %82 = vector.broadcast %cst_78 : f32 to vector<1x16xf32>
    %83 = arith.addf %82, %81 : vector<1x16xf32>
    %cst_79 = arith.constant 1.000000e+00 : f32
    %84 = vector.broadcast %cst_79 : f32 to vector<1x16xf32>
    %85 = arith.divf %84, %83 : vector<1x16xf32>
    %c0_80 = arith.constant 0 : index
    %c0_81 = arith.constant 0 : index
    %c0_82 = arith.constant 0 : index
    %86 = vector.load %arg30[%c0_80, %c0_81, %c0_82] : memref<1x2x16xf32, #tpu.memory_space<vmem>>, vector<1x1x16xf32>
    %87 = vector.shape_cast %86 : vector<1x1x16xf32> to vector<1x16xf32>
    %88 = vector.shape_cast %60 : vector<1x16xf32> to vector<1x1x16xf32>
    tpu.vector_store %arg30[%c0_80, %c0_81, %c0_82], %88 {strides = array<i32>} : memref<1x2x16xf32, #tpu.memory_space<vmem>>, vector<1x1x16xf32>,
    %c0_83 = arith.constant 0 : index
    %c1_84 = arith.constant 1 : index
    %c0_85 = arith.constant 0 : index
    %89 = vector.load %arg30[%c0_83, %c1_84, %c0_85] : memref<1x2x16xf32, #tpu.memory_space<vmem>>, vector<1x1x16xf32>
    %90 = vector.shape_cast %89 : vector<1x1x16xf32> to vector<1x16xf32>
    %91 = vector.shape_cast %85 : vector<1x16xf32> to vector<1x1x16xf32>
    tpu.vector_store %arg30[%c0_83, %c1_84, %c0_85], %91 {strides = array<i32>} : memref<1x2x16xf32, #tpu.memory_space<vmem>>, vector<1x1x16xf32>,
    %c32_86 = arith.constant 32 : index
    %c0_87 = arith.constant 0 : index
    %92 = vector.load %arg31[%c32_86, %c0_87] : memref<96x16xf32, #tpu.memory_space<vmem>>, vector<32x16xf32>
    tpu.vector_store %arg31[%c32_86, %c0_87], %35 {strides = array<i32>} : memref<96x16xf32, #tpu.memory_space<vmem>>, vector<32x16xf32>,
    %93 = vector.extract_strided_slice %35 {offsets = [0, 0], sizes = [32, 15], strides = [1, 1]} : vector<32x16xf32> to vector<32x15xf32>
    %c0_88 = arith.constant 0 : index
    %c1_89 = arith.constant 1 : index
    %94 = vector.load %arg31[%c0_88, %c1_89] : memref<96x16xf32, #tpu.memory_space<vmem>>, vector<32x15xf32>
    tpu.vector_store %arg31[%c0_88, %c1_89], %93 {strides = array<i32>} : memref<96x16xf32, #tpu.memory_space<vmem>>, vector<32x15xf32>,
    %95 = vector.extract_strided_slice %35 {offsets = [0, 1], sizes = [32, 15], strides = [1, 1]} : vector<32x16xf32> to vector<32x15xf32>
    %c64_90 = arith.constant 64 : index
    %c0_91 = arith.constant 0 : index
    %96 = vector.load %arg31[%c64_90, %c0_91] : memref<96x16xf32, #tpu.memory_space<vmem>>, vector<32x15xf32>
    tpu.vector_store %arg31[%c64_90, %c0_91], %95 {strides = array<i32>} : memref<96x16xf32, #tpu.memory_space<vmem>>, vector<32x15xf32>,
    %c0_92 = arith.constant 0 : index
    %c0_93 = arith.constant 0 : index
    %97 = vector.load %arg14[%c0_92, %c0_93] : memref<32x96xf32, #tpu.memory_space<vmem>>, vector<32x96xf32>
    %c0_94 = arith.constant 0 : index
    %c0_95 = arith.constant 0 : index
    %98 = vector.load %arg31[%c0_94, %c0_95] : memref<96x16xf32, #tpu.memory_space<vmem>>, vector<96x16xf32>
    %cst_96 = arith.constant dense<0.000000e+00> : vector<32x16xf32>
    %99 = tpu.matmul %97, %98, %cst_96 {dimension_numbers = #tpu.dot_dimension_numbers<[1], [0], [0], [1], [0, 0, 1, 1], [], []>} : vector<32x96xf32>, vector<96x16xf32>, vector<32x16xf32> -> vector<32x16xf32>
    %c0_97 = arith.constant 0 : index
    %c0_98 = arith.constant 0 : index
    %100 = vector.load %arg15[%c0_97, %c0_98] : memref<32x1xf32, #tpu.memory_space<vmem>>, vector<32x1xf32>
    %101 = vector.broadcast %100 : vector<32x1xf32> to vector<32x16xf32>
    %102 = arith.addf %99, %101 : vector<32x16xf32>
    %cst_99 = arith.constant 0.000000e+00 : f32
    %103 = vector.broadcast %cst_99 : f32 to vector<32x16xf32>
    %104 = arith.maximumf %102, %103 : vector<32x16xf32>
    %c0_100 = arith.constant 0 : index
    %c0_101 = arith.constant 0 : index
    %105 = vector.load %arg16[%c0_100, %c0_101] : memref<128x32xf32, #tpu.memory_space<vmem>>, vector<128x32xf32>
    %cst_102 = arith.constant dense<0.000000e+00> : vector<128x16xf32>
    %106 = tpu.matmul %105, %104, %cst_102 {dimension_numbers = #tpu.dot_dimension_numbers<[1], [0], [0], [1], [0, 0, 1, 1], [], []>} : vector<128x32xf32>, vector<32x16xf32>, vector<128x16xf32> -> vector<128x16xf32>
    %cst_103 = arith.constant 0.000000e+00 : f32
    %107 = vector.broadcast %cst_103 : f32 to vector<16x256xf32>
    %108 = vector.extract_strided_slice %106 {offsets = [0, 0], sizes = [16, 16], strides = [1, 1]} : vector<128x16xf32> to vector<16x16xf32>
    %c0_104 = arith.constant 0 : index
    %c0_105 = arith.constant 0 : index
    %109 = vector.load %arg18[%c0_104, %c0_105] : memref<16x2048xf32, #tpu.memory_space<vmem>>, vector<16x256xf32>
    %cst_106 = arith.constant dense<0.000000e+00> : vector<16x256xf32>
    %110 = tpu.matmul %108, %109, %cst_106 {dimension_numbers = #tpu.dot_dimension_numbers<[1], [0], [0], [1], [0, 0, 1, 1], [], []>} : vector<16x16xf32>, vector<16x256xf32>, vector<16x256xf32> -> vector<16x256xf32>
    %111 = arith.addf %107, %110 : vector<16x256xf32>
    %112 = vector.extract_strided_slice %106 {offsets = [16, 0], sizes = [16, 16], strides = [1, 1]} : vector<128x16xf32> to vector<16x16xf32>
    %c0_107 = arith.constant 0 : index
    %c256 = arith.constant 256 : index
    %113 = vector.load %arg18[%c0_107, %c256] : memref<16x2048xf32, #tpu.memory_space<vmem>>, vector<16x256xf32>
    %cst_108 = arith.constant dense<0.000000e+00> : vector<16x256xf32>
    %114 = tpu.matmul %112, %113, %cst_108 {dimension_numbers = #tpu.dot_dimension_numbers<[1], [0], [0], [1], [0, 0, 1, 1], [], []>} : vector<16x16xf32>, vector<16x256xf32>, vector<16x256xf32> -> vector<16x256xf32>
    %115 = arith.addf %111, %114 : vector<16x256xf32>
    %116 = vector.extract_strided_slice %106 {offsets = [32, 0], sizes = [16, 16], strides = [1, 1]} : vector<128x16xf32> to vector<16x16xf32>
    %c0_109 = arith.constant 0 : index
    %c512 = arith.constant 512 : index
    %117 = vector.load %arg18[%c0_109, %c512] : memref<16x2048xf32, #tpu.memory_space<vmem>>, vector<16x256xf32>
    %cst_110 = arith.constant dense<0.000000e+00> : vector<16x256xf32>
    %118 = tpu.matmul %116, %117, %cst_110 {dimension_numbers = #tpu.dot_dimension_numbers<[1], [0], [0], [1], [0, 0, 1, 1], [], []>} : vector<16x16xf32>, vector<16x256xf32>, vector<16x256xf32> -> vector<16x256xf32>
    %119 = arith.addf %115, %118 : vector<16x256xf32>
    %120 = vector.extract_strided_slice %106 {offsets = [48, 0], sizes = [16, 16], strides = [1, 1]} : vector<128x16xf32> to vector<16x16xf32>
    %c0_111 = arith.constant 0 : index
    %c768 = arith.constant 768 : index
    %121 = vector.load %arg18[%c0_111, %c768] : memref<16x2048xf32, #tpu.memory_space<vmem>>, vector<16x256xf32>
    %cst_112 = arith.constant dense<0.000000e+00> : vector<16x256xf32>
    %122 = tpu.matmul %120, %121, %cst_112 {dimension_numbers = #tpu.dot_dimension_numbers<[1], [0], [0], [1], [0, 0, 1, 1], [], []>} : vector<16x16xf32>, vector<16x256xf32>, vector<16x256xf32> -> vector<16x256xf32>
    %123 = arith.addf %119, %122 : vector<16x256xf32>
    %124 = vector.extract_strided_slice %106 {offsets = [64, 0], sizes = [16, 16], strides = [1, 1]} : vector<128x16xf32> to vector<16x16xf32>
    %c0_113 = arith.constant 0 : index
    %c1024 = arith.constant 1024 : index
    %125 = vector.load %arg18[%c0_113, %c1024] : memref<16x2048xf32, #tpu.memory_space<vmem>>, vector<16x256xf32>
    %cst_114 = arith.constant dense<0.000000e+00> : vector<16x256xf32>
    %126 = tpu.matmul %124, %125, %cst_114 {dimension_numbers = #tpu.dot_dimension_numbers<[1], [0], [0], [1], [0, 0, 1, 1], [], []>} : vector<16x16xf32>, vector<16x256xf32>, vector<16x256xf32> -> vector<16x256xf32>
    %127 = arith.addf %123, %126 : vector<16x256xf32>
    %128 = vector.extract_strided_slice %106 {offsets = [80, 0], sizes = [16, 16], strides = [1, 1]} : vector<128x16xf32> to vector<16x16xf32>
    %c0_115 = arith.constant 0 : index
    %c1280 = arith.constant 1280 : index
    %129 = vector.load %arg18[%c0_115, %c1280] : memref<16x2048xf32, #tpu.memory_space<vmem>>, vector<16x256xf32>
    %cst_116 = arith.constant dense<0.000000e+00> : vector<16x256xf32>
    %130 = tpu.matmul %128, %129, %cst_116 {dimension_numbers = #tpu.dot_dimension_numbers<[1], [0], [0], [1], [0, 0, 1, 1], [], []>} : vector<16x16xf32>, vector<16x256xf32>, vector<16x256xf32> -> vector<16x256xf32>
    %131 = arith.addf %127, %130 : vector<16x256xf32>
    %132 = vector.extract_strided_slice %106 {offsets = [96, 0], sizes = [16, 16], strides = [1, 1]} : vector<128x16xf32> to vector<16x16xf32>
    %c0_117 = arith.constant 0 : index
    %c1536 = arith.constant 1536 : index
    %133 = vector.load %arg18[%c0_117, %c1536] : memref<16x2048xf32, #tpu.memory_space<vmem>>, vector<16x256xf32>
    %cst_118 = arith.constant dense<0.000000e+00> : vector<16x256xf32>
    %134 = tpu.matmul %132, %133, %cst_118 {dimension_numbers = #tpu.dot_dimension_numbers<[1], [0], [0], [1], [0, 0, 1, 1], [], []>} : vector<16x16xf32>, vector<16x256xf32>, vector<16x256xf32> -> vector<16x256xf32>
    %135 = arith.addf %131, %134 : vector<16x256xf32>
    %136 = vector.extract_strided_slice %106 {offsets = [112, 0], sizes = [16, 16], strides = [1, 1]} : vector<128x16xf32> to vector<16x16xf32>
    %c0_119 = arith.constant 0 : index
    %c1792 = arith.constant 1792 : index
    %137 = vector.load %arg18[%c0_119, %c1792] : memref<16x2048xf32, #tpu.memory_space<vmem>>, vector<16x256xf32>
    %cst_120 = arith.constant dense<0.000000e+00> : vector<16x256xf32>
    %138 = tpu.matmul %136, %137, %cst_120 {dimension_numbers = #tpu.dot_dimension_numbers<[1], [0], [0], [1], [0, 0, 1, 1], [], []>} : vector<16x16xf32>, vector<16x256xf32>, vector<16x256xf32> -> vector<16x256xf32>
    %139 = arith.addf %135, %138 : vector<16x256xf32>
    %c0_121 = arith.constant 0 : index
    %c0_122 = arith.constant 0 : index
    %140 = vector.load %arg17[%c0_121, %c0_122] : memref<16x1xf32, #tpu.memory_space<vmem>>, vector<16x1xf32>
    %141 = vector.broadcast %140 : vector<16x1xf32> to vector<16x256xf32>
    %142 = arith.addf %139, %141 : vector<16x256xf32>
    %cst_123 = arith.constant 0.000000e+00 : f32
    %143 = vector.broadcast %cst_123 : f32 to vector<16x256xf32>
    %144 = arith.maximumf %142, %143 : vector<16x256xf32>
    %c0_124 = arith.constant 0 : index
    %c0_125 = arith.constant 0 : index
    %145 = vector.load %arg27[%c0_124, %c0_125] : memref<1x256xf32, #tpu.memory_space<vmem>>, vector<1x256xf32>
    %c0_126 = arith.constant 0 : index
    %c0_127 = arith.constant 0 : index
    %146 = vector.load %arg28[%c0_126, %c0_127] : memref<1x256xf32, #tpu.memory_space<vmem>>, vector<1x256xf32>
    %c0_128 = arith.constant 0 : index
    %c0_129 = arith.constant 0 : index
    %147 = vector.load %arg19[%c0_128, %c0_129] : memref<32x16xf32, #tpu.memory_space<vmem>>, vector<32x16xf32>
    %cst_130 = arith.constant dense<0.000000e+00> : vector<32x256xf32>
    %148 = tpu.matmul %147, %144, %cst_130 {dimension_numbers = #tpu.dot_dimension_numbers<[1], [0], [0], [1], [0, 0, 1, 1], [], []>} : vector<32x16xf32>, vector<16x256xf32>, vector<32x256xf32> -> vector<32x256xf32>
    %c0_131 = arith.constant 0 : index
    %c0_132 = arith.constant 0 : index
    %149 = vector.load %arg20[%c0_131, %c0_132] : memref<32x1xf32, #tpu.memory_space<vmem>>, vector<32x1xf32>
    %150 = vector.broadcast %149 : vector<32x1xf32> to vector<32x256xf32>
    %151 = arith.addf %148, %150 : vector<32x256xf32>
    %cst_133 = arith.constant 0.000000e+00 : f32
    %152 = vector.broadcast %cst_133 : f32 to vector<32x256xf32>
    %153 = arith.maximumf %151, %152 : vector<32x256xf32>
    %c0_134 = arith.constant 0 : index
    %c32_135 = arith.constant 32 : index
    %154 = vector.load %arg32[%c0_134, %c32_135] : memref<32x320xf32, #tpu.memory_space<vmem>>, vector<32x256xf32>
    tpu.vector_store %arg32[%c0_134, %c32_135], %153 {strides = array<i32>} : memref<32x320xf32, #tpu.memory_space<vmem>>, vector<32x256xf32>,
    %c0_136 = arith.constant 0 : index
    %c15_137 = arith.constant 15 : index
    %155 = vector.load %arg32[%c0_136, %c15_137] : memref<32x320xf32, #tpu.memory_space<vmem>>, vector<32x256xf32>
    %156 = vector.broadcast %145 : vector<1x256xf32> to vector<32x256xf32>
    %157 = arith.mulf %155, %156 : vector<32x256xf32>
    %c0_138 = arith.constant 0 : index
    %c0_139 = arith.constant 0 : index
    %158 = vector.load %arg33[%c0_138, %c0_139] : memref<288x256xf32, #tpu.memory_space<vmem>>, vector<32x256xf32>
    tpu.vector_store %arg33[%c0_138, %c0_139], %157 {strides = array<i32>} : memref<288x256xf32, #tpu.memory_space<vmem>>, vector<32x256xf32>,
    %c0_140 = arith.constant 0 : index
    %c16 = arith.constant 16 : index
    %159 = vector.load %arg32[%c0_140, %c16] : memref<32x320xf32, #tpu.memory_space<vmem>>, vector<32x256xf32>
    %c32_141 = arith.constant 32 : index
    %c0_142 = arith.constant 0 : index
    %160 = vector.load %arg33[%c32_141, %c0_142] : memref<288x256xf32, #tpu.memory_space<vmem>>, vector<32x256xf32>
    tpu.vector_store %arg33[%c32_141, %c0_142], %159 {strides = array<i32>} : memref<288x256xf32, #tpu.memory_space<vmem>>, vector<32x256xf32>,
    %c0_143 = arith.constant 0 : index
    %c17 = arith.constant 17 : index
    %161 = vector.load %arg32[%c0_143, %c17] : memref<32x320xf32, #tpu.memory_space<vmem>>, vector<32x256xf32>
    %162 = vector.broadcast %146 : vector<1x256xf32> to vector<32x256xf32>
    %163 = arith.mulf %161, %162 : vector<32x256xf32>
    %c64_144 = arith.constant 64 : index
    %c0_145 = arith.constant 0 : index
    %164 = vector.load %arg33[%c64_144, %c0_145] : memref<288x256xf32, #tpu.memory_space<vmem>>, vector<32x256xf32>
    tpu.vector_store %arg33[%c64_144, %c0_145], %163 {strides = array<i32>} : memref<288x256xf32, #tpu.memory_space<vmem>>, vector<32x256xf32>,
    %c0_146 = arith.constant 0 : index
    %c31 = arith.constant 31 : index
    %165 = vector.load %arg32[%c0_146, %c31] : memref<32x320xf32, #tpu.memory_space<vmem>>, vector<32x256xf32>
    %166 = vector.broadcast %145 : vector<1x256xf32> to vector<32x256xf32>
    %167 = arith.mulf %165, %166 : vector<32x256xf32>
    %c96 = arith.constant 96 : index
    %c0_147 = arith.constant 0 : index
    %168 = vector.load %arg33[%c96, %c0_147] : memref<288x256xf32, #tpu.memory_space<vmem>>, vector<32x256xf32>
    tpu.vector_store %arg33[%c96, %c0_147], %167 {strides = array<i32>} : memref<288x256xf32, #tpu.memory_space<vmem>>, vector<32x256xf32>,
    %c0_148 = arith.constant 0 : index
    %c32_149 = arith.constant 32 : index
    %169 = vector.load %arg32[%c0_148, %c32_149] : memref<32x320xf32, #tpu.memory_space<vmem>>, vector<32x256xf32>
    %c128 = arith.constant 128 : index
    %c0_150 = arith.constant 0 : index
    %170 = vector.load %arg33[%c128, %c0_150] : memref<288x256xf32, #tpu.memory_space<vmem>>, vector<32x256xf32>
    tpu.vector_store %arg33[%c128, %c0_150], %169 {strides = array<i32>} : memref<288x256xf32, #tpu.memory_space<vmem>>, vector<32x256xf32>,
    %c0_151 = arith.constant 0 : index
    %c33 = arith.constant 33 : index
    %171 = vector.load %arg32[%c0_151, %c33] : memref<32x320xf32, #tpu.memory_space<vmem>>, vector<32x256xf32>
    %172 = vector.broadcast %146 : vector<1x256xf32> to vector<32x256xf32>
    %173 = arith.mulf %171, %172 : vector<32x256xf32>
    %c160 = arith.constant 160 : index
    %c0_152 = arith.constant 0 : index
    %174 = vector.load %arg33[%c160, %c0_152] : memref<288x256xf32, #tpu.memory_space<vmem>>, vector<32x256xf32>
    tpu.vector_store %arg33[%c160, %c0_152], %173 {strides = array<i32>} : memref<288x256xf32, #tpu.memory_space<vmem>>, vector<32x256xf32>,
    %c0_153 = arith.constant 0 : index
    %c47 = arith.constant 47 : index
    %175 = vector.load %arg32[%c0_153, %c47] : memref<32x320xf32, #tpu.memory_space<vmem>>, vector<32x256xf32>
    %176 = vector.broadcast %145 : vector<1x256xf32> to vector<32x256xf32>
    %177 = arith.mulf %175, %176 : vector<32x256xf32>
    %c192 = arith.constant 192 : index
    %c0_154 = arith.constant 0 : index
    %178 = vector.load %arg33[%c192, %c0_154] : memref<288x256xf32, #tpu.memory_space<vmem>>, vector<32x256xf32>
    tpu.vector_store %arg33[%c192, %c0_154], %177 {strides = array<i32>} : memref<288x256xf32, #tpu.memory_space<vmem>>, vector<32x256xf32>,
    %c0_155 = arith.constant 0 : index
    %c48 = arith.constant 48 : index
    %179 = vector.load %arg32[%c0_155, %c48] : memref<32x320xf32, #tpu.memory_space<vmem>>, vector<32x256xf32>
    %c224 = arith.constant 224 : index
    %c0_156 = arith.constant 0 : index
    %180 = vector.load %arg33[%c224, %c0_156] : memref<288x256xf32, #tpu.memory_space<vmem>>, vector<32x256xf32>
    tpu.vector_store %arg33[%c224, %c0_156], %179 {strides = array<i32>} : memref<288x256xf32, #tpu.memory_space<vmem>>, vector<32x256xf32>,
    %c0_157 = arith.constant 0 : index
    %c49 = arith.constant 49 : index
    %181 = vector.load %arg32[%c0_157, %c49] : memref<32x320xf32, #tpu.memory_space<vmem>>, vector<32x256xf32>
    %182 = vector.broadcast %146 : vector<1x256xf32> to vector<32x256xf32>
    %183 = arith.mulf %181, %182 : vector<32x256xf32>
    %c256_158 = arith.constant 256 : index
    %c0_159 = arith.constant 0 : index
    %184 = vector.load %arg33[%c256_158, %c0_159] : memref<288x256xf32, #tpu.memory_space<vmem>>, vector<32x256xf32>
    tpu.vector_store %arg33[%c256_158, %c0_159], %183 {strides = array<i32>} : memref<288x256xf32, #tpu.memory_space<vmem>>, vector<32x256xf32>,
    %c0_160 = arith.constant 0 : index
    %c0_161 = arith.constant 0 : index
    %185 = vector.load %arg21[%c0_160, %c0_161] : memref<32x288xf32, #tpu.memory_space<vmem>>, vector<32x288xf32>
    %c0_162 = arith.constant 0 : index
    %c0_163 = arith.constant 0 : index
    %186 = vector.load %arg33[%c0_162, %c0_163] : memref<288x256xf32, #tpu.memory_space<vmem>>, vector<288x256xf32>
    %cst_164 = arith.constant dense<0.000000e+00> : vector<32x256xf32>
    %187 = tpu.matmul %185, %186, %cst_164 {dimension_numbers = #tpu.dot_dimension_numbers<[1], [0], [0], [1], [0, 0, 1, 1], [], []>} : vector<32x288xf32>, vector<288x256xf32>, vector<32x256xf32> -> vector<32x256xf32>
    %c0_165 = arith.constant 0 : index
    %c0_166 = arith.constant 0 : index
    %188 = vector.load %arg22[%c0_165, %c0_166] : memref<32x1xf32, #tpu.memory_space<vmem>>, vector<32x1xf32>
    %189 = vector.broadcast %188 : vector<32x1xf32> to vector<32x256xf32>
    %190 = arith.addf %187, %189 : vector<32x256xf32>
    %cst_167 = arith.constant 0.000000e+00 : f32
    %191 = vector.broadcast %cst_167 : f32 to vector<32x256xf32>
    %192 = arith.maximumf %190, %191 : vector<32x256xf32>
    %c0_168 = arith.constant 0 : index
    %c32_169 = arith.constant 32 : index
    %193 = vector.load %arg32[%c0_168, %c32_169] : memref<32x320xf32, #tpu.memory_space<vmem>>, vector<32x256xf32>
    tpu.vector_store %arg32[%c0_168, %c32_169], %192 {strides = array<i32>} : memref<32x320xf32, #tpu.memory_space<vmem>>, vector<32x256xf32>,
    %c0_170 = arith.constant 0 : index
    %c15_171 = arith.constant 15 : index
    %194 = vector.load %arg32[%c0_170, %c15_171] : memref<32x320xf32, #tpu.memory_space<vmem>>, vector<32x256xf32>
    %195 = vector.broadcast %145 : vector<1x256xf32> to vector<32x256xf32>
    %196 = arith.mulf %194, %195 : vector<32x256xf32>
    %c0_172 = arith.constant 0 : index
    %c0_173 = arith.constant 0 : index
    %197 = vector.load %arg33[%c0_172, %c0_173] : memref<288x256xf32, #tpu.memory_space<vmem>>, vector<32x256xf32>
    tpu.vector_store %arg33[%c0_172, %c0_173], %196 {strides = array<i32>} : memref<288x256xf32, #tpu.memory_space<vmem>>, vector<32x256xf32>,
    %c0_174 = arith.constant 0 : index
    %c16_175 = arith.constant 16 : index
    %198 = vector.load %arg32[%c0_174, %c16_175] : memref<32x320xf32, #tpu.memory_space<vmem>>, vector<32x256xf32>
    %c32_176 = arith.constant 32 : index
    %c0_177 = arith.constant 0 : index
    %199 = vector.load %arg33[%c32_176, %c0_177] : memref<288x256xf32, #tpu.memory_space<vmem>>, vector<32x256xf32>
    tpu.vector_store %arg33[%c32_176, %c0_177], %198 {strides = array<i32>} : memref<288x256xf32, #tpu.memory_space<vmem>>, vector<32x256xf32>,
    %c0_178 = arith.constant 0 : index
    %c17_179 = arith.constant 17 : index
    %200 = vector.load %arg32[%c0_178, %c17_179] : memref<32x320xf32, #tpu.memory_space<vmem>>, vector<32x256xf32>
    %201 = vector.broadcast %146 : vector<1x256xf32> to vector<32x256xf32>
    %202 = arith.mulf %200, %201 : vector<32x256xf32>
    %c64_180 = arith.constant 64 : index
    %c0_181 = arith.constant 0 : index
    %203 = vector.load %arg33[%c64_180, %c0_181] : memref<288x256xf32, #tpu.memory_space<vmem>>, vector<32x256xf32>
    tpu.vector_store %arg33[%c64_180, %c0_181], %202 {strides = array<i32>} : memref<288x256xf32, #tpu.memory_space<vmem>>, vector<32x256xf32>,
    %c0_182 = arith.constant 0 : index
    %c31_183 = arith.constant 31 : index
    %204 = vector.load %arg32[%c0_182, %c31_183] : memref<32x320xf32, #tpu.memory_space<vmem>>, vector<32x256xf32>
    %205 = vector.broadcast %145 : vector<1x256xf32> to vector<32x256xf32>
    %206 = arith.mulf %204, %205 : vector<32x256xf32>
    %c96_184 = arith.constant 96 : index
    %c0_185 = arith.constant 0 : index
    %207 = vector.load %arg33[%c96_184, %c0_185] : memref<288x256xf32, #tpu.memory_space<vmem>>, vector<32x256xf32>
    tpu.vector_store %arg33[%c96_184, %c0_185], %206 {strides = array<i32>} : memref<288x256xf32, #tpu.memory_space<vmem>>, vector<32x256xf32>,
    %c0_186 = arith.constant 0 : index
    %c32_187 = arith.constant 32 : index
    %208 = vector.load %arg32[%c0_186, %c32_187] : memref<32x320xf32, #tpu.memory_space<vmem>>, vector<32x256xf32>
    %c128_188 = arith.constant 128 : index
    %c0_189 = arith.constant 0 : index
    %209 = vector.load %arg33[%c128_188, %c0_189] : memref<288x256xf32, #tpu.memory_space<vmem>>, vector<32x256xf32>
    tpu.vector_store %arg33[%c128_188, %c0_189], %208 {strides = array<i32>} : memref<288x256xf32, #tpu.memory_space<vmem>>, vector<32x256xf32>,
    %c0_190 = arith.constant 0 : index
    %c33_191 = arith.constant 33 : index
    %210 = vector.load %arg32[%c0_190, %c33_191] : memref<32x320xf32, #tpu.memory_space<vmem>>, vector<32x256xf32>
    %211 = vector.broadcast %146 : vector<1x256xf32> to vector<32x256xf32>
    %212 = arith.mulf %210, %211 : vector<32x256xf32>
    %c160_192 = arith.constant 160 : index
    %c0_193 = arith.constant 0 : index
    %213 = vector.load %arg33[%c160_192, %c0_193] : memref<288x256xf32, #tpu.memory_space<vmem>>, vector<32x256xf32>
    tpu.vector_store %arg33[%c160_192, %c0_193], %212 {strides = array<i32>} : memref<288x256xf32, #tpu.memory_space<vmem>>, vector<32x256xf32>,
    %c0_194 = arith.constant 0 : index
    %c47_195 = arith.constant 47 : index
    %214 = vector.load %arg32[%c0_194, %c47_195] : memref<32x320xf32, #tpu.memory_space<vmem>>, vector<32x256xf32>
    %215 = vector.broadcast %145 : vector<1x256xf32> to vector<32x256xf32>
    %216 = arith.mulf %214, %215 : vector<32x256xf32>
    %c192_196 = arith.constant 192 : index
    %c0_197 = arith.constant 0 : index
    %217 = vector.load %arg33[%c192_196, %c0_197] : memref<288x256xf32, #tpu.memory_space<vmem>>, vector<32x256xf32>
    tpu.vector_store %arg33[%c192_196, %c0_197], %216 {strides = array<i32>} : memref<288x256xf32, #tpu.memory_space<vmem>>, vector<32x256xf32>,
    %c0_198 = arith.constant 0 : index
    %c48_199 = arith.constant 48 : index
    %218 = vector.load %arg32[%c0_198, %c48_199] : memref<32x320xf32, #tpu.memory_space<vmem>>, vector<32x256xf32>
    %c224_200 = arith.constant 224 : index
    %c0_201 = arith.constant 0 : index
    %219 = vector.load %arg33[%c224_200, %c0_201] : memref<288x256xf32, #tpu.memory_space<vmem>>, vector<32x256xf32>
    tpu.vector_store %arg33[%c224_200, %c0_201], %218 {strides = array<i32>} : memref<288x256xf32, #tpu.memory_space<vmem>>, vector<32x256xf32>,
    %c0_202 = arith.constant 0 : index
    %c49_203 = arith.constant 49 : index
    %220 = vector.load %arg32[%c0_202, %c49_203] : memref<32x320xf32, #tpu.memory_space<vmem>>, vector<32x256xf32>
    %221 = vector.broadcast %146 : vector<1x256xf32> to vector<32x256xf32>
    %222 = arith.mulf %220, %221 : vector<32x256xf32>
    %c256_204 = arith.constant 256 : index
    %c0_205 = arith.constant 0 : index
    %223 = vector.load %arg33[%c256_204, %c0_205] : memref<288x256xf32, #tpu.memory_space<vmem>>, vector<32x256xf32>
    tpu.vector_store %arg33[%c256_204, %c0_205], %222 {strides = array<i32>} : memref<288x256xf32, #tpu.memory_space<vmem>>, vector<32x256xf32>,
    %c0_206 = arith.constant 0 : index
    %c0_207 = arith.constant 0 : index
    %224 = vector.load %arg23[%c0_206, %c0_207] : memref<32x288xf32, #tpu.memory_space<vmem>>, vector<32x288xf32>
    %c0_208 = arith.constant 0 : index
    %c0_209 = arith.constant 0 : index
    %225 = vector.load %arg33[%c0_208, %c0_209] : memref<288x256xf32, #tpu.memory_space<vmem>>, vector<288x256xf32>
    %cst_210 = arith.constant dense<0.000000e+00> : vector<32x256xf32>
    %226 = tpu.matmul %224, %225, %cst_210 {dimension_numbers = #tpu.dot_dimension_numbers<[1], [0], [0], [1], [0, 0, 1, 1], [], []>} : vector<32x288xf32>, vector<288x256xf32>, vector<32x256xf32> -> vector<32x256xf32>
    %c0_211 = arith.constant 0 : index
    %c0_212 = arith.constant 0 : index
    %227 = vector.load %arg24[%c0_211, %c0_212] : memref<32x1xf32, #tpu.memory_space<vmem>>, vector<32x1xf32>
    %228 = vector.broadcast %227 : vector<32x1xf32> to vector<32x256xf32>
    %229 = arith.addf %226, %228 : vector<32x256xf32>
    %cst_213 = arith.constant 0.000000e+00 : f32
    %230 = vector.broadcast %cst_213 : f32 to vector<32x256xf32>
    %231 = arith.maximumf %229, %230 : vector<32x256xf32>
    %c0_214 = arith.constant 0 : index
    %c0_215 = arith.constant 0 : index
    %232 = vector.load %arg25[%c0_214, %c0_215] : memref<2x32xf32, #tpu.memory_space<vmem>>, vector<2x32xf32>
    %cst_216 = arith.constant dense<0.000000e+00> : vector<2x256xf32>
    %233 = tpu.matmul %232, %231, %cst_216 {dimension_numbers = #tpu.dot_dimension_numbers<[1], [0], [0], [1], [0, 0, 1, 1], [], []>} : vector<2x32xf32>, vector<32x256xf32>, vector<2x256xf32> -> vector<2x256xf32>
    %c0_217 = arith.constant 0 : index
    %c0_218 = arith.constant 0 : index
    %234 = vector.load %arg26[%c0_217, %c0_218] : memref<2x1xf32, #tpu.memory_space<vmem>>, vector<2x1xf32>
    %235 = vector.broadcast %234 : vector<2x1xf32> to vector<2x256xf32>
    %236 = arith.addf %233, %235 : vector<2x256xf32>
    %cst_219 = arith.constant 0.000000e+00 : f32
    %237 = vector.broadcast %cst_219 : f32 to vector<2x256xf32>
    %238 = arith.subf %237, %236 : vector<2x256xf32>
    %239 = math.exp %238 : vector<2x256xf32>
    %cst_220 = arith.constant 1.000000e+00 : f32
    %240 = vector.broadcast %cst_220 : f32 to vector<2x256xf32>
    %241 = arith.addf %240, %239 : vector<2x256xf32>
    %cst_221 = arith.constant 1.000000e+00 : f32
    %242 = vector.broadcast %cst_221 : f32 to vector<2x256xf32>
    %243 = arith.divf %242, %241 : vector<2x256xf32>
    %c0_222 = arith.constant 0 : index
    %c0_223 = arith.constant 0 : index
    %c0_224 = arith.constant 0 : index
    %244 = vector.load %arg29[%c0_222, %c0_223, %c0_224] : memref<1x2x256xf32, #tpu.memory_space<vmem>>, vector<1x2x256xf32>
    %245 = vector.shape_cast %244 : vector<1x2x256xf32> to vector<2x256xf32>
    %246 = vector.shape_cast %243 : vector<2x256xf32> to vector<1x2x256xf32>
    tpu.vector_store %arg29[%c0_222, %c0_223, %c0_224], %246 {strides = array<i32>} : memref<1x2x256xf32, #tpu.memory_space<vmem>>, vector<1x2x256xf32>,
    return
  }
  func.func @transform_0(%arg0: i32) -> (i32, i32, i32) {
    %c0_i32 = arith.constant 0 : i32
    %c0_i32_0 = arith.constant 0 : i32
    %c0_i32_1 = arith.constant 0 : i32
    return %arg0, %c0_i32, %c0_i32_0 : i32, i32, i32
  }
  func.func @transform_1(%arg0: i32) -> (i32, i32) {
    %c0_i32 = arith.constant 0 : i32
    %c0_i32_0 = arith.constant 0 : i32
    %c0_i32_1 = arith.constant 0 : i32
    return %c0_i32, %c0_i32_0 : i32, i32
  }
  func.func @transform_2(%arg0: i32) -> (i32, i32) {
    %c0_i32 = arith.constant 0 : i32
    %c0_i32_0 = arith.constant 0 : i32
    %c0_i32_1 = arith.constant 0 : i32
    return %c0_i32, %c0_i32_0 : i32, i32
  }
  func.func @transform_3(%arg0: i32) -> (i32, i32) {
    %c0_i32 = arith.constant 0 : i32
    %c0_i32_0 = arith.constant 0 : i32
    %c0_i32_1 = arith.constant 0 : i32
    return %c0_i32, %c0_i32_0 : i32, i32
  }
  func.func @transform_4(%arg0: i32) -> (i32, i32) {
    %c0_i32 = arith.constant 0 : i32
    %c0_i32_0 = arith.constant 0 : i32
    %c0_i32_1 = arith.constant 0 : i32
    return %c0_i32, %c0_i32_0 : i32, i32
  }
  func.func @transform_5(%arg0: i32) -> (i32, i32) {
    %c0_i32 = arith.constant 0 : i32
    %c0_i32_0 = arith.constant 0 : i32
    %c0_i32_1 = arith.constant 0 : i32
    return %c0_i32, %c0_i32_0 : i32, i32
  }
  func.func @transform_6(%arg0: i32) -> (i32, i32) {
    %c0_i32 = arith.constant 0 : i32
    %c0_i32_0 = arith.constant 0 : i32
    %c0_i32_1 = arith.constant 0 : i32
    return %c0_i32, %c0_i32_0 : i32, i32
  }
  func.func @transform_7(%arg0: i32) -> (i32, i32) {
    %c0_i32 = arith.constant 0 : i32
    %c0_i32_0 = arith.constant 0 : i32
    %c0_i32_1 = arith.constant 0 : i32
    return %c0_i32, %c0_i32_0 : i32, i32
  }
  func.func @transform_8(%arg0: i32) -> (i32, i32) {
    %c0_i32 = arith.constant 0 : i32
    %c0_i32_0 = arith.constant 0 : i32
    %c0_i32_1 = arith.constant 0 : i32
    return %c0_i32, %c0_i32_0 : i32, i32
  }
  func.func @transform_9(%arg0: i32) -> (i32, i32) {
    %c0_i32 = arith.constant 0 : i32
    %c0_i32_0 = arith.constant 0 : i32
    %c0_i32_1 = arith.constant 0 : i32
    return %c0_i32, %c0_i32_0 : i32, i32
  }
  func.func @transform_10(%arg0: i32) -> (i32, i32) {
    %c0_i32 = arith.constant 0 : i32
    %c0_i32_0 = arith.constant 0 : i32
    %c0_i32_1 = arith.constant 0 : i32
    return %c0_i32, %c0_i32_0 : i32, i32
  }
  func.func @transform_11(%arg0: i32) -> (i32, i32) {
    %c0_i32 = arith.constant 0 : i32
    %c0_i32_0 = arith.constant 0 : i32
    %c0_i32_1 = arith.constant 0 : i32
    return %c0_i32, %c0_i32_0 : i32, i32
  }
  func.func @transform_12(%arg0: i32) -> (i32, i32) {
    %c0_i32 = arith.constant 0 : i32
    %c0_i32_0 = arith.constant 0 : i32
    %c0_i32_1 = arith.constant 0 : i32
    return %c0_i32, %c0_i32_0 : i32, i32
  }
  func.func @transform_13(%arg0: i32) -> (i32, i32) {
    %c0_i32 = arith.constant 0 : i32
    %c0_i32_0 = arith.constant 0 : i32
    %c0_i32_1 = arith.constant 0 : i32
    return %c0_i32, %c0_i32_0 : i32, i32
  }
  func.func @transform_14(%arg0: i32) -> (i32, i32) {
    %c0_i32 = arith.constant 0 : i32
    %c0_i32_0 = arith.constant 0 : i32
    %c0_i32_1 = arith.constant 0 : i32
    return %c0_i32, %c0_i32_0 : i32, i32
  }
  func.func @transform_15(%arg0: i32) -> (i32, i32) {
    %c0_i32 = arith.constant 0 : i32
    %c0_i32_0 = arith.constant 0 : i32
    %c0_i32_1 = arith.constant 0 : i32
    return %c0_i32, %c0_i32_0 : i32, i32
  }
  func.func @transform_16(%arg0: i32) -> (i32, i32) {
    %c0_i32 = arith.constant 0 : i32
    %c0_i32_0 = arith.constant 0 : i32
    %c0_i32_1 = arith.constant 0 : i32
    return %c0_i32, %c0_i32_0 : i32, i32
  }
  func.func @transform_17(%arg0: i32) -> (i32, i32) {
    %c0_i32 = arith.constant 0 : i32
    %c0_i32_0 = arith.constant 0 : i32
    %c0_i32_1 = arith.constant 0 : i32
    return %c0_i32, %c0_i32_0 : i32, i32
  }
  func.func @transform_18(%arg0: i32) -> (i32, i32) {
    %c0_i32 = arith.constant 0 : i32
    %c0_i32_0 = arith.constant 0 : i32
    %c0_i32_1 = arith.constant 0 : i32
    return %c0_i32, %c0_i32_0 : i32, i32
  }
  func.func @transform_19(%arg0: i32) -> (i32, i32) {
    %c0_i32 = arith.constant 0 : i32
    %c0_i32_0 = arith.constant 0 : i32
    %c0_i32_1 = arith.constant 0 : i32
    return %c0_i32, %c0_i32_0 : i32, i32
  }
  func.func @transform_20(%arg0: i32) -> (i32, i32) {
    %c0_i32 = arith.constant 0 : i32
    %c0_i32_0 = arith.constant 0 : i32
    %c0_i32_1 = arith.constant 0 : i32
    return %c0_i32, %c0_i32_0 : i32, i32
  }
  func.func @transform_21(%arg0: i32) -> (i32, i32) {
    %c0_i32 = arith.constant 0 : i32
    %c0_i32_0 = arith.constant 0 : i32
    %c0_i32_1 = arith.constant 0 : i32
    return %c0_i32, %c0_i32_0 : i32, i32
  }
  func.func @transform_22(%arg0: i32) -> (i32, i32) {
    %c0_i32 = arith.constant 0 : i32
    %c0_i32_0 = arith.constant 0 : i32
    %c0_i32_1 = arith.constant 0 : i32
    return %c0_i32, %c0_i32_0 : i32, i32
  }
  func.func @transform_23(%arg0: i32) -> (i32, i32) {
    %c0_i32 = arith.constant 0 : i32
    %c0_i32_0 = arith.constant 0 : i32
    %c0_i32_1 = arith.constant 0 : i32
    return %c0_i32, %c0_i32_0 : i32, i32
  }
  func.func @transform_24(%arg0: i32) -> (i32, i32) {
    %c0_i32 = arith.constant 0 : i32
    %c0_i32_0 = arith.constant 0 : i32
    %c0_i32_1 = arith.constant 0 : i32
    return %c0_i32, %c0_i32_0 : i32, i32
  }
  func.func @transform_25(%arg0: i32) -> (i32, i32) {
    %c0_i32 = arith.constant 0 : i32
    %c0_i32_0 = arith.constant 0 : i32
    %c0_i32_1 = arith.constant 0 : i32
    return %c0_i32, %c0_i32_0 : i32, i32
  }
  func.func @transform_26(%arg0: i32) -> (i32, i32) {
    %c0_i32 = arith.constant 0 : i32
    %c0_i32_0 = arith.constant 0 : i32
    %c0_i32_1 = arith.constant 0 : i32
    return %c0_i32, %c0_i32_0 : i32, i32
  }
  func.func @transform_27(%arg0: i32) -> (i32, i32) {
    %c0_i32 = arith.constant 0 : i32
    %c0_i32_0 = arith.constant 0 : i32
    %c0_i32_1 = arith.constant 0 : i32
    return %c0_i32, %c0_i32_0 : i32, i32
  }
  func.func @transform_28(%arg0: i32) -> (i32, i32, i32) {
    %c0_i32 = arith.constant 0 : i32
    %c0_i32_0 = arith.constant 0 : i32
    %c0_i32_1 = arith.constant 0 : i32
    return %arg0, %c0_i32, %c0_i32_0 : i32, i32, i32
  }
  func.func @transform_29(%arg0: i32) -> (i32, i32, i32) {
    %c0_i32 = arith.constant 0 : i32
    %c0_i32_0 = arith.constant 0 : i32
    %c0_i32_1 = arith.constant 0 : i32
    return %arg0, %c0_i32, %c0_i32_0 : i32, i32, i32
  }
}

</mosaic_0001>

<bundles_post_ra>
// kernel: bmn_forward_pallas.1
= control target key start
LH: loop header
LB: loop body
LE: loop exit
PB: predicated region body
PF: predicated region fallthrough
CT: control target
= control target key end

     0   :  { %s5585_s6 = smov 1   ;;  %s5586_s10 = smov 2   ;;  %s7594_s0 = inlined_call_operand.smem [shape: u32[30], index: -1, kind: input, shape index: {}] }
   0x1   :  { %s5645_s5 = sld [smem:[%s7594_s0]]   ;;  %s5587_s14 = smov 3  }
   0x2   :  { %s5650_s9 = sld [smem:[%s7594_s0 + %s5585_s6]]   ;;  %s5588_s18 = smov 4  }
   0x3   :  { %s5655_s13 = sld [smem:[%s7594_s0 + %s5586_s10]]   ;;  %s5589_s22 = smov 5  }
   0x4   :  { %s5660_s17 = sld [smem:[%s7594_s0 + %s5587_s14]]   ;;  %s5590_s26 = smov 6  }
   0x5   :  { %s5665_s21 = sld [smem:[%s7594_s0 + %s5588_s18]]   ;;  %s5591_s30 = smov 7  }
   0x6   :  { %s5670_s25 = sld [smem:[%s7594_s0 + %s5589_s22]]   ;;  %s5592_s4 = smov 8  }
   0x7   :  { %s5675_s29 = sld [smem:[%s7594_s0 + %s5590_s26]]   ;;  %s5593_s10 = smov 9  }
   0x8   :  { %s5680_s3 = sld [smem:[%s7594_s0 + %s5591_s30]]   ;;  %s5594_s15 = smov 10  }
   0x9   :  { %s4780_s8 = sld [smem:[%s7594_s0 + %s5592_s4]]   ;;  %s5595_s20 = smov 11  }
   0xa   :  { %s5688_s14 = sld [smem:[%s7594_s0 + %s5593_s10]]   ;;  %s5596_s26 = smov 13  }
   0xb   :  { %s5693_s19 = sld [smem:[%s7594_s0 + %s5594_s15]]   ;;  %s5597_s1 = smov 14  }
   0xc   :  { %s5698_s24 = sld [smem:[%s7594_s0 + %s5595_s20]]   ;;  %s5598_s7 = smov 15  }
   0xd   :  { %s5703_s30 = sld [smem:[%s7594_s0 + %s5596_s26]]   ;;  %s5599_s15 = smov 16  }
   0xe   :  { %s5708_s6 = sld [smem:[%s7594_s0 + %s5597_s1]]   ;;  %s5600_s22 = smov 17  }
   0xf   :  { %s5713_s12 = sld [smem:[%s7594_s0 + %s5598_s7]]   ;;  %v65_v0 = vstv %s4780_s8  ;;  %s5601_s28 = smov 18  }
  0x10   :  { %7651 = sst [smem:[#allocation10_spill]] %s5688_s14  ;;  %66 = vst [vmem:[#allocation5] sm:$0x1] %v65_v0  ;;  %s5602_s8 = smov 19  }
  0x11   :  { %s5718_s20 = sld [smem:[%s7594_s0 + %s5599_s15]]   ;;  %s5603_s15 = smov 20  }
  0x12   :  { %7652 = sst [smem:[#allocation11_spill]] %s5698_s24 }
  0x13   :  { %s5723_s27 = sld [smem:[%s7594_s0 + %s5600_s22]]   ;;  %s5604_s22 = smov 21  }
  0x14   :  { %s5728_s4 = sld [smem:[%s7594_s0 + %s5601_s28]]   ;;  %s5605_s28 = smov 22  }
  0x15   :  { %7653 = sst [smem:[#allocation12_spill]] %s5713_s12 }
  0x16   :  { %s5733_s11 = sld [smem:[%s7594_s0 + %s5602_s8]]   ;;  %s5606_s8 = smov 23  }
  0x17   :  { %s5738_s24 = sld [smem:[%s7594_s0 + %s5603_s15]]   ;;  %s5607_s15 = smov 24  }
  0x18   :  { %s5743_s14 = sld [smem:[%s7594_s0 + %s5604_s22]]   ;;  %s5608_s22 = smov 25  }
  0x19   :  { %s5753_s12 = sld [smem:[%s7594_s0 + %s5606_s8]]   ;;  %s5610_s8 = smov 27  }
  0x1a   :  { %7654 = sst [smem:[#allocation13_spill]] %s5728_s4 }
  0x1b   :  { %s5748_s4 = sld [smem:[%s7594_s0 + %s5605_s28]]   ;;  %s5609_s28 = smov 26  }
  0x1d   :  { %7655 = sst [smem:[#allocation14_spill]] %s5738_s24 }
  0x1e   :  { %7656 = sst [smem:[#allocation15_spill]] %s5743_s14 }
  0x1f   :  { %7658 = sst [smem:[#allocation17_spill]] %s5753_s12 }
  0x20   :  { %s5758_s24 = sld [smem:[%s7594_s0 + %s5607_s15]]   ;;  %s5611_s15 = smov 28  }
  0x21   :  { %7657 = sst [smem:[#allocation16_spill]] %s5748_s4 }
  0x22   :  { %s5763_s14 = sld [smem:[%s7594_s0 + %s5608_s22]]   ;;  %s5612_s22 = smov 29  }
  0x23   :  { %s5768_s4 = sld [smem:[%s7594_s0 + %s5609_s28]]   ;;  %s5613_s28 = smov 12  }
  0x24   :  { %s5773_s12 = sld [smem:[%s7594_s0 + %s5610_s8]]  }
  0x26   :  { %7659 = sst [smem:[#allocation18_spill]] %s5758_s24 }
  0x27   :  { %s5778_s24 = sld [smem:[%s7594_s0 + %s5611_s15]]  }
  0x28   :  { %7660 = sst [smem:[#allocation19_spill]] %s5763_s14 }
  0x29   :  { %7661 = sst [smem:[#allocation20_spill]] %s5768_s4 }
  0x2a   :  { %s5783_s14 = sld [smem:[%s7594_s0 + %s5612_s22]]  }
  0x2b   :  { %s4784_s4 = sld [smem:[%s7594_s0 + %s5613_s28]]  }
  0x31   :  { %v67_v1 = vstv %s4784_s4 }
  0x32   :  { %68 = vst [vmem:[#allocation6] sm:$0x1] %v67_v1 }
  0x33   :  { %69 = vsyncpa [#allocation8], 0  ;;  %s5788_s8 = smov 0  }
  0x34 LB: > { %s784_s7 = sshll.u32 %s5723_s27, 4  ;;  %s5795_s10 = sadd.s32 4294967295, %s5583_s8   ;;  %s5583_s8 = sphi %s5788_s8, %s75_s8   ;;  %s785_s7 = int_to_ptr.hbm [resolvable:$true] %s784_s7 }
  0x35   : > { %p4804_p0 = scmp.ge.s32.totalorder %s5583_s8, 1  ;;  %p725_p1 = scmp.lt.s32.totalorder %s5583_s8, 3 }
  0x36   : > { %p4922_p2 = scmp.eq.s32.totalorder %s5795_s10, 0  ;;  %s5614_s4 = smov [#allocation7]  }
  0x37   : > { %p5800_p3 = pnand %p4804_p0, %p725_p1  ;;  %s786_s15 = sshll.u32 %s5614_s4, 4  ;;  %s787_s15 = int_to_ptr.vmem [resolvable:$true] %s786_s15 }
  0x38   : > { %s5543_s18 = sshra.s32 %s785_s7, 4  ;;  %s5550_s23 = scalar_lea.hbm %s5723_s27, 256  ;;  %s5544_s18 = int_to_ptr.hbm [resolvable:$true] %s5543_s18 }
  0x39   : > { %p4918_p4 = pneg %p5800_p3  ;;  %s5545_s22 = scalar_lea.hbm %s5544_s18, 256 }
  0x3a   : > { %p5546_p6 = scmp.ne.s32.totalorder %s5544_s18, %s5545_s22  ;;  %p5551_p10 = scmp.lt.s32.totalorder %s5544_s18, %s5723_s27 }
  0x3b   : > { %p5808_p5 = pnand %p4922_p2, %p4918_p4  ;;  %p5552_p11 = scmp.lt.s32.totalorder %s5550_s23, %s5545_s22 }
  0x3d   : > { %p5547_p7 = pneg %p5808_p5  ;;  %p5553_p12 = por %p5552_p11, %p5551_p10 }
  0x3f   : > { %p5548_p8 = pnand %p5547_p7, %p5546_p6 }
  0x41   : > { %p5549_p9 = pneg %p5548_p8 }
  0x43   : > { %p5554_p13 = pnand %p5553_p12, %p5549_p9 }
  0x45   : > { %5557 = shalt.err (!%p5554_p13)
}
  0x46   : > { %s5615_s26 = smov 2048   ;;  %s5616_s28 = smov 128  }
  0x47   : > { %4921 = dma.hbm_to_vmem [thread:$0]  (!%p5808_p5), %s785_s7, 4096, %s787_s15, [#allocation8], %s5615_s26, %s5615_s26, %s5616_s28  }
  0x48   : > { %840 = sbr.rel (%p5800_p3) target bundleno = 2793 (0xae9), region = 132 }
  0x4d   : > { %5578 = dma.done.wait (%p4922_p2), [#allocation8], 4096  }
  0x4e   : > { %5580 = vsyncadd (%p4922_p2), [#allocation8], 4294963200  ;;  %p921_p0 = scmp.lt.s32.totalorder %s5795_s10, 1  ;;  %vm940_vm0 = vcmask 130168   ;;  %v5617_v2 = vmov 0.0   ;;  %vm959_vm1 = vcmask 130048  }
  0x4f   : > { %944 = vst.msk [vmem:[#allocation2 + $0x58] sm:$0xff] %vm940_vm0, %v5617_v2  ;;  %s5618_s7 = smov 127   ;;  %s5619_s0 = smov 1   ;;  %vm935_vm2 = vcmask 7168   ;;  %vm980_vm3 = vcmask 130056   ;;  %vm997_vm4 = vcmask 121856  }
  0x50   : > { %s7752_s10 = smov (!%p921_p0, %s5795_s10), 1  ;;  %941 = vst.msk [vmem:[#allocation2 + $0x40] sm:$0xff] %vm940_vm0, %v5617_v2  ;;  %v1019_v21 = vld [vmem:[%s5655_s13 + $0x8] sm:$0xff]  ;;  %v5620_v22 = vmov 0   ;;  %v1021_v27 = vld [vmem:[%s5655_s13 + $0x18] sm:$0xff]  ;;  %v1020_v28 = vld [vmem:[%s5655_s13 + $0x10] sm:$0xff] }
  0x51   : > { %s4912_s1 = sshll.u32 %s7752_s10, 5  ;;  %942 = vst.msk [vmem:[#allocation2 + $0x48] sm:$0xff] %vm940_vm0, %v5617_v2  ;;  %4986 = vset.pattern.permute.xlu1 %v5620_v22  ;;  %4985 = vset.pattern.permute.xlu0 %v5620_v22  ;;  %v1002_v31 = vld [vmem:[%s5650_s9] sm:$0xff]  ;;  %vm1042_vm5 = vcmask 785408   ;;  %v1003_v33 = vld [vmem:[%s5650_s9 + $0x8] sm:$0xff]  ;;  %v1004_v34 = vld [vmem:[%s5650_s9 + $0x10] sm:$0xff] }
  0x52   : > { %s925_s2 = scalar_lea.vmem %s5645_s5, %s4912_s1  ;;  %943 = vst.msk [vmem:[#allocation2 + $0x50] sm:$0xff] %vm940_vm0, %v5617_v2  ;;  %4984 = vset.pattern.permute.xlu2 %v5620_v22  ;;  %v1018_v32 = vld [vmem:[%s5655_s13] sm:$0xff]  ;;  %v1005_v35 = vld [vmem:[%s5650_s9 + $0x18] sm:$0xff]  ;;  %v1145_v54 = vld [vmem:[%s5665_s21 + $0x8] sm:$0xff]  ;;  %vm945_vm6 = vcmask 261120   ;;  %s7664_s4 = sld [smem:[#allocation12_spill]] }
  0x53   : > { %v958_v3 = vld [vmem:[%s925_s2 + $0x18] sm:$0xff]  ;;  %v956_v4 = vld [vmem:[%s925_s2 + $0x8] sm:$0xff]  ;;  %v957_v5 = vld [vmem:[%s925_s2 + $0x10] sm:$0xff]  ;;  %939 = vst.msk [vmem:[#allocation2 + $0x18] sm:$0xff] %vm935_vm2, %v5617_v2  ;;  %s7665_s15 = sld [smem:[#allocation10_spill]]  ;;  %s5621_s23 = smov 31  }
  0x54   : > { %991 = vrot.lane.b32.xlu0 %v958_v3, %s5618_s7  ;;  %963 = vst.msk [vmem:[#allocation2 + $0x38] sm:$0xff] %vm959_vm1, %v958_v3  ;;  %987 = vrot.lane.b32.xlu1 %v956_v4, %s5618_s7  ;;  %v955_v6 = vld [vmem:[%s925_s2] sm:$0xff]  ;;  %v1147_v52 = vld [vmem:[%s5665_s21 + $0x18] sm:$0xff]  ;;  %s7667_s16 = sld [smem:[#allocation11_spill]]  ;;  %s5622_s26 = smov 17   ;;  %vm950_vm7 = vcmask 523520  }
  0x55   : > { %961 = vst.msk [vmem:[#allocation2 + $0x28] sm:$0xff] %vm959_vm1, %v956_v4  ;;  %974 = vrot.lane.b32.xlu2 %v958_v3, %s5619_s0  ;;  %v1144_v53 = vld [vmem:[%s5665_s21] sm:$0xff]  ;;  %v1146_v55 = vld [vmem:[%s5665_s21 + $0x10] sm:$0xff]  ;;  %s7669_s18 = sld [smem:[#allocation13_spill]]  ;;  %s5623_s28 = smov 47   ;;  %vm2404_vm8 = vcmask 1047808  }
  0x56   : > { %962 = vst.msk [vmem:[#allocation2 + $0x30] sm:$0xff] %vm959_vm1, %v957_v5  ;;  %s7670_s22 = sld [smem:[#allocation20_spill]]  ;;  %s5624_s1 = smov 15   ;;  %vm2699_vm9 = vcmask 252928   ;;  %vm2605_vm10 = vcmask 138240   ;;  %vm2959_vm11 = vcmask 384000  }
  0x57   : > { %960 = vst.msk [vmem:[#allocation2 + $0x20] sm:$0xff] %vm959_vm1, %v955_v6  ;;  %s5625_s2 = smov 33   ;;  %vm2865_vm12 = vcmask 269312   ;;  %vm3126_vm13 = vcmask 400384   ;;  %vm3085_vm14 = vcmask 654336   ;;  %vm2752_vm15 = vcmask 793600  }
  0x58   : > { %936 = vst.msk [vmem:[#allocation2] sm:$0xff] %vm935_vm2, %v5617_v2  ;;  %vm2658_vm0 = vcmask 908288  }
  0x59   : > { %937 = vst.msk [vmem:[#allocation2 + $0x8] sm:$0xff] %vm935_vm2, %v5617_v2 }
  0x5a   : > { %938 = vst.msk [vmem:[#allocation2 + $0x10] sm:$0xff] %vm935_vm2, %v5617_v2  ;;  %vm3012_vm2 = vcmask 662528  }
  0x5b   : > { %v1013_v19 = vld [vmem:[#allocation2 + $0x38] sm:$0xff]  ;;  %946 = vst.msk [vmem:[#allocation3] sm:$0xff] %vm945_vm6, %v5617_v2 }
  0x5c   : > { %989 = vrot.lane.b32.xlu0 %v957_v5, %s5618_s7  ;;  %985 = vrot.lane.b32.xlu1 %v955_v6, %s5618_s7  ;;  %v1011_v23 = vld [vmem:[#allocation2 + $0x28] sm:$0xff]  ;;  %947 = vst.msk [vmem:[#allocation3 + $0x18] sm:$0xff] %vm945_vm6, %v5617_v2 }
  0x5d   : > { %972 = vrot.lane.b32.xlu2 %v957_v5, %s5619_s0  ;;  %v1012_v20 = vld [vmem:[#allocation2 + $0x30] sm:$0xff]  ;;  %948 = vst.msk [vmem:[#allocation3 + $0x30] sm:$0xff] %vm945_vm6, %v5617_v2 }
  0x5e   : > { %v1010_v24 = vld [vmem:[#allocation2 + $0x20] sm:$0xff]  ;;  %949 = vst.msk [vmem:[#allocation3 + $0x48] sm:$0xff] %vm945_vm6, %v5617_v2 }
  0x5f   : > { %952 = vst.msk [vmem:[#allocation3 + $0x28] sm:$0xff] %vm950_vm7, %v5617_v2 }
  0x60   : > { %951 = vst.msk [vmem:[#allocation3 + $0x10] sm:$0xff] %vm950_vm7, %v5617_v2 }
  0x61   : > { %953 = vst.msk [vmem:[#allocation3 + $0x40] sm:$0xff] %vm950_vm7, %v5617_v2 }
  0x62   : > { %954 = vst.msk [vmem:[#allocation3 + $0x58] sm:$0xff] %vm950_vm7, %v5617_v2  ;;  %vm3179_vm7 = vcmask 646144  }
  0x64   : > { %970 = vrot.lane.b32.xlu0 %v956_v4, %s5619_s0  ;;  %968 = vrot.lane.b32.xlu1 %v955_v6, %s5619_s0 }
  0x65   : > { %1039 = vperm.xlu2 %4984, %v1021_v27  }
  0x6c   : > { %1029 = vperm.xlu1 %4986, %v1019_v21   ;;  %1034 = vperm.xlu0 %4985, %v1020_v28  }
  0x6d   : > { %1024 = vperm.xlu2 %4984, %v1018_v32  }
  0xaf   : > { %v975_v7 = vpop.permute.xlu2 %974 }
  0xb0   : > { %984 = vst.msk [vmem:[#allocation2 + $0x18] sm:$0xff] %vm980_vm3, %v975_v7 }
  0xb7   : > { %v973_v8 = vpop.permute.xlu2 %972  ;;  %v1009_v25 = vld [vmem:[#allocation2 + $0x18] sm:$0xff] }
  0xb8   : > { %983 = vst.msk [vmem:[#allocation2 + $0x10] sm:$0xff] %vm980_vm3, %v973_v8 }
  0xbf   : > { %v1008_v26 = vld [vmem:[#allocation2 + $0x10] sm:$0xff]  ;;  %v1040_v36 = vpop.permute.xlu2 %1039 }
  0xc6   : > { %v992_v9 = vpop.permute.xlu0 %991  ;;  %v988_v10 = vpop.permute.xlu1 %987 }
  0xc7   : > { %1001 = vst.msk [vmem:[#allocation2 + $0x58] sm:$0xff] %vm997_vm4, %v992_v9  ;;  %v1025_v37 = vpop.permute.xlu2 %1024 }
  0xc8   : > { %999 = vst.msk [vmem:[#allocation2 + $0x48] sm:$0xff] %vm997_vm4, %v988_v10 }
  0xce   : > { %v990_v11 = vpop.permute.xlu0 %989  ;;  %v1017_v12 = vld [vmem:[#allocation2 + $0x58] sm:$0xff]  ;;  %v986_v13 = vpop.permute.xlu1 %985 }
  0xcf   : > { %1000 = vst.msk [vmem:[#allocation2 + $0x50] sm:$0xff] %vm997_vm4, %v990_v11  ;;  %1059 = vmatpush.msra.mxu0 %v1017_v12  ;;  %v1015_v17 = vld [vmem:[#allocation2 + $0x48] sm:$0xff]  ;;  %v1128_v12 = vld [vmem:[%s5660_s17] sm:$0xff] }
  0xd0   : > { %998 = vst.msk [vmem:[#allocation2 + $0x40] sm:$0xff] %vm997_vm4, %v986_v13 }
  0xd6   : > { %v1016_v14 = vld [vmem:[#allocation2 + $0x50] sm:$0xff]  ;;  %v971_v15 = vpop.permute.xlu0 %970  ;;  %v969_v16 = vpop.permute.xlu1 %968 }
  0xd7   : > { %1060 = vmatpush.msra.mxu0 %v1016_v14  ;;  %982 = vst.msk [vmem:[#allocation2 + $0x8] sm:$0xff] %vm980_vm3, %v971_v15  ;;  %v1014_v18 = vld [vmem:[#allocation2 + $0x40] sm:$0xff]  ;;  %v1129_v14 = vld [vmem:[%s5660_s17 + $0x8] sm:$0xff]  ;;  %v1130_v15 = vld [vmem:[%s5660_s17 + $0x10] sm:$0xff] }
  0xd8   : > { %981 = vst.msk [vmem:[#allocation2] sm:$0xff] %vm980_vm3, %v969_v16  ;;  %v1131_v16 = vld [vmem:[%s5660_s17 + $0x18] sm:$0xff] }
  0xd9   : > { %1061 = vmatpush.msra.mxu0 %v1015_v17 }
  0xdb   : > { %1062 = vmatpush.msra.mxu0 %v1014_v18 }
  0xdd   : > { %1063 = vmatpush.msra.mxu0 %v1013_v19 }
  0xde   : > { %v1007_v29 = vld [vmem:[#allocation2 + $0x8] sm:$0xff]  ;;  %v1030_v41 = vpop.permute.xlu1 %1029  ;;  %v1035_v45 = vpop.permute.xlu0 %1034 }
  0xdf   : > { %1064 = vmatpush.msra.mxu0 %v1012_v20  ;;  %v1006_v30 = vld [vmem:[#allocation2] sm:$0xff] }
  0xe1   : > { %1065 = vmatpush.msra.mxu0 %v1011_v23 }
  0xe3   : > { %1066 = vmatpush.msra.mxu0 %v1010_v24 }
  0xe5   : > { %1067 = vmatpush.msra.mxu0 %v1009_v25 }
  0xe7   : > { %1068 = vmatpush.msra.mxu0 %v1008_v26 }
  0xe9   : > { %1069 = vmatpush.msra.mxu0 %v1007_v29 }
  0xeb   : > { %1070 = vmatpush.msra.mxu0 %v1006_v30 }
  0xec   : > { %4814 = vmatmul.msk.f32.vlgmr.msra.gmra.mxu0 %vm1042_vm5, %v1002_v31 }
  0xf4   : > { %4815 = vmatmul.msk.f32.gmra.mxu0 %vm1042_vm5, %v1003_v33 }
  0xfc   : > { %4816 = vmatmul.msk.f32.gmra.mxu0 %vm1042_vm5, %v1004_v34 }
 0x104   : > { %4817 = vmatmul.msk.f32.gmra.mxu0 %vm1042_vm5, %v1005_v35 }
 0x169   : > { %v1072_v38 = vpop.f32.mrf.mxu0 }
 0x16a   : > { %v1073_v39 = vadd.f32 %v1072_v38, %v1025_v37 }
 0x16c   : > { %v1084_v40 = vmax.f32 %v1073_v39, 0.0  ;;  %v1269_v39 = vld [vmem:[%s5675_s29] sm:$0xff] }
 0x16e   : > { %1088 = vst.msk [vmem:[#allocation2 + $0x20] sm:$0xff] %vm959_vm1, %v1084_v40 }
 0x171   : > { %v1075_v42 = vpop.f32.mrf.mxu0 }
 0x172   : > { %v1076_v43 = vadd.f32 %v1075_v42, %v1030_v41  ;;  %v1270_v42 = vld [vmem:[%s5675_s29 + $0x8] sm:$0xff] }
 0x174   : > { %v1085_v44 = vmax.f32 %v1076_v43, 0.0  ;;  %v1567_v43 = vld [vmem:[%s5708_s6 + $0x8] sm:$0xff] }
 0x175   : > { %v1136_v8 = vld [vmem:[#allocation2 + $0x20] sm:$0xff] }
 0x176   : > { %1089 = vst.msk [vmem:[#allocation2 + $0x28] sm:$0xff] %vm959_vm1, %v1085_v44  ;;  %1114 = vrot.lane.b32.xlu0 %v1085_v44, %s5618_s7 }
 0x179   : > { %v1078_v46 = vpop.f32.mrf.mxu0 }
 0x17a   : > { %v1079_v47 = vadd.f32 %v1078_v46, %v1035_v45  ;;  %v1568_v45 = vld [vmem:[%s5708_s6 + $0x10] sm:$0xff] }
 0x17b   : > { %v1271_v46 = vld [vmem:[%s5675_s29 + $0x10] sm:$0xff] }
 0x17c   : > { %v1086_v48 = vmax.f32 %v1079_v47, 0.0  ;;  %v1418_v47 = vld [vmem:[%s5693_s19 + $0x10] sm:$0xff] }
 0x17d   : > { %v1137_v7 = vld [vmem:[#allocation2 + $0x28] sm:$0xff] }
 0x17e   : > { %1090 = vst.msk [vmem:[#allocation2 + $0x30] sm:$0xff] %vm959_vm1, %v1086_v48  ;;  %1116 = vrot.lane.b32.xlu2 %v1086_v48, %s5618_s7  ;;  %1100 = vrot.lane.b32.xlu0 %v1086_v48, %s5619_s0  ;;  %v1419_v48 = vld [vmem:[%s5693_s19 + $0x18] sm:$0xff] }
 0x181   : > { %v1081_v49 = vpop.f32.mrf.mxu0 }
 0x182   : > { %v1082_v50 = vadd.f32 %v1081_v49, %v1040_v36  ;;  %v1272_v36 = vld [vmem:[%s5675_s29 + $0x18] sm:$0xff] }
 0x183   : > { %v1569_v49 = vld [vmem:[%s5708_s6 + $0x18] sm:$0xff] }
 0x184   : > { %v1087_v51 = vmax.f32 %v1082_v50, 0.0  ;;  %v2237_v50 = vld [vmem:[%s5718_s20 + $0x8] sm:$0xff] }
 0x185   : > { %v1138_v6 = vld [vmem:[#allocation2 + $0x30] sm:$0xff] }
 0x186   : > { %1091 = vst.msk [vmem:[#allocation2 + $0x38] sm:$0xff] %vm959_vm1, %v1087_v51  ;;  %1118 = vrot.lane.b32.xlu1 %v1087_v51, %s5618_s7  ;;  %1102 = vrot.lane.b32.xlu2 %v1087_v51, %s5619_s0  ;;  %v1416_v51 = vld [vmem:[%s5693_s19] sm:$0xff] }
 0x187   : > { %1165 = vperm.xlu0 %4985, %v1147_v52   ;;  %v1566_v52 = vld [vmem:[%s5708_s6] sm:$0xff] }
 0x18d   : > { %v1139_v5 = vld [vmem:[#allocation2 + $0x38] sm:$0xff] }
 0x18e   : > { %1096 = vrot.lane.b32.xlu2 %v1084_v40, %s5619_s0  ;;  %1112 = vrot.lane.b32.xlu1 %v1084_v40, %s5618_s7 }
 0x18f   : > { %1150 = vperm.xlu0 %4985, %v1144_v53   ;;  %v2264_v53 = vld [vmem:[%s5733_s11 + $0x10] sm:$0xff] }
 0x196   : > { %1155 = vperm.xlu2 %4984, %v1145_v54   ;;  %1098 = vrot.lane.b32.xlu1 %v1085_v44, %s5619_s0  ;;  %v2265_v54 = vld [vmem:[%s5733_s11 + $0x18] sm:$0xff] }
 0x19e   : > { %1160 = vperm.xlu1 %4986, %v1146_v55   ;;  %v1417_v55 = vld [vmem:[%s5693_s19 + $0x8] sm:$0xff] }
 0x1d8   : > { %v1117_v56 = vpop.permute.xlu2 %1116 }
 0x1d9   : > { %1126 = vst.msk [vmem:[#allocation2 + $0x50] sm:$0xff] %vm997_vm4, %v1117_v56  ;;  %v2262_v56 = vld [vmem:[%s5733_s11] sm:$0xff] }
 0x1e0   : > { %v1103_v57 = vpop.permute.xlu2 %1102  ;;  %v1142_v0 = vld [vmem:[#allocation2 + $0x50] sm:$0xff] }
 0x1e1   : > { %1111 = vst.msk [vmem:[#allocation2 + $0x18] sm:$0xff] %vm980_vm3, %v1103_v57  ;;  %v2236_v57 = vld [vmem:[%s5718_s20] sm:$0xff] }
 0x1e8   : > { %v1115_v58 = vpop.permute.xlu0 %1114  ;;  %v1097_v59 = vpop.permute.xlu2 %1096  ;;  %v1135_v9 = vld [vmem:[#allocation2 + $0x18] sm:$0xff] }
 0x1e9   : > { %1125 = vst.msk [vmem:[#allocation2 + $0x48] sm:$0xff] %vm997_vm4, %v1115_v58  ;;  %v2263_v58 = vld [vmem:[%s5733_s11 + $0x8] sm:$0xff] }
 0x1ea   : > { %1108 = vst.msk [vmem:[#allocation2] sm:$0xff] %vm980_vm3, %v1097_v59 }
 0x1f0   : > { %v1101_v60 = vpop.permute.xlu0 %1100  ;;  %v1141_v1 = vld [vmem:[#allocation2 + $0x48] sm:$0xff]  ;;  %v1156_v22 = vpop.permute.xlu2 %1155 }
 0x1f1   : > { %1110 = vst.msk [vmem:[#allocation2 + $0x10] sm:$0xff] %vm980_vm3, %v1101_v60  ;;  %v1132_v13 = vld [vmem:[#allocation2] sm:$0xff] }
 0x1f8   : > { %v1119_v61 = vpop.permute.xlu1 %1118  ;;  %v1134_v10 = vld [vmem:[#allocation2 + $0x10] sm:$0xff] }
 0x1f9   : > { %1127 = vst.msk [vmem:[#allocation2 + $0x58] sm:$0xff] %vm997_vm4, %v1119_v61  ;;  %v1166_v17 = vpop.permute.xlu0 %1165 }
 0x200   : > { %v1113_v62 = vpop.permute.xlu1 %1112  ;;  %v1143_v63 = vld [vmem:[#allocation2 + $0x58] sm:$0xff] }
 0x201   : > { %1124 = vst.msk [vmem:[#allocation2 + $0x40] sm:$0xff] %vm997_vm4, %v1113_v62  ;;  %1184 = vmatpush.msra.mxu1 %v1143_v63  ;;  %v1151_v18 = vpop.permute.xlu0 %1150 }
 0x203   : > { %1185 = vmatpush.msra.mxu1 %v1142_v0 }
 0x205   : > { %1186 = vmatpush.msra.mxu1 %v1141_v1 }
 0x208   : > { %v1099_v3 = vpop.permute.xlu1 %1098  ;;  %v1140_v4 = vld [vmem:[#allocation2 + $0x40] sm:$0xff] }
 0x209   : > { %1109 = vst.msk [vmem:[#allocation2 + $0x8] sm:$0xff] %vm980_vm3, %v1099_v3  ;;  %1187 = vmatpush.msra.mxu1 %v1140_v4 }
 0x20b   : > { %1188 = vmatpush.msra.mxu1 %v1139_v5 }
 0x20d   : > { %1189 = vmatpush.msra.mxu1 %v1138_v6 }
 0x20f   : > { %1190 = vmatpush.msra.mxu1 %v1137_v7 }
 0x210   : > { %v1133_v11 = vld [vmem:[#allocation2 + $0x8] sm:$0xff]  ;;  %v1161_v27 = vpop.permute.xlu1 %1160 }
 0x211   : > { %1191 = vmatpush.msra.mxu1 %v1136_v8 }
 0x213   : > { %1192 = vmatpush.msra.mxu1 %v1135_v9 }
 0x215   : > { %1193 = vmatpush.msra.mxu1 %v1134_v10 }
 0x217   : > { %1194 = vmatpush.msra.mxu1 %v1133_v11 }
 0x219   : > { %1195 = vmatpush.msra.mxu1 %v1132_v13 }
 0x21a   : > { %4818 = vmatmul.msk.f32.vlgmr.msra.gmra.mxu1 %vm1042_vm5, %v1128_v12 }
 0x222   : > { %4819 = vmatmul.msk.f32.gmra.mxu1 %vm1042_vm5, %v1129_v14 }
 0x22a   : > { %4820 = vmatmul.msk.f32.gmra.mxu1 %vm1042_vm5, %v1130_v15 }
 0x232   : > { %4821 = vmatmul.msk.f32.gmra.mxu1 %vm1042_vm5, %v1131_v16 }
 0x297   : > { %v1197_v19 = vpop.f32.mrf.mxu1 }
 0x298   : > { %v1198_v20 = vadd.f32 %v1197_v19, %v1151_v18 }
 0x29a   : > { %v1209_v21 = vmax.f32 %v1198_v20, 0.0 }
 0x29c   : > { %1213 = vst.msk [vmem:[#allocation2 + $0x20] sm:$0xff] %vm959_vm1, %v1209_v21 }
 0x29f   : > { %v1200_v23 = vpop.f32.mrf.mxu1 }
 0x2a0   : > { %v1201_v24 = vadd.f32 %v1200_v23, %v1156_v22  ;;  %v1253_v22 = vld [vmem:[%s5670_s25] sm:$0xff] }
 0x2a2   : > { %v1210_v25 = vmax.f32 %v1201_v24, 0.0 }
 0x2a3   : > { %v5903_v26 = vld [vmem:[#allocation2 + $0x20] sm:$0xff] }
 0x2a4   : > { %1214 = vst.msk [vmem:[#allocation2 + $0x28] sm:$0xff] %vm959_vm1, %v1210_v25  ;;  %1239 = vrot.lane.b32.xlu0 %v1210_v25, %s5618_s7 }
 0x2a5   : > { %1388 = vst.msk [vmem:[#allocation2 + $0x20] sm:$0xff] %vm959_vm1, %v1209_v21 }
 0x2a7   : > { %v1203_v28 = vpop.f32.mrf.mxu1 }
 0x2a8   : > { %v1204_v29 = vadd.f32 %v1203_v28, %v1161_v27  ;;  %v1254_v27 = vld [vmem:[%s5670_s25 + $0x8] sm:$0xff] }
 0x2aa   : > { %v1211_v30 = vmax.f32 %v1204_v29, 0.0 }
 0x2ab   : > { %v5908_v31 = vld [vmem:[#allocation2 + $0x28] sm:$0xff] }
 0x2ac   : > { %1215 = vst.msk [vmem:[#allocation2 + $0x30] sm:$0xff] %vm959_vm1, %v1211_v30  ;;  %1241 = vrot.lane.b32.xlu2 %v1211_v30, %s5618_s7  ;;  %1225 = vrot.lane.b32.xlu0 %v1211_v30, %s5619_s0  ;;  %v5913_v32 = vld [vmem:[#allocation2 + $0x20] sm:$0xff] }
 0x2ad   : > { %1389 = vst.msk [vmem:[#allocation2 + $0x28] sm:$0xff] %vm959_vm1, %v1210_v25 }
 0x2ae   : > { %1538 = vst.msk [vmem:[#allocation2 + $0x20] sm:$0xff] %vm959_vm1, %v1209_v21 }
 0x2af   : > { %v1206_v33 = vpop.f32.mrf.mxu1 }
 0x2b0   : > { %v1207_v34 = vadd.f32 %v1206_v33, %v1166_v17  ;;  %v1255_v33 = vld [vmem:[%s5670_s25 + $0x10] sm:$0xff] }
 0x2b2   : > { %v1212_v35 = vmax.f32 %v1207_v34, 0.0 }
 0x2b3   : > { %v5918_v37 = vld [vmem:[#allocation2 + $0x30] sm:$0xff] }
 0x2b4   : > { %1216 = vst.msk [vmem:[#allocation2 + $0x38] sm:$0xff] %vm959_vm1, %v1212_v35  ;;  %1243 = vrot.lane.b32.xlu1 %v1212_v35, %s5618_s7  ;;  %1227 = vrot.lane.b32.xlu2 %v1212_v35, %s5619_s0  ;;  %v5923_v38 = vld [vmem:[#allocation2 + $0x28] sm:$0xff] }
 0x2b5   : > { %1290 = vperm.xlu0 %4985, %v1272_v36   ;;  %1390 = vst.msk [vmem:[#allocation2 + $0x30] sm:$0xff] %vm959_vm1, %v1211_v30  ;;  %v1558_v29 = vld [vmem:[#allocation2 + $0x20] sm:$0xff] }
 0x2b6   : > { %1539 = vst.msk [vmem:[#allocation2 + $0x28] sm:$0xff] %vm959_vm1, %v1210_v25 }
 0x2bb   : > { %v5928_v40 = vld [vmem:[#allocation2 + $0x38] sm:$0xff] }
 0x2bc   : > { %1221 = vrot.lane.b32.xlu2 %v1209_v21, %s5619_s0  ;;  %1237 = vrot.lane.b32.xlu1 %v1209_v21, %s5618_s7  ;;  %1391 = vst.msk [vmem:[#allocation2 + $0x38] sm:$0xff] %vm959_vm1, %v1212_v35  ;;  %v5933_v41 = vld [vmem:[#allocation2 + $0x30] sm:$0xff]  ;;  %s5626_s7 = smov 49  }
 0x2bd   : > { %1275 = vperm.xlu0 %4985, %v1269_v39   ;;  %1540 = vst.msk [vmem:[#allocation2 + $0x30] sm:$0xff] %vm959_vm1, %v1211_v30  ;;  %v1559_v28 = vld [vmem:[#allocation2 + $0x28] sm:$0xff] }
 0x2be   : > { %v1551_v39 = vld [vmem:[%s5703_s30 + $0x8] sm:$0xff] }
 0x2c3   : > { %v5938_v44 = vld [vmem:[#allocation2 + $0x38] sm:$0xff] }
 0x2c4   : > { %1280 = vperm.xlu2 %4984, %v1270_v42   ;;  %1223 = vrot.lane.b32.xlu1 %v1210_v25, %s5619_s0  ;;  %1541 = vst.msk [vmem:[#allocation2 + $0x38] sm:$0xff] %vm959_vm1, %v1212_v35  ;;  %v1550_v35 = vld [vmem:[%s5703_s30] sm:$0xff]  ;;  %v1553_v42 = vld [vmem:[%s5703_s30 + $0x18] sm:$0xff]  ;;  %s5627_s0 = smov 32  }
 0x2c5   : > { %1577 = vperm.xlu0 %4985, %v1567_v43  }
 0x2cb   : > { %v1561_v25 = vld [vmem:[#allocation2 + $0x38] sm:$0xff] }
 0x2cc   : > { %1582 = vperm.xlu2 %4984, %v1568_v45   ;;  %1285 = vperm.xlu1 %4986, %v1271_v46  }
 0x2cd   : > { %1432 = vperm.xlu0 %4985, %v1418_v47  }
 0x2d4   : > { %1437 = vperm.xlu2 %4984, %v1419_v48   ;;  %1587 = vperm.xlu1 %4986, %v1569_v49  }
 0x2d5   : > { %2245 = vperm.xlu0 %4985, %v2237_v50  }
 0x2dc   : > { %1422 = vperm.xlu2 %4984, %v1416_v51   ;;  %1572 = vperm.xlu1 %4986, %v1566_v52  }
 0x2dd   : > { %2278 = vperm.xlu0 %4985, %v2264_v53  }
 0x2e4   : > { %2283 = vperm.xlu2 %4984, %v2265_v54   ;;  %1427 = vperm.xlu1 %4986, %v1417_v55  }
 0x2ec   : > { %2268 = vperm.xlu2 %4984, %v2262_v56   ;;  %2240 = vperm.xlu1 %4986, %v2236_v57  }
 0x2f4   : > { %2273 = vperm.xlu1 %4986, %v2263_v58  }
 0x306   : > { %v1242_v59 = vpop.permute.xlu2 %1241 }
 0x307   : > { %1251 = vst.msk [vmem:[#allocation2 + $0x50] sm:$0xff] %vm997_vm4, %v1242_v59 }
 0x30e   : > { %v1228_v60 = vpop.permute.xlu2 %1227  ;;  %v1267_v61 = vld [vmem:[#allocation2 + $0x50] sm:$0xff] }
 0x30f   : > { %1236 = vst.msk [vmem:[#allocation2 + $0x18] sm:$0xff] %vm980_vm3, %v1228_v60 }
 0x310   : > { %1398 = vst.msk [vmem:[#allocation2 + $0x50] sm:$0xff] %vm997_vm4, %v1242_v59 }
 0x316   : > { %v1240_v62 = vpop.permute.xlu0 %1239  ;;  %v1222_v63 = vpop.permute.xlu2 %1221  ;;  %v1260_v1 = vld [vmem:[#allocation2 + $0x18] sm:$0xff] }
 0x317   : > { %1250 = vst.msk [vmem:[#allocation2 + $0x48] sm:$0xff] %vm997_vm4, %v1240_v62  ;;  %v5960_v0 = vld [vmem:[#allocation2 + $0x50] sm:$0xff] }
 0x318   : > { %1233 = vst.msk [vmem:[#allocation2] sm:$0xff] %vm980_vm3, %v1222_v63 }
 0x319   : > { %1548 = vst.msk [vmem:[#allocation2 + $0x50] sm:$0xff] %vm997_vm4, %v1242_v59 }
 0x31a   : > { %1395 = vst.msk [vmem:[#allocation2 + $0x18] sm:$0xff] %vm980_vm3, %v1228_v60 }
 0x31e   : > { %v1226_v3 = vpop.permute.xlu0 %1225  ;;  %v1266_v4 = vld [vmem:[#allocation2 + $0x48] sm:$0xff]  ;;  %v1281_v54 = vpop.permute.xlu2 %1280 }
 0x31f   : > { %1235 = vst.msk [vmem:[#allocation2 + $0x10] sm:$0xff] %vm980_vm3, %v1226_v3  ;;  %v1257_v5 = vld [vmem:[#allocation2] sm:$0xff] }
 0x320   : > { %1397 = vst.msk [vmem:[#allocation2 + $0x48] sm:$0xff] %vm997_vm4, %v1240_v62  ;;  %v1564_v20 = vld [vmem:[#allocation2 + $0x50] sm:$0xff] }
 0x321   : > { %v5967_v6 = vld [vmem:[#allocation2 + $0x18] sm:$0xff]  ;;  %1392 = vst.msk [vmem:[#allocation2] sm:$0xff] %vm980_vm3, %v1222_v63 }
 0x322   : > { %1545 = vst.msk [vmem:[#allocation2 + $0x18] sm:$0xff] %vm980_vm3, %v1228_v60 }
 0x326   : > { %v1244_v7 = vpop.permute.xlu1 %1243  ;;  %v1259_v8 = vld [vmem:[#allocation2 + $0x10] sm:$0xff] }
 0x327   : > { %1252 = vst.msk [vmem:[#allocation2 + $0x58] sm:$0xff] %vm997_vm4, %v1244_v7  ;;  %v5972_v9 = vld [vmem:[#allocation2 + $0x48] sm:$0xff]  ;;  %v1291_v48 = vpop.permute.xlu0 %1290 }
 0x328   : > { %1547 = vst.msk [vmem:[#allocation2 + $0x48] sm:$0xff] %vm997_vm4, %v1240_v62  ;;  %v5975_v10 = vld [vmem:[#allocation2] sm:$0xff] }
 0x329   : > { %1394 = vst.msk [vmem:[#allocation2 + $0x10] sm:$0xff] %vm980_vm3, %v1226_v3  ;;  %v1557_v30 = vld [vmem:[#allocation2 + $0x18] sm:$0xff] }
 0x32a   : > { %1542 = vst.msk [vmem:[#allocation2] sm:$0xff] %vm980_vm3, %v1222_v63 }
 0x32e   : > { %v1238_v11 = vpop.permute.xlu1 %1237  ;;  %v1268_v12 = vld [vmem:[#allocation2 + $0x58] sm:$0xff] }
 0x32f   : > { %1249 = vst.msk [vmem:[#allocation2 + $0x40] sm:$0xff] %vm997_vm4, %v1238_v11  ;;  %1309 = vmatpush.msra.mxu2 %v1268_v12  ;;  %v1563_v21 = vld [vmem:[#allocation2 + $0x48] sm:$0xff]  ;;  %v1276_v57 = vpop.permute.xlu0 %1275 }
 0x330   : > { %1399 = vst.msk [vmem:[#allocation2 + $0x58] sm:$0xff] %vm997_vm4, %v1244_v7  ;;  %v5981_v13 = vld [vmem:[#allocation2 + $0x10] sm:$0xff] }
 0x331   : > { %1310 = vmatpush.msra.mxu2 %v1267_v61  ;;  %1544 = vst.msk [vmem:[#allocation2 + $0x10] sm:$0xff] %vm980_vm3, %v1226_v3  ;;  %v1554_v36 = vld [vmem:[#allocation2] sm:$0xff]  ;;  %v1583_v3 = vpop.permute.xlu2 %1582 }
 0x333   : > { %1311 = vmatpush.msra.mxu2 %v1266_v4 }
 0x336   : > { %v1224_v14 = vpop.permute.xlu1 %1223  ;;  %v1265_v15 = vld [vmem:[#allocation2 + $0x40] sm:$0xff] }
 0x337   : > { %v5984_v16 = vld [vmem:[#allocation2 + $0x58] sm:$0xff]  ;;  %1234 = vst.msk [vmem:[#allocation2 + $0x8] sm:$0xff] %vm980_vm3, %v1224_v14  ;;  %1312 = vmatpush.msra.mxu2 %v1265_v15 }
 0x338   : > { %1549 = vst.msk [vmem:[#allocation2 + $0x58] sm:$0xff] %vm997_vm4, %v1244_v7 }
 0x339   : > { %1396 = vst.msk [vmem:[#allocation2 + $0x40] sm:$0xff] %vm997_vm4, %v1238_v11  ;;  %1313 = vmatpush.msra.mxu2 %v5928_v40  ;;  %v1552_v40 = vld [vmem:[%s5703_s30 + $0x10] sm:$0xff] }
 0x33b   : > { %1314 = vmatpush.msra.mxu2 %v5918_v37  ;;  %v1256_v37 = vld [vmem:[%s5670_s25 + $0x18] sm:$0xff] }
 0x33d   : > { %1315 = vmatpush.msra.mxu2 %v5908_v31  ;;  %v1556_v31 = vld [vmem:[#allocation2 + $0x10] sm:$0xff] }
 0x33e   : > { %v1258_v17 = vld [vmem:[#allocation2 + $0x8] sm:$0xff]  ;;  %v1286_v49 = vpop.permute.xlu1 %1285 }
 0x33f   : > { %1316 = vmatpush.msra.mxu2 %v5903_v26  ;;  %v1565_v18 = vld [vmem:[#allocation2 + $0x58] sm:$0xff]  ;;  %1393 = vst.msk [vmem:[#allocation2 + $0x8] sm:$0xff] %vm980_vm3, %v1224_v14  ;;  %v1560_v26 = vld [vmem:[#allocation2 + $0x30] sm:$0xff] }
 0x340   : > { %v5994_v19 = vld [vmem:[#allocation2 + $0x40] sm:$0xff]  ;;  %1606 = vmatpush.msrb.mxu1 %v1565_v18 }
 0x341   : > { %1546 = vst.msk [vmem:[#allocation2 + $0x40] sm:$0xff] %vm997_vm4, %v1238_v11  ;;  %1317 = vmatpush.msra.mxu2 %v1260_v1  ;;  %v1338_v1 = vld [vmem:[%s5680_s3] sm:$0x1] }
 0x342   : > { %1607 = vmatpush.msrb.mxu1 %v1564_v20  ;;  %v1641_v20 = vld [vmem:[%s7664_s4 + $0x30] sm:$0xff] }
 0x343   : > { %1318 = vmatpush.msra.mxu2 %v1259_v8  ;;  %v1578_v8 = vpop.permute.xlu0 %1577 }
 0x344   : > { %1608 = vmatpush.msrb.mxu1 %v1563_v21  ;;  %v1642_v21 = vld [vmem:[%s7664_s4 + $0x38] sm:$0xff] }
 0x345   : > { %1319 = vmatpush.msra.mxu2 %v1258_v17 }
 0x346   : > { %v5998_v23 = vld [vmem:[#allocation2 + $0x8] sm:$0xff]  ;;  %v1588_v61 = vpop.permute.xlu1 %1587 }
 0x347   : > { %1543 = vst.msk [vmem:[#allocation2 + $0x8] sm:$0xff] %vm980_vm3, %v1224_v14  ;;  %1320 = vmatpush.msra.mxu2 %v1257_v5  ;;  %vm2918_vm3 = vcmask 777216  }
 0x348   : > { %v1562_v24 = vld [vmem:[#allocation2 + $0x40] sm:$0xff]  ;;  %4822 = vmatmul.msk.f32.vlgmr.msra.gmra.mxu2 %vm1042_vm5, %v1253_v22 }
 0x349   : > { %1609 = vmatpush.msrb.mxu1 %v1562_v24  ;;  %v1643_v22 = vld [vmem:[%s7664_s4 + $0x40] sm:$0xff]  ;;  %v1645_v24 = vld [vmem:[%s7664_s4 + $0x50] sm:$0xff] }
 0x34b   : > { %1610 = vmatpush.msrb.mxu1 %v1561_v25  ;;  %v1646_v25 = vld [vmem:[%s7664_s4 + $0x58] sm:$0xff] }
 0x34d   : > { %1611 = vmatpush.msrb.mxu1 %v1560_v26  ;;  %v1647_v26 = vld [vmem:[%s7664_s4 + $0x60] sm:$0xff] }
 0x34e   : > { %v1555_v34 = vld [vmem:[#allocation2 + $0x8] sm:$0xff]  ;;  %v1573_v14 = vpop.permute.xlu1 %1572 }
 0x34f   : > { %1612 = vmatpush.msrb.mxu1 %v1559_v28  ;;  %v1649_v28 = vld [vmem:[%s7664_s4 + $0x70] sm:$0xff] }
 0x350   : > { %4823 = vmatmul.msk.f32.gmra.mxu2 %vm1042_vm5, %v1254_v27  ;;  %v1648_v27 = vld [vmem:[%s7664_s4 + $0x68] sm:$0xff] }
 0x351   : > { %1613 = vmatpush.msrb.mxu1 %v1558_v29  ;;  %v1771_v29 = vld [vmem:[#allocation7 + $0x98] sm:$0xff] }
 0x353   : > { %1614 = vmatpush.msrb.mxu1 %v1557_v30  ;;  %v1769_v30 = vld [vmem:[#allocation7 + $0x18] sm:$0xff] }
 0x355   : > { %1615 = vmatpush.msrb.mxu1 %v1556_v31  ;;  %v1650_v31 = vld [vmem:[%s7664_s4 + $0x78] sm:$0xff] }
 0x357   : > { %1616 = vmatpush.msrb.mxu1 %v1555_v34  ;;  %v1765_v34 = vld [vmem:[#allocation7 + $0x8] sm:$0xff] }
 0x358   : > { %4824 = vmatmul.msk.f32.gmra.mxu2 %vm1042_vm5, %v1255_v33  ;;  %v1767_v33 = vld [vmem:[#allocation7 + $0x88] sm:$0xff] }
 0x359   : > { %1617 = vmatpush.msrb.mxu1 %v1554_v36 }
 0x35a   : > { %4832 = vmatmul.msk.f32.vlgmr.msrb.gmra.mxu1 %vm1042_vm5, %v1550_v35 }
 0x360   : > { %4825 = vmatmul.msk.f32.gmra.mxu2 %vm1042_vm5, %v1256_v37 }
 0x362   : > { %4833 = vmatmul.msk.f32.gmra.mxu1 %vm1042_vm5, %v1551_v39 }
 0x36a   : > { %4834 = vmatmul.msk.f32.gmra.mxu1 %vm1042_vm5, %v1552_v40  ;;  %v1878_v40 = vld [vmem:[#allocation7 + $0xa0] sm:$0xff] }
 0x36b   : > { %1900 = vmatpush.msra.mxu1 %v1878_v40 }
 0x372   : > { %4835 = vmatmul.msk.f32.gmra.mxu1 %vm1042_vm5, %v1553_v42  ;;  %v1876_v42 = vld [vmem:[#allocation7 + $0x20] sm:$0xff] }
 0x373   : > { %1901 = vmatpush.msra.mxu1 %v1876_v42 }
 0x3cb   : > { %v1322_v43 = vpop.f32.mrf.mxu2 }
 0x3cc   : > { %v1323_v59 = vadd.f32 %v1322_v43, %v1276_v57 }
 0x3ce   : > { %v1334_v63 = vmax.f32 %v1323_v59, 0.0 }
 0x3d3   : > { %v1325_v45 = vpop.f32.mrf.mxu2 }
 0x3d4   : > { %v1326_v55 = vadd.f32 %v1325_v45, %v1281_v54  ;;  %v1433_v54 = vpop.permute.xlu0 %1432 }
 0x3d6   : > { %v1335_v62 = vmax.f32 %v1326_v55, 0.0 }
 0x3d7   : > { %v1619_v46 = vpop.f32.mrf.mxu1 }
 0x3d8   : > { %v1620_v15 = vadd.f32 %v1619_v46, %v1573_v14 }
 0x3da   : > { %v1631_v18 = vmax.f32 %v1620_v15, 0.0  ;;  %v1766_v15 = vld [vmem:[#allocation7 + $0x80] sm:$0xff] }
 0x3db   : > { %v1328_v47 = vpop.f32.mrf.mxu2 }
 0x3dc   : > { %v1329_v52 = vadd.f32 %v1328_v47, %v1286_v49  ;;  %v1938_v47 = vld [vmem:[#allocation7 + $0xb0] sm:$0xff] }
 0x3de   : > { %v1336_v60 = vmax.f32 %v1329_v52, 0.0  ;;  %v1937_v52 = vld [vmem:[#allocation7 + $0x38] sm:$0xff] }
 0x3df   : > { %v1622_v50 = vpop.f32.mrf.mxu1 }
 0x3e0   : > { %v1623_v11 = vadd.f32 %v1622_v50, %v1578_v8  ;;  %v1438_v50 = vpop.permute.xlu2 %1437  ;;  %v1770_v8 = vld [vmem:[#allocation7 + $0x90] sm:$0xff] }
 0x3e3   : > { %v1331_v51 = vpop.f32.mrf.mxu2 }
 0x3e4   : > { %v1332_v53 = vadd.f32 %v1331_v51, %v1291_v48  ;;  %v1939_v48 = vld [vmem:[#allocation7 + $0xb8] sm:$0xff]  ;;  %v1936_v51 = vld [vmem:[#allocation7 + $0x30] sm:$0xff] }
 0x3e5   : > { %1983 = vmatpush.msrb.mxu1 %v1939_v48 }
 0x3e6   : > { %v1337_v56 = vmax.f32 %v1332_v53, 0.0 }
 0x3e7   : > { %v1625_v58 = vpop.f32.mrf.mxu1  ;;  %1984 = vmatpush.msrb.mxu1 %v1937_v52 }
 0x3e8   : > { %1361 = vmatpush.msra.mxu3 %v1337_v56  ;;  %v1626_v5 = vadd.f32 %v1625_v58, %v1583_v3  ;;  %v1428_v58 = vpop.permute.xlu1 %1427  ;;  %v1999_v3 = vld [vmem:[#allocation7 + $0xc8] sm:$0xff] }
 0x3ea   : > { %1362 = vmatpush.msra.mxu3 %v1336_v60  ;;  %v1633_v17 = vmax.f32 %v1626_v5, 0.0 }
 0x3ec   : > { %1363 = vmatpush.msra.mxu3 %v1335_v62 }
 0x3ee   : > { %1364 = vmatpush.msra.mxu3 %v1334_v63 }
 0x3ef   : > { %v1628_v4 = vpop.f32.mrf.mxu1  ;;  %4826 = vmatmul.msk.f32.vlgmr.msra.gmra.mxu3 %vm945_vm6, %v1338_v1 }
 0x3f0   : > { %1456 = vmatpush.msrb.mxu3 %v5984_v16  ;;  %v1629_v7 = vadd.f32 %v1628_v4, %v1588_v61  ;;  %v1632_v16 = vmax.f32 %v1623_v11, 0.0  ;;  %v1423_v61 = vpop.permute.xlu2 %1422  ;;  %v1768_v11 = vld [vmem:[#allocation7 + $0x10] sm:$0xff] }
 0x3f2   : > { %1457 = vmatpush.msrb.mxu3 %v5960_v0  ;;  %v1634_v12 = vmax.f32 %v1629_v7, 0.0  ;;  %v1635_v0 = vld [vmem:[%s7664_s4] sm:$0xff] }
 0x3f3   : > { %v1485_v7 = vld [vmem:[%s7667_s16] sm:$0x1]  ;;  %s7638_s16 = smov 80  }
 0x3f4   : > { %1458 = vmatpush.msrb.mxu3 %v5972_v9  ;;  %1711 = vmatpush.msrb.mxu2 %v1634_v12  ;;  %v1402_v9 = vld [vmem:[%s7665_s15 + $0x10] sm:$0xff] }
 0x3f5   : > { %v1997_v12 = vld [vmem:[#allocation7 + $0x48] sm:$0xff] }
 0x3f6   : > { %1459 = vmatpush.msrb.mxu3 %v5994_v19  ;;  %1712 = vmatpush.msrb.mxu2 %v1633_v17  ;;  %v1640_v19 = vld [vmem:[%s7664_s4 + $0x28] sm:$0xff] }
 0x3f7   : > { %v1764_v17 = vld [vmem:[#allocation7] sm:$0xff] }
 0x3f8   : > { %1460 = vmatpush.msrb.mxu3 %v5938_v44  ;;  %1713 = vmatpush.msrb.mxu2 %v1632_v16  ;;  %v1636_v44 = vld [vmem:[%s7664_s4 + $0x8] sm:$0xff] }
 0x3f9   : > { %v1879_v16 = vld [vmem:[#allocation7 + $0xa8] sm:$0xff] }
 0x3fa   : > { %1461 = vmatpush.msrb.mxu3 %v5933_v41  ;;  %1714 = vmatpush.msrb.mxu2 %v1631_v18  ;;  %v1400_v41 = vld [vmem:[%s7665_s15] sm:$0xff]  ;;  %v1877_v18 = vld [vmem:[#allocation7 + $0x28] sm:$0xff] }
 0x3fb   : > { %4836 = vmatmul.msk.f32.vlgmr.msrb.gmra.mxu2 %vm945_vm6, %v1635_v0 }
 0x3fc   : > { %1462 = vmatpush.msrb.mxu3 %v5923_v38  ;;  %v1637_v38 = vld [vmem:[%s7664_s4 + $0x10] sm:$0xff] }
 0x3fe   : > { %1463 = vmatpush.msrb.mxu3 %v5913_v32  ;;  %v1401_v32 = vld [vmem:[%s7665_s15 + $0x8] sm:$0xff] }
 0x400   : > { %1464 = vmatpush.msrb.mxu3 %v5967_v6  ;;  %v1638_v6 = vld [vmem:[%s7664_s4 + $0x18] sm:$0xff] }
 0x402   : > { %1465 = vmatpush.msrb.mxu3 %v5981_v13  ;;  %v1403_v13 = vld [vmem:[%s7665_s15 + $0x18] sm:$0xff] }
 0x403   : > { %4837 = vmatmul.msk.f32.gmra.mxu2 %vm945_vm6, %v1636_v44  ;;  %v2058_v44 = vld [vmem:[#allocation7 + $0xd0] sm:$0xff] }
 0x404   : > { %1466 = vmatpush.msrb.mxu3 %v5998_v23  ;;  %v1644_v23 = vld [vmem:[%s7664_s4 + $0x48] sm:$0xff] }
 0x406   : > { %1467 = vmatpush.msrb.mxu3 %v5975_v10  ;;  %v1639_v10 = vld [vmem:[%s7664_s4 + $0x20] sm:$0xff] }
 0x407   : > { %4827 = vmatmul.msk.f32.vlgmr.msrb.gmra.mxu3 %vm1042_vm5, %v1400_v41  ;;  %v2056_v41 = vld [vmem:[#allocation7 + $0x50] sm:$0xff] }
 0x408   : > { %1815 = vmatpush.msra.mxu3 %v1771_v29  ;;  %v2176_v29 = vld [vmem:[#allocation7 + $0x70] sm:$0xff] }
 0x40a   : > { %1816 = vmatpush.msra.mxu3 %v1769_v30 }
 0x40b   : > { %4838 = vmatmul.msk.f32.gmra.mxu2 %vm945_vm6, %v1637_v38  ;;  %v2118_v38 = vld [vmem:[#allocation7 + $0xe0] sm:$0xff] }
 0x40c   : > { %1867 = vmatpush.msrb.mxu3 %v1767_v33 }
 0x40e   : > { %1868 = vmatpush.msrb.mxu3 %v1765_v34 }
 0x40f   : > { %4828 = vmatmul.msk.f32.gmra.mxu3 %vm1042_vm5, %v1401_v32 }
 0x413   : > { %4839 = vmatmul.msk.f32.gmra.mxu2 %vm945_vm6, %v1638_v6  ;;  %v2116_v6 = vld [vmem:[#allocation7 + $0x60] sm:$0xff] }
 0x417   : > { %4829 = vmatmul.msk.f32.gmra.mxu3 %vm1042_vm5, %v1402_v9  ;;  %v1998_v9 = vld [vmem:[#allocation7 + $0xc0] sm:$0xff] }
 0x41b   : > { %4840 = vmatmul.msk.f32.gmra.mxu2 %vm945_vm6, %v1639_v10  ;;  %v1996_v10 = vld [vmem:[#allocation7 + $0x40] sm:$0xff] }
 0x41f   : > { %4830 = vmatmul.msk.f32.gmra.mxu3 %vm1042_vm5, %v1403_v13 }
 0x423   : > { %4841 = vmatmul.msk.f32.gmra.mxu2 %vm945_vm6, %v1640_v19  ;;  %v2119_v19 = vld [vmem:[#allocation7 + $0xe8] sm:$0xff] }
 0x42b   : > { %4842 = vmatmul.msk.f32.gmra.mxu2 %vm945_vm6, %v1641_v20  ;;  %v2117_v20 = vld [vmem:[#allocation7 + $0x68] sm:$0xff] }
 0x433   : > { %4843 = vmatmul.msk.f32.gmra.mxu2 %vm945_vm6, %v1642_v21  ;;  %v2179_v21 = vld [vmem:[#allocation7 + $0xf8] sm:$0xff] }
 0x43b   : > { %4844 = vmatmul.msk.f32.gmra.mxu2 %vm945_vm6, %v1643_v22 }
 0x443   : > { %4845 = vmatmul.msk.f32.gmra.mxu2 %vm945_vm6, %v1644_v23  ;;  %v2177_v23 = vld [vmem:[#allocation7 + $0x78] sm:$0xff] }
 0x44b   : > { %4846 = vmatmul.msk.f32.gmra.mxu2 %vm945_vm6, %v1645_v24  ;;  %v2059_v24 = vld [vmem:[#allocation7 + $0xd8] sm:$0xff] }
 0x453   : > { %4847 = vmatmul.msk.f32.gmra.mxu2 %vm945_vm6, %v1646_v25  ;;  %v2057_v25 = vld [vmem:[#allocation7 + $0x58] sm:$0xff] }
 0x45b   : > { %4848 = vmatmul.msk.f32.gmra.mxu2 %vm945_vm6, %v1647_v26 }
 0x463   : > { %4849 = vmatmul.msk.f32.gmra.mxu2 %vm945_vm6, %v1648_v27 }
 0x46b   : > { %4850 = vmatmul.msk.f32.gmra.mxu2 %vm945_vm6, %v1649_v28  ;;  %v2178_v28 = vld [vmem:[#allocation7 + $0xf0] sm:$0xff] }
 0x472   : > { %v6080_v36 = vpop.f32.mrf.mxu3 }
 0x473   : > { %4851 = vmatmul.msk.f32.gmra.mxu2 %vm945_vm6, %v1650_v31  ;;  %7666 = vst [vmem:[#allocation21_spill] sm:$0xff] %v6080_v36 }
 0x47e   : > { %v6078_v35 = vpop.f32.mrf.mxu2 }
 0x486   : > { %v6082_v37 = vpop.f32.mrf.mxu2 }
 0x48a   : > { %v1469_v39 = vpop.f32.mrf.mxu3 }
 0x48b   : > { %v1470_v62 = vadd.f32 %v1469_v39, %v1423_v61 }
 0x48d   : > { %v1481_v5 = vmax.f32 %v1470_v62, 0.0 }
 0x48e   : > { %v1722_v43 = vpop.f32.mrf.mxu2 }
 0x48f   : > { %4854 = vmatmul.msk.f32.vlgmr.msra.gmra.mxu3 %vm959_vm1, %v1722_v43 }
 0x490   : > { %1960 = vmatpush.msra.mxu3 %v1938_v47 }
 0x492   : > { %v1472_v45 = vpop.f32.mrf.mxu3  ;;  %1961 = vmatpush.msra.mxu3 %v1936_v51 }
 0x493   : > { %v1473_v59 = vadd.f32 %v1472_v45, %v1428_v58 }
 0x495   : > { %v1482_v4 = vmax.f32 %v1473_v59, 0.0 }
 0x496   : > { %v1725_v46 = vpop.f32.mrf.mxu2 }
 0x497   : > { %4855 = vmatmul.msk.f32.gmra.mxu3 %vm959_vm1, %v1725_v46 }
 0x49a   : > { %v1475_v49 = vpop.f32.mrf.mxu3 }
 0x49b   : > { %v1476_v56 = vadd.f32 %v1475_v49, %v1433_v54 }
 0x49d   : > { %v1483_v63 = vmax.f32 %v1476_v56, 0.0 }
 0x49e   : > { %v6086_v53 = vpop.f32.mrf.mxu2 }
 0x49f   : > { %4858 = vmatmul.msk.f32.vlgmr.msrb.gmra.mxu3 %vm959_vm1, %v6078_v35  ;;  %4860 = vmatmul.msk.f32.vlgmr.msra.gmra.mxu1 %vm959_vm1, %v6086_v53 }
 0x4a0   : > { %2043 = vmatpush.msrb.mxu3 %v1999_v3  ;;  %2080 = vmatpush.msra.mxu1 %v2058_v44 }
 0x4a2   : > { %v1478_v55 = vpop.f32.mrf.mxu3  ;;  %2044 = vmatpush.msrb.mxu3 %v1997_v12  ;;  %2081 = vmatpush.msra.mxu1 %v2056_v41 }
 0x4a3   : > { %v1479_v57 = vadd.f32 %v1478_v55, %v1438_v50 }
 0x4a5   : > { %v1484_v60 = vmax.f32 %v1479_v57, 0.0 }
 0x4a6   : > { %v6092_v1 = vpop.f32.mrf.mxu2 }
 0x4a7   : > { %1508 = vmatpush.msrb.mxu0 %v1484_v60  ;;  %4859 = vmatmul.msk.f32.gmra.mxu3 %vm959_vm1, %v6082_v37 }
 0x4a8   : > { %4861 = vmatmul.msk.f32.gmra.mxu1 %vm959_vm1, %v6092_v1 }
 0x4a9   : > { %1509 = vmatpush.msrb.mxu0 %v1483_v63 }
 0x4ab   : > { %1510 = vmatpush.msrb.mxu0 %v1482_v4 }
 0x4ad   : > { %1511 = vmatpush.msrb.mxu0 %v1481_v5 }
 0x4ae   : > { %4831 = vmatmul.msk.f32.vlgmr.msrb.gmra.mxu0 %vm945_vm6, %v1485_v7  ;;  %v1734_v14 = vpop.f32.mrf.mxu2 }
 0x4af   : > { %1792 = vmatpush.msra.mxu0 %v1770_v8  ;;  %4864 = vmatmul.msk.f32.vlgmr.msra.gmra.mxu3 %vm959_vm1, %v1734_v14 }
 0x4b0   : > { %4866 = vmatmul.msk.f32.vlgmr.msrb.gmra.mxu1 %vm959_vm1, %v1734_v14  ;;  %2140 = vmatpush.msra.mxu3 %v2118_v38 }
 0x4b1   : > { %1793 = vmatpush.msra.mxu0 %v1768_v11  ;;  %2163 = vmatpush.msrb.mxu1 %v2119_v19 }
 0x4b2   : > { %2141 = vmatpush.msra.mxu3 %v2116_v6 }
 0x4b3   : > { %1844 = vmatpush.msrb.mxu0 %v1766_v15  ;;  %2164 = vmatpush.msrb.mxu1 %v2117_v20 }
 0x4b5   : > { %1845 = vmatpush.msrb.mxu0 %v1764_v17 }
 0x4b6   : > { %4852 = vmatmul.msk.f32.vlgmr.msra.gmra.mxu0 %vm959_vm1, %v1722_v43  ;;  %v1737_v0 = vpop.f32.mrf.mxu2 }
 0x4b7   : > { %1923 = vmatpush.msra.mxu0 %v1879_v16  ;;  %4865 = vmatmul.msk.f32.gmra.mxu3 %vm959_vm1, %v1737_v0 }
 0x4b8   : > { %4867 = vmatmul.msk.f32.gmra.mxu1 %vm959_vm1, %v1737_v0 }
 0x4b9   : > { %1924 = vmatpush.msra.mxu0 %v1877_v18 }
 0x4be   : > { %4853 = vmatmul.msk.f32.gmra.mxu0 %vm959_vm1, %v1725_v46  ;;  %v1740_v32 = vpop.f32.mrf.mxu2 }
 0x4bf   : > { %4870 = vmatmul.msk.f32.vlgmr.msrb.gmra.mxu3 %vm959_vm1, %v1740_v32 }
 0x4c0   : > { %2223 = vmatpush.msrb.mxu3 %v2179_v21 }
 0x4c2   : > { %2224 = vmatpush.msrb.mxu3 %v2177_v23  ;;  %v2246_v23 = vpop.permute.xlu0 %2245 }
 0x4c6   : > { %4856 = vmatmul.msk.f32.vlgmr.msrb.gmra.mxu0 %vm959_vm1, %v6078_v35  ;;  %v1743_v13 = vpop.f32.mrf.mxu2 }
 0x4c7   : > { %2020 = vmatpush.msrb.mxu0 %v1998_v9  ;;  %4871 = vmatmul.msk.f32.gmra.mxu3 %vm959_vm1, %v1743_v13 }
 0x4c9   : > { %2021 = vmatpush.msrb.mxu0 %v1996_v10 }
 0x4ce   : > { %4857 = vmatmul.msk.f32.gmra.mxu0 %vm959_vm1, %v6082_v37  ;;  %v1746_v22 = vpop.f32.mrf.mxu2 }
 0x4cf   : > { %4872 = vmatmul.msk.f32.vlgmr.msra.gmra.mxu1 %vm959_vm1, %v1746_v22 }
 0x4d6   : > { %4862 = vmatmul.msk.f32.vlgmr.msra.gmra.mxu0 %vm959_vm1, %v6086_v53  ;;  %v1749_v26 = vpop.f32.mrf.mxu2 }
 0x4d7   : > { %2103 = vmatpush.msra.mxu0 %v2059_v24  ;;  %4873 = vmatmul.msk.f32.gmra.mxu1 %vm959_vm1, %v1749_v26  ;;  %v2241_v24 = vpop.permute.xlu1 %2240 }
 0x4d9   : > { %2104 = vmatpush.msra.mxu0 %v2057_v25 }
 0x4de   : > { %4863 = vmatmul.msk.f32.gmra.mxu0 %vm959_vm1, %v6092_v1  ;;  %v1752_v27 = vpop.f32.mrf.mxu2 }
 0x4df   : > { %4876 = vmatmul.msk.f32.vlgmr.msra.gmra.mxu3 %vm959_vm1, %v1752_v27  ;;  %4878 = vmatmul.msk.f32.vlgmr.msrb.gmra.mxu1 %vm959_vm1, %v1752_v27 }
 0x4e6   : > { %4868 = vmatmul.msk.f32.vlgmr.msrb.gmra.mxu0 %vm959_vm1, %v1740_v32  ;;  %v1755_v30 = vpop.f32.mrf.mxu2 }
 0x4e7   : > { %2200 = vmatpush.msrb.mxu0 %v2178_v28  ;;  %4877 = vmatmul.msk.f32.gmra.mxu3 %vm959_vm1, %v1755_v30 }
 0x4e8   : > { %4879 = vmatmul.msk.f32.gmra.mxu1 %vm959_vm1, %v1755_v30 }
 0x4e9   : > { %2201 = vmatpush.msrb.mxu0 %v2176_v29 }
 0x4ee   : > { %4869 = vmatmul.msk.f32.gmra.mxu0 %vm959_vm1, %v1743_v13  ;;  %v1758_v31 = vpop.f32.mrf.mxu2 }
 0x4ef   : > { %4882 = vmatmul.msk.f32.vlgmr.msrb.gmra.mxu3 %vm959_vm1, %v1758_v31 }
 0x4f6   : > { %4874 = vmatmul.msk.f32.vlgmr.msra.gmra.mxu0 %vm959_vm1, %v1746_v22  ;;  %v1761_v33 = vpop.f32.mrf.mxu2 }
 0x4f7   : > { %4883 = vmatmul.msk.f32.gmra.mxu3 %vm959_vm1, %v1761_v33 }
 0x4fe   : > { %4875 = vmatmul.msk.f32.gmra.mxu0 %vm959_vm1, %v1749_v26 }
 0x506   : > { %4880 = vmatmul.msk.f32.vlgmr.msrb.gmra.mxu0 %vm959_vm1, %v1758_v31 }
 0x50e   : > { %4881 = vmatmul.msk.f32.gmra.mxu0 %vm959_vm1, %v1761_v33 }
 0x512   : > { %v1818_v34 = vpop.f32.mrf.mxu3 }
 0x51a   : > { %v1821_v35 = vpop.f32.mrf.mxu3 }
 0x51c   : > { %v1903_v43 = vpop.f32.mrf.mxu1 }
 0x522   : > { %v1870_v37 = vpop.f32.mrf.mxu3 }
 0x523   : > { %v1871_v61 = vadd.f32 %v1870_v37, %v1818_v34  ;;  %v2258_v34 = vld [vmem:[%s7669_s18] sm:$0xff] }
 0x525   : > { %v1906_v47 = vpop.f32.mrf.mxu1 }
 0x52a   : > { %v1873_v40 = vpop.f32.mrf.mxu3 }
 0x52b   : > { %v6130_v39 = vpop.f32.mrf.mxu0  ;;  %v1874_v3 = vadd.f32 %v1873_v40, %v1821_v35 }
 0x52c   : > { %7668 = vst [vmem:[#allocation22_spill] sm:$0xff] %v6130_v39 }
 0x52d   : > { %v1986_v51 = vpop.f32.mrf.mxu1 }
 0x532   : > { %v1963_v46 = vpop.f32.mrf.mxu3 }
 0x533   : > { %v1795_v42 = vpop.f32.mrf.mxu0 }
 0x535   : > { %v1989_v54 = vpop.f32.mrf.mxu1 }
 0x53a   : > { %v1966_v49 = vpop.f32.mrf.mxu3 }
 0x53b   : > { %v1798_v45 = vpop.f32.mrf.mxu0 }
 0x542   : > { %v2046_v52 = vpop.f32.mrf.mxu3 }
 0x543   : > { %v1847_v48 = vpop.f32.mrf.mxu0 }
 0x544   : > { %v1848_v14 = vadd.f32 %v1847_v48, %v1795_v42 }
 0x546   : > { %v1932_v18 = vadd.f32 %v1903_v43, %v1848_v14 }
 0x548   : > { %v1992_v10 = vadd.f32 %v1963_v46, %v1932_v18  ;;  %v2257_v46 = vld [vmem:[%s5773_s12] sm:$0x3] }
 0x54a   : > { %v2049_v55 = vpop.f32.mrf.mxu3 }
 0x54b   : > { %v1850_v50 = vpop.f32.mrf.mxu0 }
 0x54c   : > { %v2083_v57 = vpop.f32.mrf.mxu1  ;;  %v1851_v16 = vadd.f32 %v1850_v50, %v1798_v45  ;;  %v2256_v45 = vld [vmem:[%s7670_s22] sm:$0x3]  ;;  %s7602_s22 = smov 97  }
 0x54d   : > { %v2431_v50 = vperm.slane %v2256_v45, 1 }
 0x54e   : > { %v1934_v38 = vadd.f32 %v1906_v47, %v1851_v16 }
 0x54f   : > { %2697 = vrot.lane.b32.xlu0 %v2431_v50, %s5621_s23 }
 0x550   : > { %v1994_v20 = vadd.f32 %v1966_v49, %v1934_v38  ;;  %v2259_v49 = vld [vmem:[%s7669_s18 + $0x8] sm:$0xff] }
 0x553   : > { %v1926_v53 = vpop.f32.mrf.mxu0 }
 0x554   : > { %v2086_v60 = vpop.f32.mrf.mxu1  ;;  %v1933_v1 = vadd.f32 %v1926_v53, %v1871_v61 }
 0x556   : > { %v1993_v4 = vadd.f32 %v1986_v51, %v1933_v1  ;;  %v2430_v51 = vperm.slane %v2256_v45, 0 }
 0x558   : > { %v2053_v12 = vadd.f32 %v2046_v52, %v1993_v4  ;;  %v2599_v52 = vperm.slane %v2257_v46, 0  ;;  %2695 = vrot.lane.b32.xlu2 %v2430_v51, %s5621_s23  ;;  %2955 = vrot.lane.b32.xlu0 %v2430_v51, %s5623_s28  ;;  %s5630_s23 = smov 111  }
 0x55a   : > { %2601 = vrot.lane.b32.xlu1 %v2599_v52, %s5622_s26 }
 0x55b   : > { %v1929_v56 = vpop.f32.mrf.mxu0 }
 0x55c   : > { %v1935_v5 = vadd.f32 %v1929_v56, %v1874_v3  ;;  %v2166_v7 = vpop.f32.mrf.mxu1  ;;  %v2260_v56 = vld [vmem:[%s7669_s18 + $0x10] sm:$0xff] }
 0x55e   : > { %v1995_v15 = vadd.f32 %v1989_v54, %v1935_v5 }
 0x560   : > { %v2055_v0 = vadd.f32 %v2049_v55, %v1995_v15  ;;  %v2600_v55 = vperm.slane %v2257_v46, 1  ;;  %2434 = vrot.lane.b32.xlu0 %v2431_v50, %s5624_s1 }
 0x562   : > { %v2143_v59 = vpop.f32.mrf.mxu3  ;;  %2603 = vrot.lane.b32.xlu2 %v2600_v55, %s5622_s26  ;;  %2957 = vrot.lane.b32.xlu1 %v2431_v50, %s5623_s28  ;;  %s7636_s26 = smov 112   ;;  %s7634_s28 = smov 81  }
 0x563   : > { %v2023_v58 = vpop.f32.mrf.mxu0 }
 0x564   : > { %v2052_v21 = vadd.f32 %v2023_v58, %v1992_v10  ;;  %v2284_v58 = vpop.permute.xlu2 %2283 }
 0x565   : > { %v2169_v6 = vpop.f32.mrf.mxu1 }
 0x566   : > { %v2112_v29 = vadd.f32 %v2083_v57, %v2052_v21  ;;  %v2261_v57 = vld [vmem:[%s7669_s18 + $0x18] sm:$0xff] }
 0x568   : > { %v2172_v35 = vadd.f32 %v2143_v59, %v2112_v29  ;;  %3124 = vrot.lane.b32.xlu0 %v2600_v55, %s5626_s7 }
 0x56a   : > { %v2146_v63 = vpop.f32.mrf.mxu3  ;;  %2432 = vrot.lane.b32.xlu2 %v2430_v51, %s5624_s1  ;;  %2861 = vrot.lane.b32.xlu1 %v2599_v52, %s5625_s2  ;;  %s7640_s1 = smov 113  }
 0x56b   : > { %v2026_v62 = vpop.f32.mrf.mxu0 }
 0x56c   : > { %v2054_v25 = vadd.f32 %v2026_v62, %v1994_v20  ;;  %v2269_v59 = vpop.permute.xlu2 %2268 }
 0x56e   : > { %v2114_v31 = vadd.f32 %v2086_v60, %v2054_v25 }
 0x570   : > { %v2174_v37 = vadd.f32 %v2146_v63, %v2114_v31  ;;  %v2274_v63 = vpop.permute.xlu1 %2273 }
 0x572   : > { %v2226_v11 = vpop.f32.mrf.mxu3  ;;  %2863 = vrot.lane.b32.xlu2 %v2600_v55, %s5625_s2  ;;  %s7604_s2 = smov 95  }
 0x573   : > { %v2106_v8 = vpop.f32.mrf.mxu0 }
 0x574   : > { %v2113_v17 = vadd.f32 %v2106_v8, %v2053_v12  ;;  %v2279_v12 = vpop.permute.xlu0 %2278 }
 0x576   : > { %v2173_v44 = vadd.f32 %v2166_v7, %v2113_v17 }
 0x578   : > { %v2233_v13 = vadd.f32 %v2226_v11, %v2173_v44 }
 0x57a   : > { %v2229_v9 = vpop.f32.mrf.mxu3  ;;  %v2249_v26 = vadd.f32 %v2241_v24, %v2233_v13  ;;  %3122 = vrot.lane.b32.xlu2 %v2599_v52, %s5626_s7  ;;  %s5635_s7 = smov 96  }
 0x57b   : > { %v2109_v41 = vpop.f32.mrf.mxu0 }
 0x57c   : > { %v2115_v32 = vadd.f32 %v2109_v41, %v2055_v0  ;;  %v2253_v33 = vmax.f32 %v2249_v26, 0.0 }
 0x57e   : > { %v2175_v19 = vadd.f32 %v2169_v6, %v2115_v32 }
 0x580   : > { %v2235_v22 = vadd.f32 %v2229_v9, %v2175_v19 }
 0x582   : > { %v2251_v27 = vadd.f32 %v2246_v23, %v2235_v22 }
 0x583   : > { %v2203_v28 = vpop.f32.mrf.mxu0 }
 0x584   : > { %v2255_v30 = vmax.f32 %v2251_v27, 0.0  ;;  %v2232_v40 = vadd.f32 %v2203_v28, %v2172_v35 }
 0x586   : > { %2341 = vmatpush.msra.mxu0 %v2255_v30  ;;  %v2248_v47 = vadd.f32 %v2241_v24, %v2232_v40 }
 0x588   : > { %2342 = vmatpush.msra.mxu0 %v2253_v33  ;;  %v2252_v54 = vmax.f32 %v2248_v47, 0.0 }
 0x589   : > { %4888 = vmatmul.msk.f32.vlgmr.msra.gmra.mxu0 %vm959_vm1, %v2258_v34 }
 0x58b   : > { %v2206_v42 = vpop.f32.mrf.mxu0 }
 0x58c   : > { %v2234_v43 = vadd.f32 %v2206_v42, %v2174_v37 }
 0x58e   : > { %v2250_v48 = vadd.f32 %v2246_v23, %v2234_v43 }
 0x590   : > { %v2254_v53 = vmax.f32 %v2250_v48, 0.0 }
 0x591   : > { %4889 = vmatmul.msk.f32.gmra.mxu0 %vm959_vm1, %v2259_v49 }
 0x592   : > { %2312 = vmatpush.msra.mxu1 %v2254_v53 }
 0x594   : > { %2313 = vmatpush.msra.mxu1 %v2252_v54 }
 0x595   : > { %4884 = vmatmul.msk.f32.vlgmr.msra.gmra.mxu1 %vm959_vm1, %v2258_v34 }
 0x599   : > { %4890 = vmatmul.msk.f32.gmra.mxu0 %vm959_vm1, %v2260_v56 }
 0x59d   : > { %4885 = vmatmul.msk.f32.gmra.mxu1 %vm959_vm1, %v2259_v49 }
 0x5a1   : > { %4891 = vmatmul.msk.f32.gmra.mxu0 %vm959_vm1, %v2261_v57 }
 0x5a5   : > { %4886 = vmatmul.msk.f32.gmra.mxu1 %vm959_vm1, %v2260_v56 }
 0x5ad   : > { %4887 = vmatmul.msk.f32.gmra.mxu1 %vm959_vm1, %v2261_v57  ;;  %vm2561_vm1 = vcmask 916480  }
 0x5b2   : > { %v6158_v13 = vpop.permute.xlu2 %2695 }
 0x5bc   : > { %v6160_v19 = vpop.permute.xlu2 %2603 }
 0x5bd   : > { %7671 = vst [vmem:[#allocation23_spill] sm:$0xff] %v6160_v19 }
 0x5c1   : > { %v6168_v23 = vpop.permute.xlu0 %2697 }
 0x5c2   : > { %7673 = vst [vmem:[#allocation25_spill] sm:$0xff] %v6168_v23  ;;  %v6196_v43 = vsel %vm2699_vm9, %v6158_v13, %v6168_v23  ;;  %vm1535_vm9 = vcmask 122880  }
 0x5c4   : > { %v6162_v20 = vpop.permute.xlu2 %2432 }
 0x5ca   : > { %v6174_v26 = vpop.permute.xlu0 %2955 }
 0x5cb   : > { %7675 = vst [vmem:[#allocation27_spill] sm:$0xff] %v6174_v26 }
 0x5cc   : > { %v6164_v21 = vpop.permute.xlu2 %2863  ;;  %v6166_v22 = vpop.permute.xlu1 %2601 }
 0x5cd   : > { %7672 = vst [vmem:[#allocation24_spill] sm:$0xff] %v6164_v21  ;;  %v6209_v48 = vsel %vm2605_vm10, %v6166_v22, %v6160_v19 }
 0x5d2   : > { %v6179_v29 = vpop.permute.xlu0 %2434 }
 0x5d3   : > { %7677 = vst [vmem:[#allocation29_spill] sm:$0xff] %v6179_v29 }
 0x5d4   : > { %v6170_v24 = vpop.permute.xlu2 %3122  ;;  %v6172_v25 = vpop.permute.xlu1 %2957 }
 0x5d5   : > { %7674 = vst [vmem:[#allocation26_spill] sm:$0xff] %v6172_v25  ;;  %v6226_v55 = vsel %vm2959_vm11, %v6174_v26, %v6172_v25 }
 0x5da   : > { %v6182_v31 = vpop.permute.xlu0 %3124 }
 0x5db   : > { %7678 = vst [vmem:[#allocation30_spill] sm:$0xff] %v6182_v31 }
 0x5dc   : > { %v6177_v28 = vpop.permute.xlu1 %2861 }
 0x5dd   : > { %7676 = vst [vmem:[#allocation28_spill] sm:$0xff] %v6177_v28 }
 0x606   : > { %v2344_v60 = vpop.f32.mrf.mxu0 }
 0x607   : > { %v2345_v61 = vadd.f32 %v2344_v60, %v2269_v59 }
 0x609   : > { %v2357_v62 = vmax.f32 %v2345_v61, 0.0 }
 0x60b   : > { %2374 = vrot.lane.b32.xlu1 %v2357_v62, %s5627_s0  ;;  %v6245_v62 = vsel %vm2865_vm12, %v6177_v28, %v6164_v21 }
 0x60c   : > { %7679 = vst [vmem:[#allocation31_spill] sm:$0xff] %v6245_v62 }
 0x60e   : > { %v2347_v1 = vpop.f32.mrf.mxu0 }
 0x60f   : > { %v2348_v3 = vadd.f32 %v2347_v1, %v2274_v63 }
 0x611   : > { %v2359_v4 = vmax.f32 %v2348_v3, 0.0 }
 0x612   : > { %v2315_v5 = vpop.f32.mrf.mxu1 }
 0x613   : > { %v2316_v7 = vadd.f32 %v2315_v5, %v2269_v59  ;;  %2378 = vrot.lane.b32.xlu2 %v2359_v4, %s5627_s0 }
 0x615   : > { %v2356_v8 = vmax.f32 %v2316_v7, 0.0 }
 0x616   : > { %v2350_v11 = vpop.f32.mrf.mxu0 }
 0x617   : > { %2372 = vrot.lane.b32.xlu0 %v2356_v8, %s5627_s0  ;;  %v2351_v14 = vadd.f32 %v2350_v11, %v2279_v12 }
 0x619   : > { %v2361_v16 = vmax.f32 %v2351_v14, 0.0 }
 0x61a   : > { %v2318_v15 = vpop.f32.mrf.mxu1 }
 0x61b   : > { %v2319_v17 = vadd.f32 %v2318_v15, %v2274_v63 }
 0x61d   : > { %v2358_v18 = vmax.f32 %v2319_v17, 0.0 }
 0x61e   : > { %v2353_v0 = vpop.f32.mrf.mxu0 }
 0x61f   : > { %2376 = vrot.lane.b32.xlu1 %v2358_v18, %s5627_s0  ;;  %2382 = vrot.lane.b32.xlu0 %v2361_v16, %s5627_s0  ;;  %v2354_v44 = vadd.f32 %v2353_v0, %v2284_v58 }
 0x621   : > { %v2363_v32 = vmax.f32 %v2354_v44, 0.0 }
 0x622   : > { %v2321_v41 = vpop.f32.mrf.mxu1 }
 0x623   : > { %v2322_v38 = vadd.f32 %v2321_v41, %v2279_v12 }
 0x625   : > { %v2360_v2 = vmax.f32 %v2322_v38, 0.0 }
 0x627   : > { %2380 = vrot.lane.b32.xlu2 %v2360_v2, %s5627_s0  ;;  %2386 = vrot.lane.b32.xlu1 %v2363_v32, %s5627_s0 }
 0x62a   : > { %v2324_v6 = vpop.f32.mrf.mxu1 }
 0x62b   : > { %v2325_v9 = vadd.f32 %v2324_v6, %v2284_v58  ;;  %v6237_v58 = vsel %vm997_vm4, %v6162_v20, %v6179_v29  ;;  %vm2488_vm4 = vcmask 924672  }
 0x62d   : > { %v2362_v10 = vmax.f32 %v2325_v9, 0.0 }
 0x62f   : > { %2384 = vrot.lane.b32.xlu0 %v2362_v10, %s5627_s0 }
 0x66d   : > { %v2379_v27 = vpop.permute.xlu2 %2378 }
 0x66e   : > { %2410 = vst.msk [vmem:[#allocation3 + $0x28] sm:$0xff] %vm945_vm6, %v2379_v27 }
 0x67d   : > { %v2375_v30 = vpop.permute.xlu1 %2374 }
 0x67e   : > { %2407 = vst.msk [vmem:[#allocation3 + $0x10] sm:$0xff] %vm945_vm6, %v2375_v30 }
 0x681   : > { %v6184_v33 = vpop.permute.xlu2 %2380 }
 0x682   : > { %2411 = vst.msk [vmem:[#allocation3 + $0x30] sm:$0xff] %vm2404_vm8, %v6184_v33 }
 0x689   : > { %v2373_v34 = vpop.permute.xlu0 %2372  ;;  %v6277_v0 = vld [vmem:[#allocation3 + $0x30] sm:$0xff] }
 0x68a   : > { %2405 = vst.msk [vmem:[#allocation3] sm:$0xff] %vm2404_vm8, %v2373_v34  ;;  %v6190_v35 = vsel %vm945_vm6, %v2373_v34, %v2375_v30 }
 0x68b   : > { %v2705_v47 = vmul.f32 %v6196_v43, %v6190_v35  ;;  %v2611_v50 = vmul.f32 %v6209_v48, %v6190_v35  ;;  %v2965_v57 = vmul.f32 %v6226_v55, %v6190_v35  ;;  %v2441_v59 = vmul.f32 %v6237_v58, %v6190_v35 }
 0x68c   : > { %v2871_v4 = vmul.f32 %v6245_v62, %v6190_v35 }
 0x691   : > { %v2377_v37 = vpop.permute.xlu1 %2376  ;;  %v2383_v40 = vpop.permute.xlu0 %2382  ;;  %v6192_v42 = vld [vmem:[#allocation3] sm:$0xff] }
 0x692   : > { %2408 = vst.msk [vmem:[#allocation3 + $0x18] sm:$0xff] %vm2404_vm8, %v2377_v37  ;;  %v6201_v45 = vpack.i.bf16 %v6190_v35, %v6192_v42  ;;  %v2704_v46 = vmul.f32 %v6192_v42, %v6158_v13  ;;  %v2610_v49 = vmul.f32 %v6192_v42, %v6166_v22  ;;  %v2964_v53 = vmul.f32 %v6192_v42, %v6174_v26 }
 0x693   : > { %2413 = vst.msk [vmem:[#allocation3 + $0x40] sm:$0xff] %vm945_vm6, %v2383_v40  ;;  %v2440_v56 = vmul.f32 %v6192_v42, %v6162_v20  ;;  %v2870_v63 = vmul.f32 %v6192_v42, %v6177_v28  ;;  %v6254_v3 = vsel %vm945_vm6, %v2377_v37, %v2379_v27  ;;  %v6274_v16 = vsel %vm945_vm6, %v6184_v33, %v2383_v40 }
 0x694   : > { %4988 = vrot.lane.b32.xlu2 %v6201_v45, %s7638_s16  ;;  %v4997_v51 = vpack.i.bf16 %v2705_v47, %v2704_v46  ;;  %v5002_v52 = vpack.i.bf16 %v2611_v50, %v2610_v49  ;;  %v5007_v60 = vpack.i.bf16 %v2965_v57, %v2964_v53  ;;  %v2968_v11 = vmul.f32 %v6226_v55, %v6254_v3 }
 0x695   : > { %v5012_v61 = vpack.i.bf16 %v2441_v59, %v2440_v56  ;;  %v5017_v8 = vpack.i.bf16 %v2871_v4, %v2870_v63  ;;  %v2708_v17 = vmul.f32 %v6196_v43, %v6254_v3  ;;  %v5057_v44 = vpack.i.bf16 %v6274_v16, %v6277_v0 }
 0x696   : > { %4998 = vrot.lane.b32.xlu0 %v4997_v51, %s7602_s22  ;;  %5003 = vrot.lane.b32.xlu1 %v5002_v52, %s5630_s23  ;;  %v2614_v38 = vmul.f32 %v6209_v48, %v6254_v3  ;;  %v2874_v6 = vmul.f32 %v6245_v62, %v6254_v3  ;;  %v2444_v27 = vmul.f32 %v6237_v58, %v6254_v3 }
 0x697   : > { %v2617_v30 = vmul.f32 %v6209_v48, %v6274_v16  ;;  %v2711_v33 = vmul.f32 %v6196_v43, %v6274_v16  ;;  %v2616_v37 = vmul.f32 %v6277_v0, %v6166_v22  ;;  %v2710_v40 = vmul.f32 %v6277_v0, %v6158_v13 }
 0x698   : > { %v2447_v49 = vmul.f32 %v6237_v58, %v6274_v16  ;;  %v2877_v50 = vmul.f32 %v6245_v62, %v6274_v16  ;;  %v2446_v51 = vmul.f32 %v6277_v0, %v6162_v20  ;;  %v2876_v52 = vmul.f32 %v6277_v0, %v6177_v28 }
 0x699   : > { %v6222_v54 = vpop.permute.xlu1 %2386  ;;  %v6250_v1 = vld [vmem:[#allocation3 + $0x18] sm:$0xff]  ;;  %v5077_v46 = vpack.i.bf16 %v2617_v30, %v2616_v37  ;;  %v5072_v47 = vpack.i.bf16 %v2711_v33, %v2710_v40  ;;  %v2971_v57 = vmul.f32 %v6226_v55, %v6274_v16  ;;  %v2970_v59 = vmul.f32 %v6277_v0, %v6174_v26 }
 0x69a   : > { %2416 = vst.msk [vmem:[#allocation3 + $0x58] sm:$0xff] %vm945_vm6, %v6222_v54  ;;  %v2967_v7 = vmul.f32 %v6250_v1, %v6174_v26  ;;  %v5022_v12 = vpack.i.bf16 %v6254_v3, %v6250_v1  ;;  %v2707_v15 = vmul.f32 %v6250_v1, %v6158_v13  ;;  %v2613_v41 = vmul.f32 %v6250_v1, %v6166_v22 }
 0x69b   : > { %v2873_v32 = vmul.f32 %v6250_v1, %v6177_v28  ;;  %v2443_v10 = vmul.f32 %v6250_v1, %v6162_v20  ;;  %v5087_v53 = vpack.i.bf16 %v2447_v49, %v2446_v51  ;;  %v5092_v56 = vpack.i.bf16 %v2877_v50, %v2876_v52 }
 0x69c   : > { %4993 = vrot.lane.b32.xlu2 %v6201_v45, %s7636_s26  ;;  %v5042_v14 = vpack.i.bf16 %v2968_v11, %v2967_v7  ;;  %v5032_v18 = vpack.i.bf16 %v2708_v17, %v2707_v15  ;;  %v5037_v2 = vpack.i.bf16 %v2614_v38, %v2613_v41  ;;  %v6333_v7 = vld [vmem:[#allocation3 + $0x40] sm:$0xff] }
 0x69d   : > { %v5052_v9 = vpack.i.bf16 %v2874_v6, %v2873_v32  ;;  %v5047_v34 = vpack.i.bf16 %v2444_v27, %v2443_v10  ;;  %v2972_v32 = vmul.f32 %v6333_v7, %v6172_v25  ;;  %v2712_v10 = vmul.f32 %v6333_v7, %v6168_v23 }
 0x69e   : > { %5008 = vrot.lane.b32.xlu0 %v5007_v60, %s7634_s28  ;;  %5013 = vrot.lane.b32.xlu1 %v5012_v61, %s7640_s1  ;;  %v5082_v61 = vpack.i.bf16 %v2971_v57, %v2970_v59  ;;  %v2618_v59 = vmul.f32 %v6333_v7, %v6160_v19 }
 0x6a1   : > { %v2385_v5 = vpop.permute.xlu0 %2384  ;;  %v6326_v63 = vld [vmem:[#allocation3 + $0x58] sm:$0xff] }
 0x6a2   : > { %2414 = vst.msk [vmem:[#allocation3 + $0x48] sm:$0xff] %vm2404_vm8, %v2385_v5  ;;  %v6330_v4 = vsel %vm945_vm6, %v2385_v5, %v6222_v54  ;;  %v6339_v11 = vpack.i.bf16 %v6333_v7, %v6326_v63  ;;  %v6346_v54 = vld [vmem:[#allocation3 + $0x10] sm:$0xff]  ;;  %v6349_v5 = vld [vmem:[#allocation3 + $0x28] sm:$0xff]  ;;  %v2975_v38 = vmul.f32 %v6326_v63, %v6172_v25 }
 0x6a3   : > { %v2706_v15 = vmul.f32 %v6346_v54, %v6168_v23  ;;  %v6357_v17 = vpack.i.bf16 %v6346_v54, %v6349_v5  ;;  %v2620_v27 = vmul.f32 %v6209_v48, %v6330_v4  ;;  %v2880_v37 = vmul.f32 %v6245_v62, %v6330_v4 }
 0x6a4   : > { %5018 = vrot.lane.b32.xlu2 %v5017_v8, %s7604_s2  ;;  %v2612_v51 = vmul.f32 %v6346_v54, %v6160_v19  ;;  %v2615_v52 = vmul.f32 %v6349_v5, %v6160_v19 }
 0x6a6   : > { %5023 = vrot.lane.b32.xlu0 %v5022_v12, %s7638_s16  ;;  %5043 = vrot.lane.b32.xlu1 %v5042_v14, %s7634_s28  ;;  %v5182_v57 = vpack.i.bf16 %v2612_v51, %v2615_v52  ;;  %v3131_v52 = vmul.f32 %v6170_v24, %v6192_v42 }
 0x6a9   : > { %v6324_v60 = vld [vmem:[#allocation3 + $0x48] sm:$0xff] }
 0x6aa   : > { %v5107_v8 = vpack.i.bf16 %v6330_v4, %v6324_v60  ;;  %v2713_v14 = vmul.f32 %v6158_v13, %v6324_v60  ;;  %v2619_v6 = vmul.f32 %v6166_v22, %v6324_v60  ;;  %v2973_v40 = vmul.f32 %v6174_v26, %v6324_v60 }
 0x6ac   : > { %5033 = vrot.lane.b32.xlu2 %v5032_v18, %s7602_s22  ;;  %v2714_v18 = vmul.f32 %v6196_v43, %v6330_v4  ;;  %v5157_v33 = vpack.i.bf16 %v2620_v27, %v2619_v6 }
 0x6ae   : > { %5028 = vrot.lane.b32.xlu0 %v5022_v12, %s7636_s26  ;;  %5058 = vrot.lane.b32.xlu1 %v5057_v44, %s7638_s16 }
 0x6b4   : > { %5038 = vrot.lane.b32.xlu2 %v5037_v2, %s5630_s23  ;;  %v2715_v2 = vmul.f32 %v6326_v63, %v6168_v23 }
 0x6b6   : > { %5053 = vrot.lane.b32.xlu0 %v5052_v9, %s7604_s2  ;;  %5063 = vrot.lane.b32.xlu1 %v5057_v44, %s7636_s26  ;;  %v5147_v9 = vpack.i.bf16 %v2972_v32, %v2975_v38  ;;  %v5122_v30 = vpack.i.bf16 %v2712_v10, %v2715_v2  ;;  %v2878_v38 = vmul.f32 %v6333_v7, %v6164_v21 }
 0x6b7   : > { %v2969_v32 = vmul.f32 %v6349_v5, %v6172_v25 }
 0x6bc   : > { %5048 = vrot.lane.b32.xlu2 %v5047_v34, %s7640_s1  ;;  %v2879_v34 = vmul.f32 %v6177_v28, %v6324_v60 }
 0x6be   : > { %5078 = vrot.lane.b32.xlu0 %v5077_v46, %s5630_s23  ;;  %5073 = vrot.lane.b32.xlu1 %v5072_v47, %s7602_s22  ;;  %v5177_v46 = vpack.i.bf16 %v2880_v37, %v2879_v34  ;;  %v2974_v47 = vmul.f32 %v6226_v55, %v6330_v4  ;;  %v3140_v37 = vmul.f32 %v6170_v24, %v6324_v60 }
 0x6c0   : > { %v5162_v49 = vpack.i.bf16 %v2974_v47, %v2973_v40  ;;  %v2451_v40 = vmul.f32 %v6326_v63, %v6179_v29 }
 0x6c4   : > { %5068 = vrot.lane.b32.xlu2 %v5057_v44, %s5635_s7  ;;  %v2709_v44 = vmul.f32 %v6349_v5, %v6168_v23 }
 0x6c6   : > { %5088 = vrot.lane.b32.xlu0 %v5087_v53, %s7640_s1  ;;  %5093 = vrot.lane.b32.xlu1 %v5092_v56, %s7604_s2  ;;  %v5142_v41 = vpack.i.bf16 %v2706_v15, %v2709_v44  ;;  %v2621_v53 = vmul.f32 %v6326_v63, %v6160_v19  ;;  %v2449_v56 = vmul.f32 %v6324_v60, %v6162_v20 }
 0x6c7   : > { %v2872_v15 = vmul.f32 %v6346_v54, %v6164_v21  ;;  %v2881_v44 = vmul.f32 %v6326_v63, %v6164_v21 }
 0x6c9   : > { %v5187_v2 = vpack.i.bf16 %v2878_v38, %v2881_v44 }
 0x6cc   : > { %5083 = vrot.lane.b32.xlu2 %v5082_v61, %s7634_s28  ;;  %v5152_v61 = vpack.i.bf16 %v2618_v59, %v2621_v53 }
 0x6ce   : > { %5108 = vrot.lane.b32.xlu0 %v5107_v8, %s7636_s26  ;;  %5098 = vrot.lane.b32.xlu1 %v6339_v11, %s7638_s16 }
 0x6d4   : > { %5103 = vrot.lane.b32.xlu2 %v5107_v8, %s7638_s16 }
 0x6d6   : > { %5113 = vrot.lane.b32.xlu0 %v5107_v8, %s5635_s7  ;;  %5128 = vrot.lane.b32.xlu1 %v5022_v12, %s5635_s7  ;;  %v5117_v12 = vpack.i.bf16 %v2714_v18, %v2713_v14  ;;  %v2875_v18 = vmul.f32 %v6349_v5, %v6164_v21 }
 0x6dc   : > { %5133 = vrot.lane.b32.xlu2 %v6357_v17, %s7638_s16 }
 0x6de   : > { %5118 = vrot.lane.b32.xlu0 %v5117_v12, %s7602_s22  ;;  %5143 = vrot.lane.b32.xlu1 %v5142_v41, %s7602_s22  ;;  %v2966_v12 = vmul.f32 %v6346_v54, %v6172_v25  ;;  %v5197_v41 = vpack.i.bf16 %v2872_v15, %v2875_v18  ;;  %v3139_v15 = vmul.f32 %v6182_v31, %v6333_v7 }
 0x6df   : > { %v2445_v18 = vmul.f32 %v6349_v5, %v6179_v29 }
 0x6e0   : > { %v5172_v6 = vpack.i.bf16 %v2966_v12, %v2969_v32 }
 0x6e4   : > { %5148 = vrot.lane.b32.xlu2 %v5147_v9, %s7634_s28  ;;  %v6428_v9 = vsel %vm3126_vm13, %v6170_v24, %v6182_v31 }
 0x6e5   : > { %v3138_v27 = vmul.f32 %v6428_v9, %v6274_v16  ;;  %v3132_v53 = vmul.f32 %v6428_v9, %v6190_v35 }
 0x6e6   : > { %5123 = vrot.lane.b32.xlu0 %v5122_v30, %s7602_s22  ;;  %5158 = vrot.lane.b32.xlu1 %v5157_v33, %s5630_s23  ;;  %v3137_v30 = vmul.f32 %v6170_v24, %v6277_v0  ;;  %s7632_s22 = smov 79   ;;  %v3141_v0 = vmul.f32 %v6428_v9, %v6330_v4 }
 0x6e7   : > { %v5242_v59 = vpack.i.bf16 %v3132_v53, %v3131_v52 }
 0x6e8   : > { %v5222_v33 = vpack.i.bf16 %v3138_v27, %v3137_v30  ;;  %v5237_v47 = vpack.i.bf16 %v3141_v0, %v3140_v37 }
 0x6ec   : > { %5178 = vrot.lane.b32.xlu2 %v5177_v46, %s7604_s2 }
 0x6ee   : > { %v6391_v50 = vpop.permute.xlu2 %4988  ;;  %5138 = vrot.lane.b32.xlu0 %v6201_v45, %s5635_s7  ;;  %5163 = vrot.lane.b32.xlu1 %v5162_v49, %s7634_s28  ;;  %v2450_v45 = vmul.f32 %v6237_v58, %v6330_v4  ;;  %v2448_v49 = vmul.f32 %v6333_v7, %v6179_v29  ;;  %v3133_v7 = vmul.f32 %v6182_v31, %v6346_v54 }
 0x6f0   : > { %v5167_v8 = vpack.i.bf16 %v2450_v45, %v2449_v56  ;;  %v5212_v60 = vpack.i.bf16 %v2448_v49, %v2451_v40  ;;  %v3134_v56 = vmul.f32 %v6170_v24, %v6250_v1  ;;  %v3135_v45 = vmul.f32 %v6428_v9, %v6254_v3 }
 0x6f1   : > { %v3142_v1 = vmul.f32 %v6182_v31, %v6326_v63 }
 0x6f2   : > { %v5227_v42 = vpack.i.bf16 %v3135_v45, %v3134_v56  ;;  %v4990_v45 = vunpack.i.l.bf16 %v6391_v50 }
 0x6f4   : > { %5183 = vrot.lane.b32.xlu2 %v5182_v57, %s5630_s23 }
 0x6f6   : > { %v6409_v14 = vpop.permute.xlu2 %4993  ;;  %5153 = vrot.lane.b32.xlu0 %v5152_v61, %s5630_s23  ;;  %5168 = vrot.lane.b32.xlu1 %v5167_v8, %s7640_s1  ;;  %v2442_v8 = vmul.f32 %v6346_v54, %v6179_v29 }
 0x6f8   : > { %v5232_v44 = vpack.i.bf16 %v2442_v8, %v2445_v18 }
 0x6fc   : > { %5198 = vrot.lane.b32.xlu2 %v5197_v41, %s7604_s2 }
 0x6fe   : > { %v6430_v10 = vpop.permute.xlu2 %5018  ;;  %5188 = vrot.lane.b32.xlu0 %v5187_v2, %s7604_s2  ;;  %5173 = vrot.lane.b32.xlu1 %v5172_v6, %s7634_s28  ;;  %s7680_s2 = sld [smem:[#allocation15_spill]]  ;;  %v3136_v2 = vmul.f32 %v6182_v31, %v6349_v5 }
 0x700   : > { %v5252_v6 = vpack.i.bf16 %v3133_v7, %v3136_v2 }
 0x704   : > { %5223 = vrot.lane.b32.xlu2 %v5222_v33, %s7632_s22  ;;  %v3291_v3 = vld [vmem:[%s7680_s2 + $0x18] sm:$0xff]  ;;  %v3288_v38 = vld [vmem:[%s7680_s2] sm:$0xff]  ;;  %v3290_v32 = vld [vmem:[%s7680_s2 + $0x10] sm:$0xff] }
 0x705   : > { %v3289_v37 = vld [vmem:[%s7680_s2 + $0x8] sm:$0xff] }
 0x706   : > { %v6439_v34 = vpop.permute.xlu2 %5033  ;;  %5203 = vrot.lane.b32.xlu0 %v6357_v17, %s7636_s26  ;;  %5193 = vrot.lane.b32.xlu1 %v6339_v11, %s7636_s26 }
 0x708   : > { %v6447_v16 = vpop.permute.xlu0 %4998  ;;  %v6453_v46 = vpop.permute.xlu1 %5003 }
 0x70c   : > { %5238 = vrot.lane.b32.xlu2 %v5237_v47, %s7632_s22 }
 0x70e   : > { %v6458_v51 = vpop.permute.xlu2 %5038  ;;  %5213 = vrot.lane.b32.xlu0 %v5212_v60, %s7640_s1  ;;  %5208 = vrot.lane.b32.xlu1 %v6339_v11, %s5635_s7 }
 0x710   : > { %v6465_v4 = vpop.permute.xlu0 %5008  ;;  %v6471_v57 = vpop.permute.xlu1 %5013 }
 0x714   : > { %5243 = vrot.lane.b32.xlu2 %v5242_v59, %s7632_s22  ;;  %v7606_v59 = vunpack.i.h.bf16 %v6391_v50 }
 0x716   : > { %v6476_v61 = vpop.permute.xlu2 %5048  ;;  %5228 = vrot.lane.b32.xlu0 %v5227_v42, %s7632_s22  ;;  %5218 = vrot.lane.b32.xlu1 %v6357_v17, %s5635_s7  ;;  %v5247_v17 = vpack.i.bf16 %v3139_v15, %v3142_v1  ;;  %v3086_v8 = vsel %vm3085_vm14, %v4990_v45, %v7606_v59  ;;  %v5001_v59 = vunpack.i.h.bf16 %v6447_v16 }
 0x717   : > { %v5050_v28 = vunpack.i.l.bf16 %v6476_v61 }
 0x718   : > { %v6481_v35 = vpop.permute.xlu0 %5023  ;;  %v6485_v11 = vpop.permute.xlu1 %5043 }
 0x719   : > { %v7607_v60 = vunpack.i.h.bf16 %v6481_v35  ;;  %v5025_v52 = vunpack.i.l.bf16 %v6481_v35  ;;  %v5045_v25 = vunpack.i.l.bf16 %v6485_v11 }
 0x71b   : > { %v3088_v1 = vsel %vm3085_vm14, %v5025_v52, %v7607_v60  ;;  %v5000_v60 = vunpack.i.l.bf16 %v6447_v16 }
 0x71c   : > { %3309 = vperm.xlu2 %4984, %v3291_v3  }
 0x71d   : > { %v2753_v16 = vsel %vm2752_vm15, %v5000_v60, %v5001_v59 }
 0x71e   : > { %v6494_v12 = vpop.permute.xlu2 %5068  ;;  %5248 = vrot.lane.b32.xlu0 %v5247_v17, %s7632_s22  ;;  %5233 = vrot.lane.b32.xlu1 %v5232_v44, %s7640_s1 }
 0x720   : > { %v6498_v63 = vpop.permute.xlu0 %5028  ;;  %v6500_v41 = vpop.permute.xlu1 %5058 }
 0x721   : > { %v7608_v54 = vunpack.i.h.bf16 %v6500_v41  ;;  %v5060_v40 = vunpack.i.l.bf16 %v6500_v41 }
 0x723   : > { %v3090_v42 = vsel %vm3085_vm14, %v5060_v40, %v7608_v54 }
 0x724   : > { %3294 = vperm.xlu2 %4984, %v3288_v38  }
 0x726   : > { %v6508_v27 = vpop.permute.xlu2 %5083  ;;  %3304 = vperm.xlu0 %4985, %v3290_v32   ;;  %5253 = vrot.lane.b32.xlu1 %v5252_v6, %s7632_s22  ;;  %s7696_s22 = sld [smem:[#allocation14_spill]] }
 0x728   : > { %v6511_v30 = vpop.permute.xlu0 %5053  ;;  %v6513_v33 = vpop.permute.xlu1 %5063 }
 0x72e   : > { %v6516_v0 = vpop.permute.xlu2 %5103  ;;  %3299 = vperm.xlu1 %4986, %v3289_v37  }
 0x72f   : > { %v7609_v5 = vunpack.i.h.bf16 %v6516_v0  ;;  %v5105_v47 = vunpack.i.l.bf16 %v6516_v0 }
 0x730   : > { %v6522_v49 = vpop.permute.xlu0 %5078  ;;  %v6526_v53 = vpop.permute.xlu1 %5073 }
 0x731   : > { %v3092_v56 = vsel %vm3085_vm14, %v5105_v47, %v7609_v5  ;;  %v5076_v40 = vunpack.i.h.bf16 %v6526_v53  ;;  %v5075_v47 = vunpack.i.l.bf16 %v6526_v53  ;;  %v5080_v29 = vunpack.i.l.bf16 %v6522_v49 }
 0x732   : > { %3353 = vmatpush.msrb.mxu1 %v3092_v56 }
 0x733   : > { %v2757_v54 = vsel %vm2752_vm15, %v5075_v47, %v5076_v40  ;;  %v4995_v47 = vunpack.i.l.bf16 %v6409_v14 }
 0x734   : > { %3354 = vmatpush.msrb.mxu1 %v3090_v42  ;;  %v5036_v42 = vunpack.i.h.bf16 %v6439_v34 }
 0x736   : > { %v6539_v3 = vpop.permute.xlu2 %5133  ;;  %3355 = vmatpush.msrb.mxu1 %v3088_v1  ;;  %v5035_v1 = vunpack.i.l.bf16 %v6439_v34  ;;  %v5005_v34 = vunpack.i.l.bf16 %v6453_v46 }
 0x738   : > { %v6544_v15 = vpop.permute.xlu0 %5088  ;;  %3356 = vmatpush.msrb.mxu1 %v3086_v8  ;;  %v6546_v18 = vpop.permute.xlu1 %5093  ;;  %v2755_v53 = vsel %vm2752_vm15, %v5035_v1, %v5036_v42 }
 0x73e   : > { %v6548_v17 = vpop.permute.xlu2 %5148 }
 0x740   : > { %v6550_v44 = vpop.permute.xlu0 %5108  ;;  %v6552_v38 = vpop.permute.xlu1 %5098 }
 0x746   : > { %v6554_v7 = vpop.permute.xlu2 %5178 }
 0x747   : > { %v7692_v26 = vunpack.i.h.bf16 %v6554_v7 }
 0x748   : > { %v6556_v32 = vpop.permute.xlu0 %5113  ;;  %v6558_v2 = vpop.permute.xlu1 %5128 }
 0x74e   : > { %v6560_v6 = vpop.permute.xlu2 %5183 }
 0x74f   : > { %v5185_v62 = vunpack.i.l.bf16 %v6560_v6 }
 0x750   : > { %v5119_v37 = vpop.permute.xlu0 %5118  ;;  %v6564_v52 = vpop.permute.xlu1 %5143 }
 0x751   : > { %v5121_v56 = vunpack.i.h.bf16 %v5119_v37  ;;  %v5120_v45 = vunpack.i.l.bf16 %v5119_v37  ;;  %v5040_v37 = vunpack.i.l.bf16 %v6458_v51  ;;  %v5145_v21 = vunpack.i.l.bf16 %v6564_v52 }
 0x753   : > { %v2759_v8 = vsel %vm2752_vm15, %v5120_v45, %v5121_v56 }
 0x754   : > { %3324 = vmatpush.msra.mxu3 %v2759_v8 }
 0x756   : > { %v6572_v5 = vpop.permute.xlu2 %5198  ;;  %3325 = vmatpush.msra.mxu3 %v2757_v54 }
 0x758   : > { %v5124_v36 = vpop.permute.xlu0 %5123  ;;  %3326 = vmatpush.msra.mxu3 %v2755_v53  ;;  %v6577_v45 = vpop.permute.xlu1 %5158 }
 0x759   : > { %v5126_v8 = vunpack.i.h.bf16 %v5124_v36  ;;  %v5125_v39 = vunpack.i.l.bf16 %v5124_v36  ;;  %v7620_v54 = vunpack.i.h.bf16 %v6577_v45  ;;  %v5160_v1 = vunpack.i.l.bf16 %v6577_v45 }
 0x75a   : > { %3327 = vmatpush.msra.mxu3 %v2753_v16  ;;  %v5146_v16 = vunpack.i.h.bf16 %v6564_v52  ;;  %v5085_v52 = vunpack.i.l.bf16 %v6508_v27 }
 0x75b   : > { %v2760_v19 = vsel %vm2752_vm15, %v5121_v56, %v5125_v39  ;;  %v2665_v36 = vsel %vm2658_vm0, %v5160_v1, %v7620_v54  ;;  %v2758_v53 = vsel %vm2752_vm15, %v5076_v40, %v5126_v8  ;;  %v7681_v39 = vunpack.i.h.bf16 %v6522_v49 }
 0x75c   : > { %3411 = vmatpush.msrb.mxu0 %v2760_v19  ;;  %3328 = vmatpush.msra.mxu3 %v2665_v36  ;;  %v7682_v19 = vunpack.i.h.bf16 %v6453_v46  ;;  %v5010_v54 = vunpack.i.l.bf16 %v6465_v4  ;;  %v7683_v40 = vunpack.i.h.bf16 %v6458_v51  ;;  %v2756_v36 = vsel %vm2752_vm15, %v5036_v42, %v5145_v21 }
 0x75d   : > { %v2663_v56 = vsel %vm2658_vm0, %v5080_v29, %v7681_v39  ;;  %v2754_v21 = vsel %vm2752_vm15, %v5001_v59, %v5146_v16  ;;  %v7684_v16 = vunpack.i.h.bf16 %v6409_v14 }
 0x75e   : > { %v6596_v23 = vpop.permute.xlu2 %5223  ;;  %3412 = vmatpush.msrb.mxu0 %v2758_v53  ;;  %v2659_v1 = vsel %vm2658_vm0, %v5005_v34, %v7682_v19  ;;  %3329 = vmatpush.msra.mxu3 %v2663_v56  ;;  %v2661_v8 = vsel %vm2658_vm0, %v5040_v37, %v7683_v40  ;;  %v7621_v53 = vunpack.i.h.bf16 %v6550_v44  ;;  %v5110_v34 = vunpack.i.l.bf16 %v6550_v44 }
 0x75f   : > { %v5030_v19 = vunpack.i.l.bf16 %v6498_v63  ;;  %v5065_v40 = vunpack.i.l.bf16 %v6513_v33  ;;  %v2562_v56 = vsel %vm2561_vm1, %v4995_v47, %v7684_v16  ;;  %v7689_v47 = vunpack.i.h.bf16 %v6485_v11 }
 0x760   : > { %v6614_v39 = vpop.permute.xlu0 %5138  ;;  %3413 = vmatpush.msrb.mxu0 %v2756_v36  ;;  %v6619_v37 = vpop.permute.xlu1 %5163  ;;  %3330 = vmatpush.msra.mxu3 %v2661_v8  ;;  %v2568_v36 = vsel %vm2561_vm1, %v5110_v34, %v7621_v53  ;;  %v7686_v34 = vunpack.i.h.bf16 %v6513_v33  ;;  %v7687_v53 = vunpack.i.h.bf16 %v6508_v27 }
 0x761   : > { %v7622_v29 = vunpack.i.h.bf16 %v6619_v37  ;;  %v5165_v60 = vunpack.i.l.bf16 %v6619_v37  ;;  %v3015_v16 = vsel %vm3012_vm2, %v5045_v25, %v7689_v47  ;;  %v5090_v25 = vunpack.i.l.bf16 %v6544_v15 }
 0x762   : > { %3414 = vmatpush.msrb.mxu0 %v2754_v21  ;;  %3331 = vmatpush.msra.mxu3 %v2659_v1  ;;  %v7685_v21 = vunpack.i.h.bf16 %v6465_v4 }
 0x763   : > { %v3019_v8 = vsel %vm3012_vm2, %v5165_v60, %v7622_v29  ;;  %v2566_v60 = vsel %vm2561_vm1, %v5065_v40, %v7686_v34 }
 0x764   : > { %3332 = vmatpush.msra.mxu3 %v2568_v36  ;;  %3357 = vmatpush.msrb.mxu1 %v3019_v8  ;;  %v3013_v1 = vsel %vm3012_vm2, %v5010_v54, %v7685_v21  ;;  %v3017_v36 = vsel %vm3012_vm2, %v5085_v52, %v7687_v53  ;;  %v7688_v8 = vunpack.i.h.bf16 %v6498_v63  ;;  %v5225_v21 = vunpack.i.l.bf16 %v6596_v23 }
 0x765   : > { %v5095_v52 = vunpack.i.l.bf16 %v6546_v18 }
 0x766   : > { %v6639_v42 = vpop.permute.xlu2 %5238  ;;  %v2564_v29 = vsel %vm2561_vm1, %v5030_v19, %v7688_v8  ;;  %3333 = vmatpush.msra.mxu3 %v2566_v60  ;;  %3358 = vmatpush.msrb.mxu1 %v3017_v36  ;;  %v5180_v19 = vunpack.i.l.bf16 %v6554_v7  ;;  %v5055_v36 = vunpack.i.l.bf16 %v6511_v30 }
 0x767   : > { %v7629_v59 = vunpack.i.h.bf16 %v6639_v42  ;;  %v5240_v40 = vunpack.i.l.bf16 %v6639_v42 }
 0x768   : > { %v5154_v34 = vpop.permute.xlu0 %5153  ;;  %v6661_v8 = vpop.permute.xlu1 %5168  ;;  %3334 = vmatpush.msra.mxu3 %v2564_v29  ;;  %3359 = vmatpush.msrb.mxu1 %v3015_v16  ;;  %v7690_v29 = vunpack.i.h.bf16 %v6596_v23 }
 0x769   : > { %v5156_v47 = vunpack.i.h.bf16 %v5154_v34  ;;  %v5155_v54 = vunpack.i.l.bf16 %v5154_v34  ;;  %v3186_v60 = vsel %vm3179_vm7, %v5240_v40, %v7629_v59  ;;  %v5171_v53 = vunpack.i.h.bf16 %v6661_v8 }
 0x76a   : > { %v5170_v31 = vunpack.i.l.bf16 %v6661_v8  ;;  %3394 = vmatpush.msra.mxu2 %v3186_v60  ;;  %3335 = vmatpush.msra.mxu3 %v2562_v56  ;;  %v3184_v16 = vsel %vm3179_vm7, %v5225_v21, %v7690_v29  ;;  %v7691_v40 = vunpack.i.h.bf16 %v6577_v45  ;;  %v5056_v59 = vunpack.i.h.bf16 %v6511_v30 }
 0x76b   : > { %3360 = vmatpush.msrb.mxu1 %v3013_v1  ;;  %v2925_v56 = vsel %vm2918_vm3, %v5180_v19, %v7692_v26  ;;  %v5021_v1 = vunpack.i.h.bf16 %v6430_v10  ;;  %v5020_v45 = vunpack.i.l.bf16 %v6430_v10  ;;  %v7693_v21 = vunpack.i.h.bf16 %v6522_v49 }
 0x76c   : > { %v2666_v34 = vsel %vm2658_vm0, %v7691_v40, %v5155_v54  ;;  %v2495_v60 = vsel %vm2488_vm4, %v5170_v31, %v5171_v53  ;;  %3395 = vmatpush.msra.mxu2 %v3184_v16  ;;  %v5186_v54 = vunpack.i.h.bf16 %v6560_v6  ;;  %v5016_v31 = vunpack.i.h.bf16 %v6471_v57 }
 0x76d   : > { %3415 = vmatpush.msrb.mxu0 %v2666_v34  ;;  %3336 = vmatpush.msra.mxu3 %v2495_v60  ;;  %v2664_v29 = vsel %vm2658_vm0, %v7693_v21, %v5156_v47  ;;  %v5015_v40 = vunpack.i.l.bf16 %v6471_v57  ;;  %v7694_v26 = vunpack.i.h.bf16 %v6544_v15  ;;  %v7695_v16 = vunpack.i.h.bf16 %v6546_v18 }
 0x76e   : > { %3361 = vmatpush.msrb.mxu1 %v2925_v56  ;;  %v7697_v49 = vunpack.i.h.bf16 %v6476_v61  ;;  %v7698_v47 = vunpack.i.h.bf16 %v6458_v51  ;;  %v5100_v56 = vunpack.i.l.bf16 %v6552_v38  ;;  %v5115_v21 = vunpack.i.l.bf16 %v6556_v32 }
 0x76f   : > { %v2493_v19 = vsel %vm2488_vm4, %v5090_v25, %v7694_v26  ;;  %v2923_v34 = vsel %vm2918_vm3, %v5095_v52, %v7695_v16  ;;  %3416 = vmatpush.msrb.mxu0 %v2664_v29  ;;  %v5116_v25 = vunpack.i.h.bf16 %v6556_v32  ;;  %v2921_v52 = vsel %vm2918_vm3, %v5055_v36, %v5056_v59 }
 0x770   : > { %3337 = vmatpush.msra.mxu3 %v2493_v19  ;;  %3362 = vmatpush.msrb.mxu1 %v2923_v34  ;;  %v2491_v6 = vsel %vm2488_vm4, %v5050_v28, %v7697_v49  ;;  %v2662_v60 = vsel %vm2658_vm0, %v7698_v47, %v5185_v62  ;;  %v6709_v26 = vpop.permute.xlu0 %5188  ;;  %v6714_v29 = vpop.permute.xlu1 %5173  ;;  %v2919_v28 = vsel %vm2918_vm3, %v5020_v45, %v5021_v1  ;;  %v7699_v62 = vunpack.i.h.bf16 %v6453_v46  ;;  %v6723_v19 = vld [vmem:[%s7696_s22] sm:$0xff] }
 0x771   : > { %3417 = vmatpush.msrb.mxu0 %v2662_v60  ;;  %v5071_v16 = vunpack.i.h.bf16 %v6494_v12  ;;  %v5070_v34 = vunpack.i.l.bf16 %v6494_v12  ;;  %v5101_v36 = vunpack.i.h.bf16 %v6552_v38  ;;  %v2489_v49 = vsel %vm2488_vm4, %v5015_v40, %v5016_v31 }
 0x772   : > { %3338 = vmatpush.msra.mxu3 %v2491_v6  ;;  %3363 = vmatpush.msrb.mxu1 %v2921_v52  ;;  %v2660_v51 = vsel %vm2658_vm0, %v7699_v62, %v5186_v54  ;;  %v5135_v6 = vunpack.i.l.bf16 %v6539_v3  ;;  %v5131_v46 = vunpack.i.h.bf16 %v6558_v2  ;;  %v5130_v45 = vunpack.i.l.bf16 %v6558_v2 }
 0x773   : > { %3418 = vmatpush.msrb.mxu0 %v2660_v51  ;;  %v7700_v54 = vunpack.i.h.bf16 %v6516_v0  ;;  %v2831_v38 = vsel %vm1042_vm5, %v5115_v21, %v5116_v25  ;;  %v5136_v40 = vunpack.i.h.bf16 %v6539_v3  ;;  %v5141_v60 = vunpack.i.h.bf16 %v6614_v39 }
 0x774   : > { %3339 = vmatpush.msra.mxu3 %v2489_v49  ;;  %3364 = vmatpush.msrb.mxu1 %v2919_v28  ;;  %v5140_v52 = vunpack.i.l.bf16 %v6614_v39  ;;  %v7701_v28 = vunpack.i.h.bf16 %v6500_v41  ;;  %v7702_v3 = vunpack.i.h.bf16 %v6481_v35  ;;  %v2827_v51 = vsel %vm1042_vm5, %v5130_v45, %v5131_v46 }
 0x775   : > { %3340 = vmatmul.f32.vlgmr.msra.gmra.mxu3 %v6723_v19  ;;  %v3093_v47 = vsel %vm3085_vm14, %v7700_v54, %v5100_v56  ;;  %v2829_v56 = vsel %vm1042_vm5, %v5070_v34, %v5071_v16  ;;  %v5151_v49 = vunpack.i.h.bf16 %v6548_v17  ;;  %v6761_v54 = vld [vmem:[%s7696_s22 + $0x18] sm:$0xff]  ;;  %v5150_v35 = vunpack.i.l.bf16 %v6548_v17 }
 0x776   : > { %3440 = vmatpush.msrb.mxu3 %v3093_v47  ;;  %3365 = vmatpush.msrb.mxu1 %v2831_v38  ;;  %v3091_v0 = vsel %vm3085_vm14, %v7701_v28, %v5101_v36  ;;  %v3089_v21 = vsel %vm3085_vm14, %v7702_v3, %v5135_v6  ;;  %v7703_v36 = vunpack.i.h.bf16 %v6391_v50  ;;  %v6764_v47 = vld [vmem:[%s7696_s22 + $0x8] sm:$0xff]  ;;  %v2825_v45 = vsel %vm1042_vm5, %v5140_v52, %v5141_v60 }
 0x777   : > { %v5175_v28 = vunpack.i.l.bf16 %v6714_v29  ;;  %v7704_v50 = vunpack.i.h.bf16 %v6619_v37  ;;  %v7705_v17 = vunpack.i.h.bf16 %v6550_v44  ;;  %v5176_v52 = vunpack.i.h.bf16 %v6714_v29 }
 0x778   : > { %3441 = vmatpush.msrb.mxu3 %v3091_v0  ;;  %3366 = vmatpush.msrb.mxu1 %v2829_v56  ;;  %v5204_v62 = vpop.permute.xlu0 %5203  ;;  %v5194_v41 = vpop.permute.xlu1 %5193  ;;  %v3087_v34 = vsel %vm3085_vm14, %v7703_v36, %v5136_v40  ;;  %v5190_v44 = vunpack.i.l.bf16 %v6709_v26  ;;  %v7708_v36 = vunpack.i.h.bf16 %v6485_v11  ;;  %v7709_v29 = vunpack.i.h.bf16 %v6498_v63 }
 0x779   : > { %v5196_v6 = vunpack.i.h.bf16 %v5194_v41  ;;  %v5195_v38 = vunpack.i.l.bf16 %v5194_v41  ;;  %v5205_v0 = vunpack.i.l.bf16 %v5204_v62  ;;  %v3020_v40 = vsel %vm3012_vm2, %v7704_v50, %v5150_v35 }
 0x77a   : > { %3442 = vmatpush.msrb.mxu3 %v3089_v21  ;;  %3367 = vmatpush.msrb.mxu1 %v2827_v51  ;;  %v5206_v3 = vunpack.i.h.bf16 %v5204_v62  ;;  %v7706_v21 = vunpack.i.h.bf16 %v6508_v27  ;;  %v7707_v41 = vunpack.i.h.bf16 %v6513_v33  ;;  %v6794_v33 = vld [vmem:[%s7696_s22 + $0x30] sm:$0xff]  ;;  %v7710_v11 = vunpack.i.h.bf16 %v6465_v4 }
 0x77b   : > { %v2569_v56 = vsel %vm2561_vm1, %v7705_v17, %v5195_v38  ;;  %v2565_v62 = vsel %vm2561_vm1, %v7709_v29, %v5205_v0  ;;  %v5191_v38 = vunpack.i.h.bf16 %v6709_v26  ;;  %v7711_v50 = vunpack.i.h.bf16 %v6409_v14  ;;  %v3206_v29 = vld [vmem:[%s7696_s22 + $0x10] sm:$0xff] }
 0x77c   : > { %3443 = vmatpush.msrb.mxu3 %v3087_v34  ;;  %3368 = vmatpush.msrb.mxu1 %v2825_v45  ;;  %v3018_v51 = vsel %vm3012_vm2, %v7706_v21, %v5151_v49  ;;  %v2567_v37 = vsel %vm2561_vm1, %v7707_v41, %v5196_v6  ;;  %v3016_v34 = vsel %vm3012_vm2, %v7708_v36, %v5175_v28  ;;  %v6797_v6 = vld [vmem:[%s7696_s22 + $0x20] sm:$0xff]  ;;  %v7712_v4 = vunpack.i.h.bf16 %v6554_v7  ;;  %v3213_v41 = vld [vmem:[%s7696_s22 + $0x48] sm:$0xff] }
 0x77d   : > { %3343 = vmatmul.f32.gmra.mxu3 %v6761_v54  ;;  %3369 = vmatmul.f32.vlgmr.msrb.gmra.mxu1 %v6764_v47  ;;  %v3014_v28 = vsel %vm3012_vm2, %v7710_v11, %v5176_v52  ;;  %v2563_v63 = vsel %vm2561_vm1, %v7711_v50, %v5206_v3  ;;  %v5201_v14 = vunpack.i.h.bf16 %v6572_v5  ;;  %v7713_v8 = vunpack.i.h.bf16 %v6546_v18  ;;  %v6822_v52 = vpop.permute.xlu2 %5243 }
 0x77e   : > { %3444 = vmatpush.msrb.mxu3 %v3020_v40  ;;  %3419 = vmatpush.msrb.mxu0 %v2569_v56  ;;  %v5200_v40 = vunpack.i.l.bf16 %v6572_v5  ;;  %v2926_v26 = vsel %vm2918_vm3, %v7712_v4, %v5190_v44  ;;  %v7714_v17 = vunpack.i.h.bf16 %v6544_v15  ;;  %v5246_v15 = vunpack.i.h.bf16 %v6822_v52 }
 0x77f   : > { %v5245_v44 = vunpack.i.l.bf16 %v6822_v52 }
 0x780   : > { %3445 = vmatpush.msrb.mxu3 %v3018_v51  ;;  %3420 = vmatpush.msrb.mxu0 %v2567_v37  ;;  %v5214_v35 = vpop.permute.xlu0 %5213  ;;  %v5209_v27 = vpop.permute.xlu1 %5208  ;;  %v2922_v3 = vsel %vm2918_vm3, %v5056_v59, %v5200_v40  ;;  %v3211_v37 = vld [vmem:[%s7696_s22 + $0x38] sm:$0xff] }
 0x781   : > { %v5215_v49 = vunpack.i.l.bf16 %v5214_v35  ;;  %v5216_v45 = vunpack.i.h.bf16 %v5214_v35  ;;  %v5210_v7 = vunpack.i.l.bf16 %v5209_v27  ;;  %v5211_v36 = vunpack.i.h.bf16 %v5209_v27 }
 0x782   : > { %3446 = vmatpush.msrb.mxu3 %v3016_v34  ;;  %3421 = vmatpush.msrb.mxu0 %v2565_v62  ;;  %v2920_v34 = vsel %vm2918_vm3, %v5021_v1, %v5201_v14  ;;  %v3180_v1 = vsel %vm3179_vm7, %v5245_v44, %v5246_v15 }
 0x783   : > { %v2496_v0 = vsel %vm2488_vm4, %v5171_v53, %v5215_v49  ;;  %v2924_v53 = vsel %vm2918_vm3, %v7713_v8, %v5191_v38  ;;  %v2494_v56 = vsel %vm2488_vm4, %v7714_v17, %v5216_v45  ;;  %v2832_v35 = vsel %vm1042_vm5, %v5116_v25, %v5210_v7  ;;  %v3214_v38 = vld [vmem:[%s7696_s22 + $0x50] sm:$0xff] }
 0x784   : > { %3447 = vmatpush.msrb.mxu3 %v3014_v28  ;;  %3422 = vmatpush.msrb.mxu0 %v2563_v63  ;;  %v2830_v10 = vsel %vm1042_vm5, %v5071_v16, %v5211_v36  ;;  %v7715_v28 = vunpack.i.h.bf16 %v6639_v42  ;;  %v3209_v63 = vld [vmem:[%s7696_s22 + $0x28] sm:$0xff] }
 0x785   : > { %3346 = vmatmul.f32.gmra.mxu3 %v6794_v33  ;;  %3372 = vmatmul.f32.gmra.mxu1 %v6797_v6 }
 0x786   : > { %3448 = vmatpush.msrb.mxu3 %v2926_v26  ;;  %3423 = vmatpush.msrb.mxu0 %v2496_v0  ;;  %v3310_v26 = vpop.permute.xlu2 %3309 }
 0x788   : > { %3449 = vmatpush.msrb.mxu3 %v2924_v53  ;;  %3424 = vmatpush.msrb.mxu0 %v2494_v56  ;;  %v5229_v21 = vpop.permute.xlu0 %5228  ;;  %v5219_v5 = vpop.permute.xlu1 %5218 }
 0x789   : > { %v5231_v51 = vunpack.i.h.bf16 %v5229_v21  ;;  %v5230_v18 = vunpack.i.l.bf16 %v5229_v21  ;;  %v5220_v59 = vunpack.i.l.bf16 %v5219_v5  ;;  %v5221_v62 = vunpack.i.h.bf16 %v5219_v5 }
 0x78a   : > { %3450 = vmatpush.msrb.mxu3 %v2922_v3 }
 0x78b   : > { %v3182_v30 = vsel %vm3179_vm7, %v5230_v18, %v5231_v51  ;;  %v2828_v32 = vsel %vm1042_vm5, %v5131_v46, %v5220_v59  ;;  %v2826_v16 = vsel %vm1042_vm5, %v5141_v60, %v5221_v62  ;;  %v7716_v46 = vunpack.i.h.bf16 %v6476_v61 }
 0x78c   : > { %3451 = vmatpush.msrb.mxu3 %v2920_v34  ;;  %3396 = vmatpush.msra.mxu2 %v3182_v30  ;;  %v7717_v60 = vunpack.i.h.bf16 %v6596_v23 }
 0x78d   : > { %3349 = vmatmul.f32.gmra.mxu3 %v3213_v41  ;;  %3375 = vmatmul.f32.gmra.mxu1 %v3211_v37 }
 0x78e   : > { %3452 = vmatpush.msrb.mxu3 %v2832_v35  ;;  %3397 = vmatpush.msra.mxu2 %v3180_v1  ;;  %v3295_v53 = vpop.permute.xlu2 %3294 }
 0x78f   : > { %4892 = vmatmul.msk.f32.vlgmr.msra.gmra.mxu2 %vm945_vm6, %v3206_v29 }
 0x790   : > { %3453 = vmatpush.msrb.mxu3 %v2830_v10  ;;  %v5249_v27 = vpop.permute.xlu0 %5248  ;;  %v5234_v25 = vpop.permute.xlu1 %5233 }
 0x791   : > { %v5250_v49 = vunpack.i.l.bf16 %v5249_v27  ;;  %v5236_v45 = vunpack.i.h.bf16 %v5234_v25  ;;  %v5235_v12 = vunpack.i.l.bf16 %v5234_v25  ;;  %v5251_v11 = vunpack.i.h.bf16 %v5249_v27 }
 0x792   : > { %3454 = vmatpush.msrb.mxu3 %v2828_v32 }
 0x793   : > { %v3187_v2 = vsel %vm3179_vm7, %v7715_v28, %v5250_v49  ;;  %v2492_v50 = vsel %vm2488_vm4, %v7716_v46, %v5235_v12  ;;  %v2490_v39 = vsel %vm2488_vm4, %v5016_v31, %v5236_v45  ;;  %v3185_v42 = vsel %vm3179_vm7, %v7717_v60, %v5251_v11  ;;  %v3212_v31 = vld [vmem:[%s7696_s22 + $0x40] sm:$0xff] }
 0x794   : > { %3455 = vmatpush.msrb.mxu3 %v2826_v16  ;;  %3425 = vmatpush.msrb.mxu0 %v2492_v50 }
 0x795   : > { %3378 = vmatmul.f32.gmra.mxu1 %v3214_v38  ;;  %3456 = vmatmul.f32.vlgmr.msrb.gmra.mxu3 %v6764_v47 }
 0x796   : > { %3481 = vmatpush.msra.mxu1 %v3187_v2  ;;  %3426 = vmatpush.msrb.mxu0 %v2490_v39 }
 0x797   : > { %4893 = vmatmul.msk.f32.gmra.mxu2 %vm945_vm6, %v3209_v63  ;;  %3427 = vmatmul.f32.vlgmr.msrb.gmra.mxu0 %v6723_v19  ;;  %v3215_v19 = vld [vmem:[%s7696_s22 + $0x58] sm:$0xff] }
 0x798   : > { %3482 = vmatpush.msra.mxu1 %v3185_v42  ;;  %v5254_v61 = vpop.permute.xlu1 %5253  ;;  %v3305_v34 = vpop.permute.xlu0 %3304 }
 0x799   : > { %v5256_v47 = vunpack.i.h.bf16 %v5254_v61  ;;  %v5255_v0 = vunpack.i.l.bf16 %v5254_v61 }
 0x79b   : > { %v3183_v57 = vsel %vm3179_vm7, %v5231_v51, %v5255_v0  ;;  %v3181_v23 = vsel %vm3179_vm7, %v5246_v15, %v5256_v47 }
 0x79c   : > { %3483 = vmatpush.msra.mxu1 %v3183_v57 }
 0x79d   : > { %3459 = vmatmul.f32.gmra.mxu3 %v6797_v6 }
 0x79e   : > { %3484 = vmatpush.msra.mxu1 %v3181_v23 }
 0x79f   : > { %4894 = vmatmul.msk.f32.gmra.mxu2 %vm945_vm6, %v3212_v31  ;;  %3430 = vmatmul.f32.gmra.mxu0 %v6761_v54 }
 0x7a0   : > { %4896 = vmatmul.msk.f32.vlgmr.msra.gmra.mxu1 %vm945_vm6, %v3206_v29  ;;  %v3300_v3 = vpop.permute.xlu1 %3299 }
 0x7a5   : > { %3462 = vmatmul.f32.gmra.mxu3 %v3211_v37 }
 0x7a7   : > { %4895 = vmatmul.msk.f32.gmra.mxu2 %vm945_vm6, %v3215_v19  ;;  %3433 = vmatmul.f32.gmra.mxu0 %v6794_v33 }
 0x7a8   : > { %4897 = vmatmul.msk.f32.gmra.mxu1 %vm945_vm6, %v3209_v63 }
 0x7ad   : > { %3465 = vmatmul.f32.gmra.mxu3 %v3214_v38 }
 0x7af   : > { %3436 = vmatmul.f32.gmra.mxu0 %v3213_v41 }
 0x7b0   : > { %4898 = vmatmul.msk.f32.gmra.mxu1 %vm945_vm6, %v3212_v31 }
 0x7b8   : > { %4899 = vmatmul.msk.f32.gmra.mxu1 %vm945_vm6, %v3215_v19 }
 0x7f8   : > { %v3341_v6 = vpop.f32.mrf.mxu3 }
 0x7f9   : > { %v3342_v17 = vadd.f32 %v3341_v6, %v3295_v53 }
 0x7fa   : > { %v3370_v40 = vpop.f32.mrf.mxu1 }
 0x7fb   : > { %v3371_v52 = vadd.f32 %v3370_v40, %v3342_v17 }
 0x800   : > { %v3344_v4 = vpop.f32.mrf.mxu3 }
 0x801   : > { %v3345_v5 = vadd.f32 %v3344_v4, %v3300_v3 }
 0x802   : > { %v3373_v54 = vpop.f32.mrf.mxu1 }
 0x803   : > { %v3374_v37 = vadd.f32 %v3373_v54, %v3345_v5 }
 0x808   : > { %v3347_v14 = vpop.f32.mrf.mxu3 }
 0x809   : > { %v3348_v59 = vadd.f32 %v3347_v14, %v3305_v34 }
 0x80a   : > { %v3376_v8 = vpop.f32.mrf.mxu1 }
 0x80b   : > { %v3377_v1 = vadd.f32 %v3376_v8, %v3348_v59 }
 0x810   : > { %v3350_v56 = vpop.f32.mrf.mxu3 }
 0x811   : > { %v3351_v45 = vadd.f32 %v3350_v56, %v3310_v26 }
 0x812   : > { %v3399_v33 = vpop.f32.mrf.mxu2  ;;  %v3379_v51 = vpop.f32.mrf.mxu1 }
 0x813   : > { %v3400_v7 = vadd.f32 %v3399_v33, %v3371_v52  ;;  %v3380_v46 = vadd.f32 %v3379_v51, %v3351_v45 }
 0x814   : > { %v3428_v21 = vpop.f32.mrf.mxu0 }
 0x815   : > { %v3498_v18 = vmax.f32 %v3400_v7, 0.0  ;;  %v3429_v44 = vadd.f32 %v3428_v21, %v3295_v53 }
 0x817   : > { %3514 = vrot.lane.b32.xlu0 %v3498_v18, %s5627_s0 }
 0x818   : > { %v3457_v41 = vpop.f32.mrf.mxu3 }
 0x819   : > { %v3458_v10 = vadd.f32 %v3457_v41, %v3429_v44 }
 0x81a   : > { %v3402_v15 = vpop.f32.mrf.mxu2 }
 0x81b   : > { %v3403_v36 = vadd.f32 %v3402_v15, %v3374_v37 }
 0x81c   : > { %v3431_v30 = vpop.f32.mrf.mxu0 }
 0x81d   : > { %v3500_v35 = vmax.f32 %v3403_v36, 0.0  ;;  %v3486_v29 = vpop.f32.mrf.mxu1  ;;  %v3432_v25 = vadd.f32 %v3431_v30, %v3300_v3 }
 0x81e   : > { %v3487_v32 = vadd.f32 %v3486_v29, %v3458_v10 }
 0x81f   : > { %3518 = vrot.lane.b32.xlu1 %v3500_v35, %s5627_s0 }
 0x820   : > { %v3460_v62 = vpop.f32.mrf.mxu3  ;;  %v3499_v12 = vmax.f32 %v3487_v32, 0.0 }
 0x821   : > { %v3461_v28 = vadd.f32 %v3460_v62, %v3432_v25 }
 0x822   : > { %v3405_v27 = vpop.f32.mrf.mxu2 }
 0x823   : > { %v3406_v49 = vadd.f32 %v3405_v27, %v3377_v1  ;;  %v7718_v27 = vld [vmem:[#allocation27_spill] sm:$0xff] }
 0x824   : > { %v3434_v38 = vpop.f32.mrf.mxu0 }
 0x825   : > { %v3502_v11 = vmax.f32 %v3406_v49, 0.0  ;;  %v3489_v16 = vpop.f32.mrf.mxu1  ;;  %v3435_v39 = vadd.f32 %v3434_v38, %v3305_v34  ;;  %v7720_v38 = vld [vmem:[#allocation31_spill] sm:$0xff] }
 0x826   : > { %v3490_v50 = vadd.f32 %v3489_v16, %v3461_v28 }
 0x827   : > { %3522 = vrot.lane.b32.xlu2 %v3502_v11, %s5627_s0  ;;  %3516 = vrot.lane.b32.xlu1 %v3499_v12, %s5627_s0  ;;  %v7721_v11 = vld [vmem:[#allocation28_spill] sm:$0xff] }
 0x828   : > { %v3463_v2 = vpop.f32.mrf.mxu3  ;;  %v3501_v42 = vmax.f32 %v3490_v50, 0.0 }
 0x829   : > { %v3464_v57 = vadd.f32 %v3463_v2, %v3435_v39 }
 0x82a   : > { %v3408_v63 = vpop.f32.mrf.mxu2 }
 0x82b   : > { %v3409_v60 = vadd.f32 %v3408_v63, %v3380_v46 }
 0x82c   : > { %v3437_v47 = vpop.f32.mrf.mxu0 }
 0x82d   : > { %v3504_v61 = vmax.f32 %v3409_v60, 0.0  ;;  %v3492_v0 = vpop.f32.mrf.mxu1  ;;  %v3438_v31 = vadd.f32 %v3437_v47, %v3310_v26 }
 0x82e   : > { %v3493_v23 = vadd.f32 %v3492_v0, %v3464_v57 }
 0x82f   : > { %3520 = vrot.lane.b32.xlu2 %v3501_v42, %s5627_s0  ;;  %3526 = vrot.lane.b32.xlu0 %v3504_v61, %s5627_s0 }
 0x830   : > { %v3466_v19 = vpop.f32.mrf.mxu3  ;;  %v3503_v40 = vmax.f32 %v3493_v23, 0.0 }
 0x831   : > { %v3467_v6 = vadd.f32 %v3466_v19, %v3438_v31 }
 0x835   : > { %v3495_v4 = vpop.f32.mrf.mxu1 }
 0x836   : > { %v3496_v54 = vadd.f32 %v3495_v4, %v3467_v6  ;;  %v7723_v4 = vld [vmem:[#allocation30_spill] sm:$0xff] }
 0x837   : > { %3524 = vrot.lane.b32.xlu0 %v3503_v40, %s5627_s0 }
 0x838   : > { %v3505_v14 = vmax.f32 %v3496_v54, 0.0 }
 0x83a   : > { %3528 = vrot.lane.b32.xlu1 %v3505_v14, %s5627_s0  ;;  %s7719_s0 = smov 97  }
 0x881   : > { %v3523_v8 = vpop.permute.xlu2 %3522 }
 0x882   : > { %3552 = vst.msk [vmem:[#allocation3 + $0x30] sm:$0xff] %vm2404_vm8, %v3523_v8 }
 0x889   : > { %v3521_v53 = vpop.permute.xlu2 %3520  ;;  %v3515_v17 = vpop.permute.xlu0 %3514  ;;  %v4128_v39 = vld [vmem:[#allocation3 + $0x30] sm:$0xff] }
 0x88a   : > { %3551 = vst.msk [vmem:[#allocation3 + $0x28] sm:$0xff] %vm945_vm6, %v3521_v53  ;;  %v6959_v0 = vmul.f32 %v4128_v39, %v6170_v24 }
 0x88b   : > { %3546 = vst.msk [vmem:[#allocation3] sm:$0xff] %vm2404_vm8, %v3515_v17 }
 0x891   : > { %v3519_v26 = vpop.permute.xlu1 %3518 }
 0x892   : > { %v6892_v56 = vsel %vm945_vm6, %v3519_v26, %v3521_v53  ;;  %3549 = vst.msk [vmem:[#allocation3 + $0x18] sm:$0xff] %vm2404_vm8, %v3519_v26  ;;  %v4122_v52 = vld [vmem:[#allocation3] sm:$0xff] }
 0x893   : > { %v3726_v21 = vmul.f32 %v4122_v52, %v6166_v22  ;;  %v6909_v41 = vmul.f32 %v6892_v56, %v6428_v9  ;;  %v6912_v37 = vmul.f32 %v4122_v52, %v6170_v24  ;;  %v3810_v30 = vmul.f32 %v4122_v52, %v6158_v13 }
 0x894   : > { %v3570_v35 = vmul.f32 %v4122_v52, %v6162_v20  ;;  %v4050_v25 = vmul.f32 %v4122_v52, %v7718_v27  ;;  %v3966_v16 = vmul.f32 %v4122_v52, %v7721_v11  ;;  %v3814_v61 = vmul.f32 %v6892_v56, %v6196_v43 }
 0x895   : > { %v3970_v31 = vmul.f32 %v6892_v56, %v7720_v38  ;;  %v3574_v26 = vmul.f32 %v6892_v56, %v6237_v58 }
 0x899   : > { %v3517_v33 = vpop.permute.xlu1 %3516  ;;  %v6901_v51 = vld [vmem:[#allocation3 + $0x18] sm:$0xff] }
 0x89a   : > { %v3530_v7 = vsel %vm945_vm6, %v3515_v17, %v3517_v33  ;;  %3548 = vst.msk [vmem:[#allocation3 + $0x10] sm:$0xff] %vm945_vm6, %v3517_v33  ;;  %v6919_v36 = vmul.f32 %v6901_v51, %v6170_v24  ;;  %v5302_v46 = vpack.i.bf16 %v6892_v56, %v6901_v51  ;;  %v3813_v60 = vmul.f32 %v6901_v51, %v6158_v13 }
 0x89b   : > { %v6897_v3 = vpack.i.bf16 %v3530_v7, %v4122_v52  ;;  %v3727_v5 = vmul.f32 %v3530_v7, %v6209_v48  ;;  %v3811_v15 = vmul.f32 %v3530_v7, %v6196_v43  ;;  %v3571_v44 = vmul.f32 %v3530_v7, %v6237_v58 }
 0x89c   : > { %v6922_v34 = vmul.f32 %v3530_v7, %v6428_v9  ;;  %v4051_v29 = vmul.f32 %v3530_v7, %v6226_v55  ;;  %v5487_v62 = vpack.i.bf16 %v6909_v41, %v6919_v36  ;;  %v3967_v45 = vmul.f32 %v3530_v7, %v7720_v38 }
 0x89d   : > { %5258 = vrot.lane.b32.xlu1 %v6897_v3, %s7638_s16  ;;  %5263 = vrot.lane.b32.xlu2 %v6897_v3, %s7636_s26  ;;  %v5272_v18 = vpack.i.bf16 %v3727_v5, %v3726_v21  ;;  %v5267_v1 = vpack.i.bf16 %v3811_v15, %v3810_v30  ;;  %v5282_v32 = vpack.i.bf16 %v3571_v44, %v3570_v35 }
 0x89e   : > { %v5507_v10 = vpack.i.bf16 %v6922_v34, %v6912_v37  ;;  %v5277_v49 = vpack.i.bf16 %v4051_v29, %v4050_v25  ;;  %v5287_v2 = vpack.i.bf16 %v3967_v45, %v3966_v16  ;;  %v3969_v47 = vmul.f32 %v6901_v51, %v7721_v11 }
 0x89f   : > { %5273 = vrot.lane.b32.xlu0 %v5272_v18, %s5630_s23  ;;  %v5307_v57 = vpack.i.bf16 %v3814_v61, %v3813_v60  ;;  %v3729_v53 = vmul.f32 %v6901_v51, %v6166_v22  ;;  %v3730_v52 = vmul.f32 %v6892_v56, %v6209_v48  ;;  %v4053_v5 = vmul.f32 %v6901_v51, %v7718_v27  ;;  %v7726_v60 = vld [vmem:[#allocation25_spill] sm:$0xff] }
 0x8a0   : > { %v5327_v40 = vpack.i.bf16 %v3970_v31, %v3969_v47  ;;  %v4054_v18 = vmul.f32 %v6892_v56, %v6226_v55  ;;  %v3816_v30 = vmul.f32 %v4128_v39, %v6158_v13  ;;  %v3732_v29 = vmul.f32 %v4128_v39, %v6166_v22 }
 0x8a1   : > { %v3527_v59 = vpop.permute.xlu0 %3526  ;;  %v5312_v7 = vpack.i.bf16 %v3730_v52, %v3729_v53  ;;  %v3576_v56 = vmul.f32 %v4128_v39, %v6162_v20  ;;  %v4056_v45 = vmul.f32 %v4128_v39, %v7718_v27  ;;  %v7040_v53 = vld [vmem:[#allocation3 + $0x28] sm:$0xff] }
 0x8a2   : > { %3555 = vst.msk [vmem:[#allocation3 + $0x48] sm:$0xff] %vm2404_vm8, %v3527_v59  ;;  %v5317_v44 = vpack.i.bf16 %v4054_v18, %v4053_v5  ;;  %v4211_v34 = vmul.f32 %v7040_v53, %v7723_v4 }
 0x8a5   : > { %5268 = vrot.lane.b32.xlu2 %v5267_v1, %s7719_s0  ;;  %5283 = vrot.lane.b32.xlu1 %v5282_v32, %s7640_s1 }
 0x8a7   : > { %5278 = vrot.lane.b32.xlu0 %v5277_v49, %s7634_s28  ;;  %s7722_s28 = smov 95  }
 0x8a9   : > { %v3525_v12 = vpop.permute.xlu0 %3524 }
 0x8aa   : > { %v3532_v28 = vsel %vm945_vm6, %v3523_v8, %v3525_v12  ;;  %3554 = vst.msk [vmem:[#allocation3 + $0x40] sm:$0xff] %vm945_vm6, %v3525_v12  ;;  %v3573_v8 = vmul.f32 %v6901_v51, %v6162_v20  ;;  %v3972_v12 = vmul.f32 %v4128_v39, %v7721_v11 }
 0x8ab   : > { %v6952_v42 = vmul.f32 %v3532_v28, %v6428_v9  ;;  %v5332_v21 = vpack.i.bf16 %v3532_v28, %v4128_v39  ;;  %v3817_v15 = vmul.f32 %v3532_v28, %v6196_v43  ;;  %v3733_v35 = vmul.f32 %v3532_v28, %v6209_v48 }
 0x8ac   : > { %v3529_v50 = vpop.permute.xlu1 %3528  ;;  %v5322_v33 = vpack.i.bf16 %v3574_v26, %v3573_v8  ;;  %v3577_v51 = vmul.f32 %v3532_v28, %v6237_v58  ;;  %v4057_v25 = vmul.f32 %v3532_v28, %v6226_v55  ;;  %v3973_v49 = vmul.f32 %v3532_v28, %v7720_v38  ;;  %v7036_v8 = vld [vmem:[#allocation3 + $0x10] sm:$0xff] }
 0x8ad   : > { %v6943_v63 = vsel %vm945_vm6, %v3527_v59, %v3529_v50  ;;  %3557 = vst.msk [vmem:[#allocation3 + $0x58] sm:$0xff] %vm945_vm6, %v3529_v50  ;;  %5288 = vrot.lane.b32.xlu2 %v5287_v2, %s7722_s28  ;;  %5303 = vrot.lane.b32.xlu1 %v5302_v46, %s5635_s7  ;;  %v5482_v19 = vpack.i.bf16 %v6952_v42, %v6959_v0  ;;  %v7733_v0 = vld [vmem:[#allocation29_spill] sm:$0xff] }
 0x8ae   : > { %v5347_v59 = vpack.i.bf16 %v3817_v15, %v3816_v30  ;;  %v5352_v1 = vpack.i.bf16 %v3733_v35, %v3732_v29  ;;  %v5362_v32 = vpack.i.bf16 %v3577_v51, %v3576_v56  ;;  %v5357_v16 = vpack.i.bf16 %v4057_v25, %v4056_v45  ;;  %v7730_v51 = vld [vmem:[#allocation23_spill] sm:$0xff] }
 0x8af   : > { %5298 = vrot.lane.b32.xlu0 %v5302_v46, %s7636_s26  ;;  %s7724_s26 = smov 81   ;;  %v5367_v2 = vpack.i.bf16 %v3973_v49, %v3972_v12  ;;  %v3812_v26 = vmul.f32 %v7036_v8, %v7726_v60  ;;  %v7052_v52 = vpack.i.bf16 %v7036_v8, %v7040_v53  ;;  %v4060_v15 = vmul.f32 %v6943_v63, %v6226_v55  ;;  %v7731_v12 = vld [vmem:[#allocation24_spill] sm:$0xff] }
 0x8b0   : > { %v3731_v45 = vmul.f32 %v7040_v53, %v7730_v51  ;;  %v3575_v37 = vmul.f32 %v7040_v53, %v7733_v0 }
 0x8b1   : > { %v6963_v23 = vld [vmem:[#allocation3 + $0x40] sm:$0xff] }
 0x8b2   : > { %v6973_v54 = vmul.f32 %v6963_v23, %v7723_v4  ;;  %v3818_v39 = vmul.f32 %v6963_v23, %v7726_v60  ;;  %v3734_v25 = vmul.f32 %v6963_v23, %v7730_v51 }
 0x8b4   : > { %v6967_v6 = vld [vmem:[#allocation3 + $0x58] sm:$0xff] }
 0x8b5   : > { %5293 = vrot.lane.b32.xlu2 %v5302_v46, %s7638_s16  ;;  %5308 = vrot.lane.b32.xlu1 %v5307_v57, %s7719_s0  ;;  %v6977_v14 = vmul.f32 %v6967_v6, %v7723_v4  ;;  %v7013_v46 = vld [vmem:[#allocation3 + $0x48] sm:$0xff]  ;;  %v3821_v28 = vmul.f32 %v6967_v6, %v7726_v60  ;;  %v7024_v61 = vpack.i.bf16 %v6963_v23, %v6967_v6 }
 0x8b6   : > { %v5387_v50 = vpack.i.bf16 %v6943_v63, %v7013_v46  ;;  %v3820_v57 = vmul.f32 %v6943_v63, %v6196_v43  ;;  %v3819_v31 = vmul.f32 %v7013_v46, %v6158_v13  ;;  %v3815_v43 = vmul.f32 %v7040_v53, %v7726_v60 }
 0x8b7   : > { %5328 = vrot.lane.b32.xlu0 %v5327_v40, %s7722_s28  ;;  %v5517_v17 = vpack.i.bf16 %v6973_v54, %v6977_v14  ;;  %v5392_v47 = vpack.i.bf16 %v3818_v39, %v3821_v28  ;;  %v3736_v13 = vmul.f32 %v6943_v63, %v6209_v48  ;;  %v3580_v48 = vmul.f32 %v6943_v63, %v6237_v58 }
 0x8b8   : > { %v5397_v40 = vpack.i.bf16 %v3820_v57, %v3819_v31  ;;  %v3975_v29 = vmul.f32 %v7013_v46, %v7721_v11  ;;  %v3728_v11 = vmul.f32 %v7036_v8, %v7730_v51  ;;  %v3968_v39 = vmul.f32 %v7036_v8, %v7731_v12 }
 0x8bd   : > { %5323 = vrot.lane.b32.xlu2 %v5322_v33, %s7640_s1  ;;  %5313 = vrot.lane.b32.xlu1 %v5312_v7, %s5630_s23  ;;  %v5412_v33 = vpack.i.bf16 %v3812_v26, %v3815_v43  ;;  %v3735_v7 = vmul.f32 %v7013_v46, %v6166_v22  ;;  %v3579_v22 = vmul.f32 %v7013_v46, %v6162_v20 }
 0x8be   : > { %v3976_v20 = vmul.f32 %v6943_v63, %v7720_v38  ;;  %v4216_v43 = vmul.f32 %v6943_v63, %v6428_v9  ;;  %v3581_v9 = vmul.f32 %v6967_v6, %v7733_v0 }
 0x8bf   : > { %5333 = vrot.lane.b32.xlu0 %v5332_v21, %s7638_s16  ;;  %s7725_s16 = smov 112   ;;  %v5437_v30 = vpack.i.bf16 %v3580_v48, %v3579_v22  ;;  %v1339_v22 = vld [vmem:[#allocation5] sm:$0x1] }
 0x8c0   : > { %v5447_v56 = vpack.i.bf16 %v3976_v20, %v3975_v29 }
 0x8c5   : > { %5318 = vrot.lane.b32.xlu1 %v5317_v44, %s7724_s26  ;;  %5343 = vrot.lane.b32.xlu2 %v5332_v21, %s5635_s7 }
 0x8c7   : > { %5348 = vrot.lane.b32.xlu0 %v5347_v59, %s7719_s0  ;;  %v4059_v59 = vmul.f32 %v7013_v46, %v7718_v27 }
 0x8c9   : > { %v5427_v35 = vpack.i.bf16 %v4060_v15, %v4059_v59 }
 0x8cd   : > { %5353 = vrot.lane.b32.xlu2 %v5352_v1, %s5630_s23  ;;  %5338 = vrot.lane.b32.xlu1 %v5332_v21, %s7725_s16  ;;  %v7728_v21 = vld [vmem:[#allocation26_spill] sm:$0xff]  ;;  %v3737_v1 = vmul.f32 %v6967_v6, %v7730_v51 }
 0x8ce   : > { %v4061_v5 = vmul.f32 %v6967_v6, %v7728_v21  ;;  %v4058_v18 = vmul.f32 %v6963_v23, %v7728_v21  ;;  %v4052_v55 = vmul.f32 %v7036_v8, %v7728_v21  ;;  %v4055_v27 = vmul.f32 %v7040_v53, %v7728_v21 }
 0x8cf   : > { %5363 = vrot.lane.b32.xlu0 %v5362_v32, %s7640_s1  ;;  %s7727_s1 = smov 80   ;;  %v5432_v38 = vpack.i.bf16 %v3734_v25, %v3737_v1 }
 0x8d0   : > { %v5417_v44 = vpack.i.bf16 %v4058_v18, %v4061_v5  ;;  %v5442_v32 = vpack.i.bf16 %v4052_v55, %v4055_v27 }
 0x8d5   : > { %5358 = vrot.lane.b32.xlu2 %v5357_v16, %s7724_s26  ;;  %5368 = vrot.lane.b32.xlu1 %v5367_v2, %s7722_s28  ;;  %v3977_v16 = vmul.f32 %v6967_v6, %v7731_v12  ;;  %v5452_v2 = vpack.i.bf16 %v3728_v11, %v3731_v45 }
 0x8d7   : > { %5388 = vrot.lane.b32.xlu0 %v5387_v50, %s5635_s7 }
 0x8dd   : > { %5383 = vrot.lane.b32.xlu2 %v5387_v50, %s7725_s16  ;;  %5373 = vrot.lane.b32.xlu1 %v7024_v61, %s7727_s1 }
 0x8df   : > { %5393 = vrot.lane.b32.xlu0 %v5392_v47, %s7719_s0  ;;  %v3971_v47 = vmul.f32 %v7040_v53, %v7731_v12 }
 0x8e1   : > { %v5467_v57 = vpack.i.bf16 %v3968_v39, %v3971_v47 }
 0x8e5   : > { %5398 = vrot.lane.b32.xlu2 %v5397_v40, %s7719_s0  ;;  %5378 = vrot.lane.b32.xlu1 %v5387_v50, %s7727_s1  ;;  %v3974_v50 = vmul.f32 %v6963_v23, %v7731_v12 }
 0x8e7   : > { %5408 = vrot.lane.b32.xlu0 %v6897_v3, %s5635_s7  ;;  %v5422_v3 = vpack.i.bf16 %v3736_v13, %v3735_v7  ;;  %v5457_v60 = vpack.i.bf16 %v3974_v50, %v3977_v16  ;;  %v4215_v13 = vmul.f32 %v7013_v46, %v6170_v24  ;;  %v3578_v24 = vmul.f32 %v6963_v23, %v7733_v0 }
 0x8e8   : > { %v4208_v23 = vmul.f32 %v7036_v8, %v7723_v4 }
 0x8ea   : > { %v5522_v46 = vpack.i.bf16 %v4208_v23, %v4211_v34 }
 0x8ed   : > { %5403 = vrot.lane.b32.xlu2 %v7052_v52, %s7727_s1  ;;  %5413 = vrot.lane.b32.xlu1 %v5412_v33, %s7719_s0  ;;  %s7729_s1 = smov 113   ;;  %v5497_v33 = vpack.i.bf16 %v4216_v43, %v4215_v13 }
 0x8ef   : > { %5423 = vrot.lane.b32.xlu0 %v5422_v3, %s5630_s23 }
 0x8f5   : > { %5418 = vrot.lane.b32.xlu2 %v5417_v44, %s7724_s26  ;;  %5438 = vrot.lane.b32.xlu1 %v5437_v30, %s7729_s1  ;;  %v1486_v44 = vld [vmem:[#allocation6] sm:$0x1] }
 0x8f7   : > { %v7074_v58 = vpop.permute.xlu2 %5263  ;;  %5428 = vrot.lane.b32.xlu0 %v5427_v35, %s7724_s26 }
 0x8fd   : > { %5448 = vrot.lane.b32.xlu2 %v5447_v56, %s7722_s28  ;;  %5443 = vrot.lane.b32.xlu1 %v5442_v32, %s7724_s26  ;;  %s7735_s26 = sld [smem:[#allocation19_spill]] }
 0x8ff   : > { %v7091_v49 = vpop.permute.xlu2 %5268  ;;  %5433 = vrot.lane.b32.xlu0 %v5432_v38, %s5630_s23 }
 0x900   : > { %v5271_v32 = vunpack.i.h.bf16 %v7091_v49  ;;  %v5270_v25 = vunpack.i.l.bf16 %v7091_v49 }
 0x902   : > { %v3858_v16 = vsel %vm2752_vm15, %v5270_v25, %v5271_v32 }
 0x903   : > { %v4581_v15 = vld [vmem:[%s7735_s26] sm:$0x3] }
 0x905   : > { %5453 = vrot.lane.b32.xlu2 %v5452_v2, %s5630_s23  ;;  %5463 = vrot.lane.b32.xlu1 %v7024_v61, %s7725_s16  ;;  %s7732_s23 = smov 79  }
 0x907   : > { %v7105_v28 = vpop.permute.xlu2 %5288  ;;  %5458 = vrot.lane.b32.xlu0 %v5457_v60, %s7722_s28 }
 0x90d   : > { %5468 = vrot.lane.b32.xlu2 %v5467_v57, %s7722_s28  ;;  %5473 = vrot.lane.b32.xlu1 %v7052_v52, %s7725_s16  ;;  %s7734_s16 = sld [smem:[#allocation17_spill]] }
 0x90e   : > { %s7736_s28 = sld [smem:[#allocation16_spill]] }
 0x90f   : > { %v7115_v31 = vpop.permute.xlu1 %5258  ;;  %v7117_v40 = vpop.permute.xlu2 %5293  ;;  %5483 = vrot.lane.b32.xlu0 %v5482_v19, %s7732_s23  ;;  %v5492_v19 = vpack.i.bf16 %v3578_v24, %v3581_v9 }
 0x910   : > { %v7647_v23 = vunpack.i.h.bf16 %v7117_v40 }
 0x911   : > { %v7123_v26 = vpop.permute.xlu0 %5273 }
 0x913   : > { %v4365_v4 = vld [vmem:[%s7734_s16 + $0x18] sm:$0xff]  ;;  %v4363_v53 = vld [vmem:[%s7734_s16 + $0x8] sm:$0xff]  ;;  %v4364_v3 = vld [vmem:[%s7734_s16 + $0x10] sm:$0xff] }
 0x914   : > { %v4362_v18 = vld [vmem:[%s7734_s16] sm:$0xff] }
 0x915   : > { %5478 = vrot.lane.b32.xlu2 %v7024_v61, %s5635_s7  ;;  %5488 = vrot.lane.b32.xlu1 %v5487_v62, %s7732_s23  ;;  %v3572_v62 = vmul.f32 %v7036_v8, %v7733_v0 }
 0x917   : > { %v7135_v7 = vpop.permute.xlu2 %5323  ;;  %v7137_v42 = vpop.permute.xlu1 %5283  ;;  %5498 = vrot.lane.b32.xlu0 %v5497_v33, %s7732_s23 }
 0x919   : > { %v7142_v63 = vpop.permute.xlu0 %5278 }
 0x91d   : > { %5493 = vrot.lane.b32.xlu2 %v5492_v19, %s7729_s1  ;;  %5508 = vrot.lane.b32.xlu1 %v5507_v10, %s7732_s23  ;;  %v5512_v10 = vpack.i.bf16 %v3572_v62, %v3575_v37  ;;  %v5295_v37 = vunpack.i.l.bf16 %v7117_v40 }
 0x91f   : > { %v7151_v41 = vpop.permute.xlu1 %5303  ;;  %v7153_v36 = vpop.permute.xlu2 %5343  ;;  %5503 = vrot.lane.b32.xlu0 %v7052_v52, %s5635_s7  ;;  %s4813_s7 = sshll.u32 %s7752_s10, 1 }
 0x920   : > { %s934_s0 = scalar_lea.vmem %s5783_s14, %s4813_s7 }
 0x921   : > { %v7161_v6 = vpop.permute.xlu0 %5298 }
 0x925   : > { %5513 = vrot.lane.b32.xlu2 %v5512_v10, %s7729_s1  ;;  %5523 = vrot.lane.b32.xlu1 %v5522_v46, %s7732_s23  ;;  %v7646_v10 = vunpack.i.h.bf16 %v7115_v31  ;;  %v5260_v46 = vunpack.i.l.bf16 %v7115_v31  ;;  %s7748_s1 = sld [smem:[#allocation18_spill]] }
 0x927   : > { %v7169_v61 = vpop.permute.xlu1 %5308  ;;  %v7171_v52 = vpop.permute.xlu2 %5353  ;;  %5518 = vrot.lane.b32.xlu0 %v5517_v17, %s7732_s23  ;;  %s4913_s23 = sshll.u32 %s7752_s10, 2 }
 0x928   : > { %v5311_v51 = vunpack.i.h.bf16 %v7169_v61  ;;  %v5310_v1 = vunpack.i.l.bf16 %v7169_v61  ;;  %s930_s26 = scalar_lea.vmem %s5778_s24, %s4913_s23 }
 0x929   : > { %v7177_v8 = vpop.permute.xlu0 %5328 }
 0x92a   : > { %v3860_v11 = vsel %vm2752_vm15, %v5310_v1, %v5311_v51 }
 0x92d   : > { %4383 = vperm.xlu2 %4984, %v4365_v4   ;;  %4373 = vperm.xlu1 %4986, %v4363_v53   ;;  %v4172_v4 = vsel %vm3085_vm14, %v5295_v37, %v7647_v23 }
 0x92f   : > { %v7182_v21 = vpop.permute.xlu1 %5313  ;;  %v7184_v5 = vpop.permute.xlu2 %5358  ;;  %4378 = vperm.xlu0 %4985, %v4364_v3  }
 0x930   : > { %v5315_v1 = vunpack.i.l.bf16 %v7182_v21 }
 0x931   : > { %v7186_v48 = vpop.permute.xlu0 %5333 }
 0x932   : > { %v5336_v0 = vunpack.i.h.bf16 %v7186_v48  ;;  %v5335_v9 = vunpack.i.l.bf16 %v7186_v48  ;;  %v7738_v48 = vunpack.i.h.bf16 %v7117_v40 }
 0x934   : > { %v4174_v61 = vsel %vm3085_vm14, %v5335_v9, %v5336_v0 }
 0x935   : > { %4368 = vperm.xlu2 %4984, %v4362_v18   ;;  %1342 = vperm.xlu1 %4986, %v1339_v22  }
 0x937   : > { %v7190_v54 = vpop.permute.xlu1 %5318  ;;  %v7192_v14 = vpop.permute.xlu2 %5383  ;;  %4584 = vperm.xlu0 %4985, %v4581_v15   ;;  %v4170_v15 = vsel %vm3085_vm14, %v5260_v46, %v7646_v10  ;;  %v5326_v10 = vunpack.i.h.bf16 %v7135_v7 }
 0x939   : > { %v5349_v17 = vpop.permute.xlu0 %5348 }
 0x93a   : > { %v5351_v35 = vunpack.i.h.bf16 %v5349_v17  ;;  %v5350_v20 = vunpack.i.l.bf16 %v5349_v17  ;;  %v5356_v17 = vunpack.i.h.bf16 %v7171_v52 }
 0x93c   : > { %v3862_v38 = vsel %vm2752_vm15, %v5350_v20, %v5351_v35 }
 0x93d   : > { %1489 = vperm.xlu2 %4984, %v1486_v44  }
 0x93f   : > { %v5399_v30 = vpop.permute.xlu2 %5398  ;;  %v7194_v59 = vpop.permute.xlu1 %5338 }
 0x940   : > { %v5401_v55 = vunpack.i.h.bf16 %v5399_v30  ;;  %v5400_v29 = vunpack.i.l.bf16 %v5399_v30  ;;  %v5355_v30 = vunpack.i.l.bf16 %v7171_v52  ;;  %v7650_v37 = vunpack.i.h.bf16 %v7194_v59 }
 0x941   : > { %v7196_v27 = vpop.permute.xlu0 %5363 }
 0x942   : > { %v3864_v56 = vsel %vm2752_vm15, %v5400_v29, %v5401_v55  ;;  %v5316_v29 = vunpack.i.h.bf16 %v7182_v21 }
 0x943   : > { %4398 = vmatpush.msrb.mxu2 %v3864_v56 }
 0x945   : > { %4399 = vmatpush.msrb.mxu2 %v3862_v38  ;;  %v5276_v38 = vunpack.i.h.bf16 %v7123_v26 }
 0x947   : > { %v7205_v45 = vpop.permute.xlu2 %5403  ;;  %v7207_v12 = vpop.permute.xlu1 %5368  ;;  %4400 = vmatpush.msrb.mxu2 %v3860_v11  ;;  %v5275_v11 = vunpack.i.l.bf16 %v7123_v26 }
 0x949   : > { %v7210_v2 = vpop.permute.xlu0 %5388  ;;  %4401 = vmatpush.msrb.mxu2 %v3858_v16 }
 0x94f   : > { %v7212_v50 = vpop.permute.xlu2 %5418  ;;  %v7214_v60 = vpop.permute.xlu1 %5373 }
 0x950   : > { %v5375_v21 = vunpack.i.l.bf16 %v7214_v60  ;;  %v5420_v40 = vunpack.i.l.bf16 %v7212_v50 }
 0x951   : > { %v5394_v49 = vpop.permute.xlu0 %5393 }
 0x952   : > { %v5396_v39 = vunpack.i.h.bf16 %v5394_v49  ;;  %v5395_v47 = vunpack.i.l.bf16 %v5394_v49 }
 0x954   : > { %v3865_v57 = vsel %vm2752_vm15, %v5401_v55, %v5395_v47  ;;  %v3863_v43 = vsel %vm2752_vm15, %v5351_v35, %v5396_v39  ;;  %v5386_v39 = vunpack.i.h.bf16 %v7192_v14  ;;  %v5385_v47 = vunpack.i.l.bf16 %v7192_v14 }
 0x955   : > { %4485 = vmatpush.msrb.mxu1 %v3865_v57  ;;  %v7643_v57 = vunpack.i.h.bf16 %v7184_v5 }
 0x957   : > { %v7218_v13 = vpop.permute.xlu2 %5448  ;;  %v7220_v33 = vpop.permute.xlu1 %5378  ;;  %4486 = vmatpush.msrb.mxu1 %v3863_v43  ;;  %v5360_v43 = vunpack.i.l.bf16 %v7184_v5 }
 0x958   : > { %v5381_v24 = vunpack.i.h.bf16 %v7220_v33  ;;  %v5380_v19 = vunpack.i.l.bf16 %v7220_v33 }
 0x959   : > { %v7226_v62 = vpop.permute.xlu0 %5408 }
 0x95a   : > { %v4176_v34 = vsel %vm3085_vm14, %v5380_v19, %v5381_v24  ;;  %v3774_v19 = vsel %vm2658_vm0, %v5275_v11, %v5276_v38  ;;  %v4102_v11 = vsel %vm3012_vm2, %v5360_v43, %v7643_v57  ;;  %v5371_v57 = vunpack.i.h.bf16 %v7207_v12 }
 0x95b   : > { %4427 = vmatpush.msra.mxu0 %v4176_v34  ;;  %v5340_v34 = vunpack.i.l.bf16 %v7194_v59 }
 0x95d   : > { %4428 = vmatpush.msra.mxu0 %v4174_v61 }
 0x95f   : > { %v7241_v53 = vpop.permute.xlu2 %5453  ;;  %v5414_v3 = vpop.permute.xlu1 %5413  ;;  %4429 = vmatpush.msra.mxu0 %v4172_v4  ;;  %v7645_v4 = vunpack.i.h.bf16 %v7161_v6 }
 0x960   : > { %v5416_v18 = vunpack.i.h.bf16 %v5414_v3  ;;  %v5415_v22 = vunpack.i.l.bf16 %v5414_v3  ;;  %v5300_v3 = vunpack.i.l.bf16 %v7161_v6 }
 0x961   : > { %v7247_v44 = vpop.permute.xlu0 %5423  ;;  %4430 = vmatpush.msra.mxu0 %v4170_v15  ;;  %v3696_v15 = vsel %vm2561_vm1, %v5385_v47, %v5386_v39 }
 0x962   : > { %v5426_v35 = vunpack.i.h.bf16 %v7247_v44  ;;  %v5425_v20 = vunpack.i.l.bf16 %v7247_v44  ;;  %v3861_v55 = vsel %vm2752_vm15, %v5311_v51, %v5415_v22  ;;  %v3859_v25 = vsel %vm2752_vm15, %v5271_v32, %v5416_v18 }
 0x963   : > { %4487 = vmatpush.msrb.mxu1 %v3861_v55  ;;  %v3778_v51 = vsel %vm2658_vm0, %v5355_v30, %v5356_v17  ;;  %v3776_v32 = vsel %vm2658_vm0, %v5315_v1, %v5316_v29  ;;  %v7642_v18 = vunpack.i.h.bf16 %v7190_v54  ;;  %v5320_v22 = vunpack.i.l.bf16 %v7190_v54 }
 0x964   : > { %v3780_v56 = vsel %vm2658_vm0, %v5425_v20, %v5426_v35  ;;  %v7649_v20 = vunpack.i.h.bf16 %v7074_v58  ;;  %v5265_v55 = vunpack.i.l.bf16 %v7074_v58  ;;  %v7648_v1 = vunpack.i.h.bf16 %v7142_v63 }
 0x965   : > { %4402 = vmatpush.msrb.mxu2 %v3780_v56  ;;  %4488 = vmatpush.msrb.mxu1 %v3859_v25  ;;  %v5280_v56 = vunpack.i.l.bf16 %v7142_v63  ;;  %v3694_v25 = vsel %vm2561_vm1, %v5340_v34, %v7650_v37  ;;  %v5451_v34 = vunpack.i.h.bf16 %v7218_v13  ;;  %v5290_v37 = vunpack.i.l.bf16 %v7105_v28 }
 0x967   : > { %v7264_v16 = vpop.permute.xlu2 %5468  ;;  %v7266_v49 = vpop.permute.xlu1 %5438  ;;  %4403 = vmatpush.msrb.mxu2 %v3778_v51 }
 0x968   : > { %v5441_v43 = vunpack.i.h.bf16 %v7266_v49 }
 0x969   : > { %v7275_v9 = vpop.permute.xlu0 %5428  ;;  %4404 = vmatpush.msrb.mxu2 %v3776_v32  ;;  %v3692_v32 = vsel %vm2561_vm1, %v5300_v3, %v7645_v4  ;;  %v3690_v3 = vsel %vm2561_vm1, %v5265_v55, %v7649_v20  ;;  %v5330_v55 = vunpack.i.l.bf16 %v7177_v8 }
 0x96a   : > { %v7644_v46 = vunpack.i.h.bf16 %v7275_v9  ;;  %v5430_v61 = vunpack.i.l.bf16 %v7275_v9 }
 0x96b   : > { %4405 = vmatpush.msrb.mxu2 %v3774_v19  ;;  %v4100_v19 = vsel %vm3012_vm2, %v5320_v22, %v7642_v18  ;;  %v4098_v22 = vsel %vm3012_vm2, %v5280_v56, %v7648_v1  ;;  %v5365_v18 = vunpack.i.l.bf16 %v7196_v27 }
 0x96c   : > { %v4104_v30 = vsel %vm3012_vm2, %v5430_v61, %v7644_v46  ;;  %v5450_v61 = vunpack.i.l.bf16 %v7218_v13  ;;  %v5370_v46 = vunpack.i.l.bf16 %v7207_v12 }
 0x96d   : > { %4406 = vmatpush.msrb.mxu2 %v3696_v15  ;;  %4431 = vmatpush.msra.mxu0 %v4104_v30  ;;  %v5440_v15 = vunpack.i.l.bf16 %v7266_v49  ;;  %v5291_v30 = vunpack.i.h.bf16 %v7105_v28 }
 0x96e   : > { %v4020_v1 = vsel %vm2918_vm3, %v5450_v61, %v5451_v34  ;;  %v4018_v44 = vsel %vm2918_vm3, %v5370_v46, %v5371_v57 }
 0x96f   : > { %v7304_v51 = vpop.permute.xlu2 %5478  ;;  %v7306_v47 = vpop.permute.xlu1 %5443  ;;  %4407 = vmatpush.msrb.mxu2 %v3694_v25  ;;  %4432 = vmatpush.msra.mxu0 %v4102_v11  ;;  %v5366_v25 = vunpack.i.h.bf16 %v7196_v27  ;;  %v3624_v56 = vsel %vm2488_vm4, %v5440_v15, %v5441_v43 }
 0x971   : > { %v5434_v11 = vpop.permute.xlu0 %5433  ;;  %4408 = vmatpush.msrb.mxu2 %v3692_v32  ;;  %4433 = vmatpush.msra.mxu0 %v4100_v19  ;;  %v5325_v32 = vunpack.i.l.bf16 %v7135_v7  ;;  %v5331_v19 = vunpack.i.h.bf16 %v7177_v8  ;;  %v3622_v15 = vsel %vm2488_vm4, %v5365_v18, %v5366_v25  ;;  %v5390_v18 = vunpack.i.l.bf16 %v7210_v2  ;;  %v4280_v8 = vld [vmem:[%s7736_s28 + $0x10] sm:$0xff] }
 0x972   : > { %v5435_v4 = vunpack.i.l.bf16 %v5434_v11  ;;  %v5436_v23 = vunpack.i.h.bf16 %v5434_v11  ;;  %v5286_v11 = vunpack.i.h.bf16 %v7137_v42 }
 0x973   : > { %4409 = vmatpush.msrb.mxu2 %v3690_v3  ;;  %4434 = vmatpush.msra.mxu0 %v4098_v22  ;;  %v5285_v3 = vunpack.i.l.bf16 %v7137_v42  ;;  %v5455_v22 = vunpack.i.l.bf16 %v7241_v53  ;;  %v3620_v46 = vsel %vm2488_vm4, %v5325_v32, %v5326_v10  ;;  %v7378_v32 = vld [vmem:[%s7736_s28] sm:$0xff] }
 0x974   : > { %v3781_v20 = vsel %vm2658_vm0, %v5426_v35, %v5435_v4  ;;  %v5456_v35 = vunpack.i.h.bf16 %v7241_v53  ;;  %v4016_v53 = vsel %vm2918_vm3, %v5330_v55, %v5331_v19  ;;  %v5346_v55 = vunpack.i.h.bf16 %v7153_v36 }
 0x975   : > { %4410 = vmatpush.msrb.mxu2 %v3624_v56  ;;  %4435 = vmatpush.msra.mxu0 %v4020_v1  ;;  %v5391_v1 = vunpack.i.h.bf16 %v7210_v2  ;;  %v3777_v52 = vsel %vm2658_vm0, %v5316_v29, %v5455_v22  ;;  %v5306_v29 = vunpack.i.h.bf16 %v7151_v41 }
 0x976   : > { %4489 = vmatpush.msrb.mxu1 %v3781_v20  ;;  %v3779_v20 = vsel %vm2658_vm0, %v5356_v17, %v5436_v23  ;;  %v3618_v23 = vsel %vm2488_vm4, %v5285_v3, %v5286_v11  ;;  %v4014_v17 = vsel %vm2918_vm3, %v5290_v37, %v5291_v30  ;;  %v3775_v37 = vsel %vm2658_vm0, %v5276_v38, %v5456_v35 }
 0x977   : > { %v7353_v4 = vpop.permute.xlu2 %5493  ;;  %v5464_v61 = vpop.permute.xlu1 %5463  ;;  %4411 = vmatpush.msrb.mxu2 %v3622_v15  ;;  %4436 = vmatpush.msra.mxu0 %v4018_v44  ;;  %v5345_v44 = vunpack.i.l.bf16 %v7153_v36  ;;  %v5305_v3 = vunpack.i.l.bf16 %v7151_v41  ;;  %v5411_v38 = vunpack.i.h.bf16 %v7226_v62  ;;  %v5410_v35 = vunpack.i.l.bf16 %v7226_v62 }
 0x978   : > { %4490 = vmatpush.msrb.mxu1 %v3779_v20  ;;  %v5465_v56 = vunpack.i.l.bf16 %v5464_v61  ;;  %v5376_v20 = vunpack.i.h.bf16 %v7214_v60  ;;  %v5466_v22 = vunpack.i.h.bf16 %v5464_v61  ;;  %v4177_v60 = vsel %vm3085_vm14, %v5381_v24, %v5375_v21 }
 0x979   : > { %v7366_v15 = vpop.permute.xlu0 %5458  ;;  %4412 = vmatpush.msrb.mxu2 %v3620_v46  ;;  %4437 = vmatpush.msra.mxu0 %v4016_v53  ;;  %v5405_v46 = vunpack.i.l.bf16 %v7205_v45  ;;  %v3936_v61 = vsel %vm1042_vm5, %v5390_v18, %v5391_v1  ;;  %v5406_v53 = vunpack.i.h.bf16 %v7205_v45  ;;  %v3934_v45 = vsel %vm1042_vm5, %v5345_v44, %v5346_v55 }
 0x97a   : > { %4491 = vmatpush.msrb.mxu1 %v3777_v52  ;;  %v3697_v26 = vsel %vm2561_vm1, %v5386_v39, %v5465_v56  ;;  %v4175_v33 = vsel %vm3085_vm14, %v5336_v0, %v5376_v20  ;;  %v7737_v39 = vunpack.i.h.bf16 %v7194_v59  ;;  %v3932_v52 = vsel %vm1042_vm5, %v5305_v3, %v5306_v29  ;;  %v7426_v20 = vld [vmem:[%s7736_s28 + $0x18] sm:$0xff] }
 0x97b   : > { %4413 = vmatpush.msrb.mxu2 %v3618_v23  ;;  %4438 = vmatpush.msra.mxu0 %v4014_v17  ;;  %v4173_v0 = vsel %vm3085_vm14, %v7738_v48, %v5405_v46  ;;  %v7739_v59 = vunpack.i.h.bf16 %v7115_v31  ;;  %v5421_v21 = vunpack.i.h.bf16 %v7212_v50  ;;  %v7437_v46 = vld [vmem:[%s7736_s28 + $0x8] sm:$0xff]  ;;  %v5495_v31 = vunpack.i.l.bf16 %v7353_v4 }
 0x97c   : > { %4492 = vmatpush.msrb.mxu1 %v3775_v37  ;;  %4414 = vmatmul.f32.vlgmr.msrb.gmra.mxu2 %v7378_v32  ;;  %v3695_v18 = vsel %vm2561_vm1, %v7737_v39, %v5466_v22  ;;  %v3930_v22 = vsel %vm1042_vm5, %v5410_v35, %v5411_v38  ;;  %v7740_v37 = vunpack.i.h.bf16 %v7161_v6  ;;  %v7741_v50 = vunpack.i.h.bf16 %v7275_v9 }
 0x97d   : > { %4514 = vmatpush.msra.mxu2 %v4177_v60  ;;  %4439 = vmatpush.msra.mxu0 %v3936_v61  ;;  %v4171_v44 = vsel %vm3085_vm14, %v7739_v59, %v5406_v53  ;;  %v5445_v60 = vunpack.i.l.bf16 %v7306_v47  ;;  %v5496_v53 = vunpack.i.h.bf16 %v7353_v4  ;;  %v7742_v6 = vunpack.i.h.bf16 %v7074_v58 }
 0x97e   : > { %4493 = vmatpush.msrb.mxu1 %v3697_v26  ;;  %v4105_v61 = vsel %vm3012_vm2, %v7741_v50, %v5420_v40  ;;  %v5446_v35 = vunpack.i.h.bf16 %v7306_v47  ;;  %v3625_v58 = vsel %vm2488_vm4, %v5441_v43, %v5495_v31  ;;  %v5460_v39 = vunpack.i.l.bf16 %v7366_v15  ;;  %v4285_v50 = vld [vmem:[%s7736_s28 + $0x38] sm:$0xff] }
 0x97f   : > { %4515 = vmatpush.msra.mxu2 %v4175_v33  ;;  %v7409_v24 = vpop.permute.xlu2 %5513  ;;  %v5474_v14 = vpop.permute.xlu1 %5473  ;;  %4440 = vmatpush.msra.mxu0 %v3934_v45  ;;  %v7743_v33 = vunpack.i.h.bf16 %v7184_v5  ;;  %v7744_v47 = vunpack.i.h.bf16 %v7190_v54  ;;  %v3623_v48 = vsel %vm2488_vm4, %v5366_v25, %v5496_v53  ;;  %v5461_v49 = vunpack.i.h.bf16 %v7366_v15 }
 0x980   : > { %v5475_v56 = vunpack.i.l.bf16 %v5474_v14  ;;  %4494 = vmatpush.msrb.mxu1 %v3695_v18  ;;  %v5476_v23 = vunpack.i.h.bf16 %v5474_v14  ;;  %v5515_v9 = vunpack.i.l.bf16 %v7409_v24  ;;  %v5516_v18 = vunpack.i.h.bf16 %v7409_v24 }
 0x981   : > { %4516 = vmatpush.msra.mxu2 %v4173_v0  ;;  %v7420_v17 = vpop.permute.xlu0 %5483  ;;  %4441 = vmatpush.msra.mxu0 %v3932_v52  ;;  %v4103_v45 = vsel %vm3012_vm2, %v7743_v33, %v5421_v21  ;;  %v4101_v5 = vsel %vm3012_vm2, %v7744_v47, %v5445_v60  ;;  %v7473_v0 = vld [vmem:[%s7736_s28 + $0x30] sm:$0xff]  ;;  %v7745_v54 = vunpack.i.h.bf16 %v7142_v63  ;;  %v5470_v15 = vunpack.i.l.bf16 %v7264_v16 }
 0x982   : > { %v3693_v3 = vsel %vm2561_vm1, %v7740_v37, %v5475_v56  ;;  %v3691_v26 = vsel %vm2561_vm1, %v7742_v6, %v5476_v23  ;;  %v7482_v23 = vld [vmem:[%s7736_s28 + $0x20] sm:$0xff]  ;;  %v5486_v59 = vunpack.i.h.bf16 %v7420_v17  ;;  %v5485_v27 = vunpack.i.l.bf16 %v7420_v17  ;;  %v7746_v33 = vld [vmem:[#allocation22_spill] sm:$0xff] }
 0x983   : > { %4517 = vmatpush.msra.mxu2 %v4171_v44  ;;  %4442 = vmatpush.msra.mxu0 %v3930_v22  ;;  %v4099_v24 = vsel %vm3012_vm2, %v7745_v54, %v5446_v35  ;;  %v3621_v25 = vsel %vm2488_vm4, %v5326_v10, %v5515_v9  ;;  %v4021_v63 = vsel %vm2918_vm3, %v5451_v34, %v5460_v39  ;;  %v5471_v10 = vunpack.i.h.bf16 %v7264_v16  ;;  %v4288_v9 = vld [vmem:[%s7736_s28 + $0x50] sm:$0xff] }
 0x984   : > { %4495 = vmatpush.msrb.mxu1 %v3693_v3  ;;  %4417 = vmatmul.f32.gmra.mxu2 %v7426_v20  ;;  %v3619_v7 = vsel %vm2488_vm4, %v5286_v11, %v5516_v18  ;;  %v4019_v13 = vsel %vm2918_vm3, %v5371_v57, %v5461_v49  ;;  %v4258_v42 = vsel %vm3179_vm7, %v5485_v27, %v5486_v59  ;;  %v5480_v57 = vunpack.i.l.bf16 %v7304_v51  ;;  %v4287_v3 = vld [vmem:[%s7736_s28 + $0x48] sm:$0xff]  ;;  %v4286_v18 = vld [vmem:[%s7736_s28 + $0x40] sm:$0xff] }
 0x985   : > { %4443 = vmatmul.f32.vlgmr.msra.gmra.mxu0 %v7437_v46  ;;  %4518 = vmatpush.msra.mxu2 %v4105_v61  ;;  %v4017_v12 = vsel %vm2918_vm3, %v5331_v19, %v5470_v15  ;;  %v4015_v31 = vsel %vm2918_vm3, %v5291_v30, %v5471_v10  ;;  %v5481_v19 = vunpack.i.h.bf16 %v7304_v51 }
 0x986   : > { %4496 = vmatpush.msrb.mxu1 %v3691_v26  ;;  %v3937_v28 = vsel %vm1042_vm5, %v5391_v1, %v5480_v57 }
 0x987   : > { %4519 = vmatpush.msra.mxu2 %v4103_v45  ;;  %v7455_v14 = vpop.permute.xlu2 %4383  ;;  %v7457_v4 = vpop.permute.xlu1 %5488  ;;  %v3935_v51 = vsel %vm1042_vm5, %v5346_v55, %v5481_v19 }
 0x988   : > { %4497 = vmatpush.msrb.mxu1 %v3625_v58  ;;  %v5491_v21 = vunpack.i.h.bf16 %v7457_v4  ;;  %v5490_v40 = vunpack.i.l.bf16 %v7457_v4  ;;  %v4283_v58 = vld [vmem:[%s7736_s28 + $0x28] sm:$0xff] }
 0x989   : > { %4520 = vmatpush.msra.mxu2 %v4101_v5  ;;  %v7467_v56 = vpop.permute.xlu0 %5498 }
 0x98a   : > { %v5501_v43 = vunpack.i.h.bf16 %v7467_v56  ;;  %v5500_v52 = vunpack.i.l.bf16 %v7467_v56  ;;  %4498 = vmatpush.msrb.mxu1 %v3623_v48  ;;  %v4256_v37 = vsel %vm3179_vm7, %v5490_v40, %v5491_v21 }
 0x98b   : > { %4521 = vmatpush.msra.mxu2 %v4099_v24 }
 0x98c   : > { %4499 = vmatpush.msrb.mxu1 %v3621_v25  ;;  %4420 = vmatmul.f32.gmra.mxu2 %v7473_v0  ;;  %v4260_v44 = vsel %vm3179_vm7, %v5500_v52, %v5501_v43 }
 0x98d   : > { %4446 = vmatmul.f32.gmra.mxu0 %v7482_v23  ;;  %4522 = vmatpush.msra.mxu2 %v4021_v63 }
 0x98e   : > { %4468 = vmatpush.msra.mxu3 %v4260_v44  ;;  %4500 = vmatpush.msrb.mxu1 %v3619_v7 }
 0x98f   : > { %4501 = vmatmul.f32.vlgmr.msrb.gmra.mxu1 %v7378_v32  ;;  %4523 = vmatpush.msra.mxu2 %v4019_v13  ;;  %v7508_v34 = vpop.permute.xlu2 %4368  ;;  %v5509_v22 = vpop.permute.xlu1 %5508 }
 0x990   : > { %v5511_v16 = vunpack.i.h.bf16 %v5509_v22  ;;  %v5510_v11 = vunpack.i.l.bf16 %v5509_v22  ;;  %4469 = vmatpush.msra.mxu3 %v4258_v42 }
 0x991   : > { %4524 = vmatpush.msra.mxu2 %v4017_v12  ;;  %v5504_v32 = vpop.permute.xlu0 %5503 }
 0x992   : > { %4470 = vmatpush.msra.mxu3 %v4256_v37  ;;  %v4254_v60 = vsel %vm3179_vm7, %v5510_v11, %v5511_v16  ;;  %v5505_v61 = vunpack.i.l.bf16 %v5504_v32  ;;  %v5506_v30 = vunpack.i.h.bf16 %v5504_v32 }
 0x993   : > { %4525 = vmatpush.msra.mxu2 %v4015_v31 }
 0x994   : > { %4471 = vmatpush.msra.mxu3 %v4254_v60  ;;  %4423 = vmatmul.f32.gmra.mxu2 %v4287_v3  ;;  %v3933_v35 = vsel %vm1042_vm5, %v5306_v29, %v5505_v61  ;;  %v3931_v36 = vsel %vm1042_vm5, %v5411_v38, %v5506_v30 }
 0x995   : > { %4449 = vmatmul.f32.gmra.mxu0 %v4285_v50  ;;  %4900 = vmatmul.msk.f32.vlgmr.msra.gmra.mxu3 %vm945_vm6, %v4280_v8 }
 0x996   : > { %4526 = vmatpush.msra.mxu2 %v3937_v28 }
 0x997   : > { %4504 = vmatmul.f32.gmra.mxu1 %v7426_v20  ;;  %v1490_v53 = vpop.permute.xlu2 %1489  ;;  %v5524_v6 = vpop.permute.xlu1 %5523 }
 0x998   : > { %4527 = vmatpush.msra.mxu2 %v3935_v51  ;;  %v1492_v26 = vperm.slane %v1490_v53, 0  ;;  %v5525_v29 = vunpack.i.l.bf16 %v5524_v6  ;;  %v5526_v47 = vunpack.i.h.bf16 %v5524_v6 }
 0x999   : > { %v5519_v2 = vpop.permute.xlu0 %5518 }
 0x99a   : > { %v1514_v45 = vadd.f32 %v7746_v33, %v1492_v26  ;;  %4528 = vmatpush.msra.mxu2 %v3933_v35  ;;  %v5520_v1 = vunpack.i.l.bf16 %v5519_v2  ;;  %v5521_v20 = vunpack.i.h.bf16 %v5519_v2  ;;  %v4257_v5 = vsel %vm3179_vm7, %v5491_v21, %v5525_v29 }
 0x99c   : > { %v1516_v55 = vsub.f32 0.0, %v1514_v45  ;;  %4529 = vmatpush.msra.mxu2 %v3931_v36  ;;  %v4261_v41 = vsel %vm3179_vm7, %v5501_v43, %v5520_v1  ;;  %v4259_v38 = vsel %vm3179_vm7, %v5486_v59, %v5521_v20  ;;  %v4289_v43 = vld [vmem:[%s7736_s28 + $0x58] sm:$0xff] }
 0x99d   : > { %4452 = vmatmul.f32.gmra.mxu0 %v4288_v9  ;;  %4901 = vmatmul.msk.f32.gmra.mxu3 %vm945_vm6, %v4283_v58 }
 0x99e   : > { %v1517_v39 = vmul.f32 1.442695, %v1516_v55  ;;  %4530 = vmatmul.f32.vlgmr.msra.gmra.mxu2 %v7437_v46  ;;  %4555 = vmatpush.msrb.mxu0 %v4261_v41  ;;  %v4255_v46 = vsel %vm3179_vm7, %v5511_v16, %v5526_v47 }
 0x99f   : > { %4507 = vmatmul.f32.gmra.mxu1 %v7473_v0  ;;  %v7551_v62 = vpop.permute.xlu1 %4373  ;;  %v7747_v0 = vld [vmem:[#allocation21_spill] sm:$0xff] }
 0x9a0   : > { %5527 = vpow2.f32 %v1517_v39  ;;  %4556 = vmatpush.msrb.mxu0 %v4259_v38 }
 0x9a1   : > { %v4379_v1 = vpop.permute.xlu0 %4378 }
 0x9a2   : > { %4557 = vmatpush.msrb.mxu0 %v4257_v5 }
 0x9a4   : > { %4558 = vmatpush.msrb.mxu0 %v4255_v46 }
 0x9a5   : > { %4902 = vmatmul.msk.f32.gmra.mxu3 %vm945_vm6, %v4286_v18  ;;  %4904 = vmatmul.msk.f32.vlgmr.msrb.gmra.mxu0 %vm945_vm6, %v4280_v8 }
 0x9a6   : > { %v5528_v56 = vpop.eup %5527  ;;  %4533 = vmatmul.f32.gmra.mxu2 %v7482_v23 }
 0x9a7   : > { %v1519_v17 = vadd.f32 1.0, %v5528_v56  ;;  %4510 = vmatmul.f32.gmra.mxu1 %v4287_v3  ;;  %v1343_v48 = vpop.permute.xlu1 %1342 }
 0x9a8   : > { %v1345_v4 = vperm.slane %v1343_v48, 0 }
 0x9a9   : > { %5529 = vrcp.f32 %v1519_v17  ;;  %v1531_v27 = vand.u32 2147483648, %v1519_v17  ;;  %v1529_v15 = vand.u32 2147483647, %v1519_v17  ;;  %vm1525_vm8 = vweird.f32 %v1519_v17 }
 0x9aa   : > { %v1367_v49 = vadd.f32 %v7747_v0, %v1345_v4 }
 0x9ab   : > { %v1532_v21 = vor.u32 1.1754944e-38, %v1531_v27  ;;  %vm1530_vm11 = vcmp.eq.f32.partialorder %v1529_v15, 8.507059e+37  ;;  %v4580_v15 = vld [vmem:[%s7748_s1] sm:$0x3] }
 0x9ac   : > { %v1369_v52 = vsub.f32 0.0, %v1367_v49 }
 0x9ad   : > { %4903 = vmatmul.msk.f32.gmra.mxu3 %vm945_vm6, %v4289_v43  ;;  %4905 = vmatmul.msk.f32.gmra.mxu0 %vm945_vm6, %v4283_v58 }
 0x9ae   : > { %v1370_v54 = vmul.f32 1.442695, %v1369_v52  ;;  %4536 = vmatmul.f32.gmra.mxu2 %v4285_v50 }
 0x9af   : > { %v5530_v24 = vpop.eup %5529 }
 0x9b0   : > { %v1521_v59 = vmul.f32 %v5530_v24, %v1519_v17  ;;  %5531 = vpow2.f32 %v1370_v54  ;;  %vm1526_vm5 = vweird.f32 %v5530_v24 }
 0x9b1   : > { %vm1527_vm10 = vmor %vm1525_vm8, %vm1526_vm5  ;;  %vm4671_vm5 = vcmask 1041408  }
 0x9b2   : > { %v1522_v23 = vsub.f32 1.0, %v1521_v59 }
 0x9b4   : > { %v1523_v25 = vmul.f32 %v5530_v24, %v1522_v23 }
 0x9b5   : > { %4906 = vmatmul.msk.f32.gmra.mxu0 %vm945_vm6, %v4286_v18 }
 0x9b6   : > { %v5532_v63 = vpop.eup %5531  ;;  %v1524_v44 = vadd.f32 %v5530_v24, %v1523_v25  ;;  %4539 = vmatmul.f32.gmra.mxu2 %v4288_v9 }
 0x9b7   : > { %v1372_v40 = vadd.f32 1.0, %v5532_v63 }
 0x9b8   : > { %v1528_v7 = vsel %vm1527_vm10, %v5530_v24, %v1524_v44 }
 0x9b9   : > { %v1533_v10 = vsel %vm1530_vm11, %v1532_v21, %v1528_v7  ;;  %5533 = vrcp.f32 %v1372_v40  ;;  %v1384_v16 = vand.u32 2147483648, %v1372_v40  ;;  %v1382_v12 = vand.u32 2147483647, %v1372_v40 }
 0x9ba   : > { %1537 = vst.msk [vmem:[%s934_s0 + $0x1] sm:$0x1] %vm1535_vm9, %v1533_v10  ;;  %vm1378_vm13 = vweird.f32 %v1372_v40 }
 0x9bb   : > { %v1385_v32 = vor.u32 1.1754944e-38, %v1384_v16  ;;  %vm1383_vm15 = vcmp.eq.f32.partialorder %v1382_v12, 8.507059e+37 }
 0x9bd   : > { %4907 = vmatmul.msk.f32.gmra.mxu0 %vm945_vm6, %v4289_v43 }
 0x9bf   : > { %v5534_v13 = vpop.eup %5533 }
 0x9c0   : > { %v1374_v22 = vmul.f32 %v5534_v13, %v1372_v40  ;;  %vm1379_vm12 = vweird.f32 %v5534_v13 }
 0x9c1   : > { %vm1380_vm14 = vmor %vm1378_vm13, %vm1379_vm12 }
 0x9c2   : > { %v1375_v42 = vsub.f32 1.0, %v1374_v22 }
 0x9c4   : > { %v1376_v11 = vmul.f32 %v5534_v13, %v1375_v42 }
 0x9c6   : > { %v1377_v57 = vadd.f32 %v5534_v13, %v1376_v11 }
 0x9c8   : > { %v1381_v37 = vsel %vm1380_vm14, %v5534_v13, %v1377_v57 }
 0x9c9   : > { %v1386_v3 = vsel %vm1383_vm15, %v1385_v32, %v1381_v37 }
 0x9ca   : > { %1536 = vst.msk [vmem:[%s934_s0] sm:$0x1] %vm1535_vm9, %v1386_v3 }
 0x9ff   : > { %v4415_v31 = vpop.f32.mrf.mxu2 }
 0xa00   : > { %v4416_v41 = vadd.f32 %v4415_v31, %v7508_v34 }
 0xa02   : > { %v4444_v60 = vpop.f32.mrf.mxu0 }
 0xa03   : > { %v4445_v17 = vadd.f32 %v4444_v60, %v4416_v41 }
 0xa07   : > { %v4418_v50 = vpop.f32.mrf.mxu2 }
 0xa08   : > { %v4419_v55 = vadd.f32 %v4418_v50, %v7551_v62 }
 0xa0a   : > { %v4447_v8 = vpop.f32.mrf.mxu0 }
 0xa0b   : > { %v4448_v38 = vadd.f32 %v4447_v8, %v4419_v55 }
 0xa0c   : > { %v4502_v28 = vpop.f32.mrf.mxu1 }
 0xa0d   : > { %v4503_v63 = vadd.f32 %v4502_v28, %v7508_v34  ;;  %v4585_v34 = vpop.permute.xlu0 %4584 }
 0xa0f   : > { %v4421_v19 = vpop.f32.mrf.mxu2 }
 0xa10   : > { %v4422_v58 = vadd.f32 %v4421_v19, %v4379_v1 }
 0xa12   : > { %v4450_v61 = vpop.f32.mrf.mxu0 }
 0xa13   : > { %v4451_v29 = vadd.f32 %v4450_v61, %v4422_v58 }
 0xa14   : > { %v4505_v26 = vpop.f32.mrf.mxu1 }
 0xa15   : > { %v4506_v24 = vadd.f32 %v4505_v26, %v7551_v62 }
 0xa17   : > { %v4424_v30 = vpop.f32.mrf.mxu2 }
 0xa18   : > { %v4473_v51 = vpop.f32.mrf.mxu3  ;;  %v4425_v20 = vadd.f32 %v4424_v30, %v7455_v14 }
 0xa19   : > { %v4474_v0 = vadd.f32 %v4473_v51, %v4445_v17 }
 0xa1a   : > { %v4453_v53 = vpop.f32.mrf.mxu0 }
 0xa1b   : > { %v4454_v39 = vadd.f32 %v4453_v53, %v4425_v20  ;;  %v4572_v27 = vmax.f32 %v4474_v0, 0.0 }
 0xa1c   : > { %v4508_v36 = vpop.f32.mrf.mxu1 }
 0xa1d   : > { %v4509_v52 = vadd.f32 %v4508_v36, %v4379_v1 }
 0xa20   : > { %v4476_v6 = vpop.f32.mrf.mxu3 }
 0xa21   : > { %v4531_v35 = vpop.f32.mrf.mxu2  ;;  %v4477_v48 = vadd.f32 %v4476_v6, %v4448_v38 }
 0xa22   : > { %v4560_v2 = vpop.f32.mrf.mxu0  ;;  %v4532_v7 = vadd.f32 %v4531_v35, %v4503_v63 }
 0xa23   : > { %v4574_v54 = vmax.f32 %v4477_v48, 0.0 }
 0xa24   : > { %v4511_v49 = vpop.f32.mrf.mxu1  ;;  %v4561_v42 = vadd.f32 %v4560_v2, %v4532_v7 }
 0xa25   : > { %v4512_v59 = vadd.f32 %v4511_v49, %v7455_v14 }
 0xa26   : > { %v4573_v11 = vmax.f32 %v4561_v42, 0.0 }
 0xa28   : > { %v4479_v33 = vpop.f32.mrf.mxu3 }
 0xa29   : > { %v4534_v45 = vpop.f32.mrf.mxu2  ;;  %v4480_v5 = vadd.f32 %v4479_v33, %v4451_v29 }
 0xa2a   : > { %v4563_v9 = vpop.f32.mrf.mxu0  ;;  %v4535_v44 = vadd.f32 %v4534_v45, %v4506_v24 }
 0xa2b   : > { %v4576_v43 = vmax.f32 %v4480_v5, 0.0 }
 0xa2c   : > { %v4564_v22 = vadd.f32 %v4563_v9, %v4535_v44 }
 0xa2e   : > { %v4575_v16 = vmax.f32 %v4564_v22, 0.0 }
 0xa30   : > { %v4482_v47 = vpop.f32.mrf.mxu3 }
 0xa31   : > { %v4483_v18 = vadd.f32 %v4482_v47, %v4454_v39  ;;  %v4537_v46 = vpop.f32.mrf.mxu2 }
 0xa32   : > { %v4566_v56 = vpop.f32.mrf.mxu0  ;;  %v4538_v23 = vadd.f32 %v4537_v46, %v4509_v52 }
 0xa33   : > { %v4578_v4 = vmax.f32 %v4483_v18, 0.0 }
 0xa34   : > { %v4567_v10 = vadd.f32 %v4566_v56, %v4538_v23 }
 0xa35   : > { %4602 = vmatpush.msrb.mxu3 %v4578_v4 }
 0xa36   : > { %v4577_v14 = vmax.f32 %v4567_v10, 0.0 }
 0xa37   : > { %4603 = vmatpush.msrb.mxu3 %v4576_v43 }
 0xa39   : > { %v4540_v25 = vpop.f32.mrf.mxu2  ;;  %4604 = vmatpush.msrb.mxu3 %v4574_v54 }
 0xa3a   : > { %v4541_v21 = vadd.f32 %v4540_v25, %v4512_v59  ;;  %v4569_v40 = vpop.f32.mrf.mxu0 }
 0xa3b   : > { %4605 = vmatpush.msrb.mxu3 %v4572_v27 }
 0xa3c   : > { %v4570_v13 = vadd.f32 %v4569_v40, %v4541_v21  ;;  %4908 = vmatmul.msk.f32.vlgmr.msrb.gmra.mxu3 %vm945_vm6, %v4580_v15 }
 0xa3e   : > { %v4579_v62 = vmax.f32 %v4570_v13, 0.0 }
 0xa40   : > { %4622 = vmatpush.msra.mxu1 %v4579_v62 }
 0xa42   : > { %4623 = vmatpush.msra.mxu1 %v4577_v14 }
 0xa44   : > { %4624 = vmatpush.msra.mxu1 %v4575_v16 }
 0xa46   : > { %4625 = vmatpush.msra.mxu1 %v4573_v11 }
 0xa47   : > { %4909 = vmatmul.msk.f32.vlgmr.msra.gmra.mxu1 %vm945_vm6, %v4580_v15 }
 0xabf   : > { %v4607_v12 = vpop.f32.mrf.mxu3 }
 0xac0   : > { %v4608_v57 = vadd.f32 %v4607_v12, %v4585_v34 }
 0xac2   : > { %v4630_v32 = vsub.f32 0.0, %v4608_v57 }
 0xac4   : > { %v4632_v37 = vmul.f32 1.442695, %v4630_v32  ;;  %v4627_v3 = vpop.f32.mrf.mxu1 }
 0xac5   : > { %v4628_v31 = vadd.f32 %v4627_v3, %v4585_v34 }
 0xac6   : > { %5535 = vpow2.f32 %v4632_v37 }
 0xac7   : > { %v4631_v60 = vsub.f32 0.0, %v4628_v31 }
 0xac9   : > { %v4634_v50 = vmul.f32 1.442695, %v4631_v60 }
 0xacb   : > { %5537 = vpow2.f32 %v4634_v50 }
 0xacc   : > { %v5536_v8 = vpop.eup %5535 }
 0xacd   : > { %v4636_v19 = vadd.f32 1.0, %v5536_v8 }
 0xacf   : > { %5539 = vrcp.f32 %v4636_v19  ;;  %vm4643_vm1 = vweird.f32 %v4636_v19  ;;  %v4649_v58 = vand.u32 2147483648, %v4636_v19  ;;  %v4647_v36 = vand.u32 2147483647, %v4636_v19 }
 0xad1   : > { %v5538_v61 = vpop.eup %5537  ;;  %v4650_v47 = vor.u32 1.1754944e-38, %v4649_v58  ;;  %vm4648_vm8 = vcmp.eq.f32.partialorder %v4647_v36, 8.507059e+37 }
 0xad2   : > { %v4637_v28 = vadd.f32 1.0, %v5538_v61 }
 0xad4   : > { %5541 = vrcp.f32 %v4637_v28  ;;  %v4664_v33 = vand.u32 2147483648, %v4637_v28  ;;  %v4662_v9 = vand.u32 2147483647, %v4637_v28  ;;  %vm4658_vm3 = vweird.f32 %v4637_v28 }
 0xad5   : > { %v5540_v30 = vpop.eup %5539 }
 0xad6   : > { %v4639_v51 = vmul.f32 %v5540_v30, %v4636_v19  ;;  %vm4644_vm6 = vweird.f32 %v5540_v30  ;;  %v4665_v41 = vor.u32 1.1754944e-38, %v4664_v33  ;;  %vm4663_vm7 = vcmp.eq.f32.partialorder %v4662_v9, 8.507059e+37 }
 0xad7   : > { %vm7583_vm2 = vmor %vm4643_vm1, %vm4644_vm6 }
 0xad8   : > { %v4640_v53 = vsub.f32 1.0, %v4639_v51 }
 0xada   : > { %v5542_v6 = vpop.eup %5541  ;;  %v4641_v26 = vmul.f32 %v5540_v30, %v4640_v53 }
 0xadb   : > { %v4654_v35 = vmul.f32 %v5542_v6, %v4637_v28  ;;  %vm4659_vm0 = vweird.f32 %v5542_v6 }
 0xadc   : > { %v4642_v45 = vadd.f32 %v5540_v30, %v4641_v26  ;;  %vm4660_vm4 = vmor %vm4658_vm3, %vm4659_vm0 }
 0xadd   : > { %v4655_v2 = vsub.f32 1.0, %v4654_v35 }
 0xade   : > { %v4646_v29 = vsel %vm7583_vm2, %v5540_v30, %v4642_v45 }
 0xadf   : > { %v4656_v1 = vmul.f32 %v5542_v6, %v4655_v2  ;;  %v4651_v18 = vsel %vm4648_vm8, %v4650_v47, %v4646_v29 }
 0xae1   : > { %v4657_v55 = vadd.f32 %v5542_v6, %v4656_v1 }
 0xae3   : > { %v4661_v39 = vsel %vm4660_vm4, %v5542_v6, %v4657_v55 }
 0xae4   : > { %v4666_v38 = vsel %vm4663_vm7, %v4665_v41, %v4661_v39 }
 0xae5   : > { %v4670_v5 = vrot.slane %v4666_v38, 6 }
 0xae7   : > { %v4672_v46 = vsel %vm4671_vm5, %v4651_v18, %v4670_v5 }
 0xae8   : > { %4674 = vst [vmem:[%s930_s26] sm:$0xf] %v4672_v46 }
 0xae9 PF: > { %s75_s8 = sadd.s32 1, %s5583_s8  }
 0xaea   : > { %p72_p1 = scmp.ge.s32.totalorder %s75_s8, 4  }
 0xaec   :  { %74 = sbr.rel (!%p72_p1) target bundleno = 52 (0x34), region = 208 }
 0xaf1   :  { %4710 = vsyncpa [#allocation8], 1 }
 0xaf2   :  { %4712 = vsyncpa [#allocation8 + $0x1], 1 }

</bundles_post_ra>
